<compile_context>
chip_gen: v6e
topology: v6e:2x2x1
jax: 0.10.0
libtpu: 0.0.40
codegen_flags: <defaults>
</compile_context>

<pallas_src>
import functools
import math

import jax
import jax.numpy as jnp
from jax.experimental import pallas as pl
from jax.experimental.pallas import tpu as pltpu


# ------------------------------ hw-aware knobs ------------------------------

def _vmem_limit_bytes():
    """~7/8 of physical VMEM: ~112 MiB on v5e/v6e (128 MiB), ~56 MiB on v7x (64 MiB)."""
    try:
        info = pltpu.get_tpu_info()
        cap = int(getattr(info, "vmem_capacity_bytes", 0)) or 64 * 2 ** 20
    except Exception:  # pragma: no cover - conservative fallback
        cap = 64 * 2 ** 20
    return min(int(cap * 7 // 8), 112 * 2 ** 20)


def _pick_batch_per_step(B, T, S, target_rows):
    """Batch elements per grid step.

    Constraints (in priority order):
      1. bpg divides B, and bpg*T / bpg*S are multiples of 8 or equal the full
         array dims (sublane rule for the x / image BlockSpecs).
      2. bpg*T <= target_rows (VMEM / per-step sizing).
      3. grid = B//bpg >= 2 so both v7x TensorCores get work.
    """
    def ok(d):
        if B % d:
            return False
        rt, rs = d * T, d * S
        if rt % 8 and rt != B * T:
            return False
        if rs % 8 and rs != B * S:
            return False
        return True

    cap = max(1, target_rows // max(T, 1))
    cands = [d for d in range(1, B + 1) if ok(d)]      # always contains d == B
    within = [d for d in cands if d <= cap]
    if within:
        pref = [d for d in within if B // d >= 2 or B == 1]
        return max(pref) if pref else max(within)
    return min(cands)


def _pick_tile(n, target, align):
    """Largest tile <= target that is a multiple of `align` and divides n, else n."""
    if n <= target:
        return n
    t = (target // align) * align
    while t >= align:
        if n % t == 0:
            return t
        t -= align
    return n   # TODO(synk): pad ragged dims (e.g. odd vocab sizes) instead.


# ----------------------------- kernel helpers -----------------------------

def _layer_norm(x, g, b, eps=1e-5):
    mu = jnp.mean(x, axis=-1, keepdims=True)
    var = jnp.mean((x - mu) ** 2, axis=-1, keepdims=True)   # biased var (torch LN)
    return (x - mu) * jax.lax.rsqrt(var + eps) * g + b


# --------------------------- DecoderBlock kernel ---------------------------

def decoder_block_kernel(bpg, tq, tk_img, num_heads, head_dim,
                         x_ref, img_ref,
                         psn_g, psn_b,
                         sqw, sqb, skw, skb, svw, svb, sow, sob,
                         pcn_g, pcn_b,
                         cqw, cqb, ckw, ckb, cvw, cvb, cow, cob,
                         pfn_g, pfn_b,
                         f1w, f1b, f2w, f2b,
                         o_ref):
    scale = head_dim ** (-0.5)

    x = x_ref[...] * 0.1                                   # (bpg*tq, H) f32
    img_b16 = (img_ref[...] * 0.1).astype(jnp.bfloat16)    # cast once (used by K and V)

    def mha(q_src_b16, kv_src_b16, wq, bq, wk, bk, wv, bv, wo, bo, t_q, t_k):
        # Per-head weight blocks: wq/wk/wv[h] is (H, hd), wo[h] is (hd, H).
        # No lane-boundary-crossing slices of activations; only sublane
        # (row-range) slices when bpg > 1.
        qs, ks, vs = [], [], []
        for h in range(num_heads):
            qh = (jnp.dot(q_src_b16, wq[h], preferred_element_type=jnp.float32)
                  + bq[h]) * scale                                       # (bpg*t_q, hd)
            kh = jnp.dot(kv_src_b16, wk[h], preferred_element_type=jnp.float32) + bk[h]
            vh = jnp.dot(kv_src_b16, wv[h], preferred_element_type=jnp.float32) + bv[h]
            if bpg == 1:
                qs.append(qh), ks.append(kh), vs.append(vh)
            else:
                for b in range(bpg):                                     # sublane slices
                    qs.append(qh[b * t_q:(b + 1) * t_q])
                    ks.append(kh[b * t_k:(b + 1) * t_k])
                    vs.append(vh[b * t_k:(b + 1) * t_k])

        q = jnp.stack(qs).astype(jnp.bfloat16)          # (nh*bpg, t_q, hd)
        k = jnp.stack(ks).astype(jnp.bfloat16)          # (nh*bpg, t_k, hd)
        v = jnp.stack(vs).astype(jnp.bfloat16)

        # Single batched MXU einsums over the merged (head, batch) axis.
        s = jnp.einsum('bqd,bkd->bqk', q, k, preferred_element_type=jnp.float32)
        m = jnp.max(s, axis=-1, keepdims=True)
        e = jnp.exp(s - m)
        # Mask-free softmax cannot NaN (torch nan_to_num is a no-op); divide on EUP.
        p = e * pl.reciprocal(jnp.sum(e, axis=-1, keepdims=True), approx=True)
        o = jnp.einsum('bqk,bkd->bqd', p.astype(jnp.bfloat16), v,
                       preferred_element_type=jnp.float32)               # (nh*bpg, t_q, hd)

        # Head merge via per-head output-projection accumulation (no lane concat).
        out = None
        for h in range(num_heads):
            if bpg == 1:
                oh = o[h]
            else:
                oh = jnp.concatenate([o[h * bpg + b] for b in range(bpg)], axis=0)
            c = jnp.dot(oh.astype(jnp.bfloat16), wo[h],
                        preferred_element_type=jnp.float32)              # (bpg*t_q, H)
            out = c if out is None else out + c
        return out + bo[...]

    # --- self attention (pre_self_norm) ---
    nx = _layer_norm(x, psn_g[...], psn_b[...]).astype(jnp.bfloat16)     # cast once
    x = x + mha(nx, nx, sqw, sqb, skw, skb, svw, svb, sow, sob, tq, tq)

    # --- cross attention (pre_cross_norm; K/V from scaled image features) ---
    nx = _layer_norm(x, pcn_g[...], pcn_b[...]).astype(jnp.bfloat16)
    x = x + mha(nx, img_b16, cqw, cqb, ckw, ckb, cvw, cvb, cow, cob, tq, tk_img)

    # --- feed forward (pre_ff_norm, exact erf-GELU == torch nn.GELU default) ---
    # (tanh-approx GELU would move this to the EUP, but changes numerics vs torch.)
    nx = _layer_norm(x, pfn_g[...], pfn_b[...]).astype(jnp.bfloat16)
    h1 = jnp.dot(nx, f1w[...], preferred_element_type=jnp.float32) + f1b[...]
    h1 = 0.5 * h1 * (1.0 + jax.lax.erf(h1 * (1.0 / math.sqrt(2.0))))
    x = x + (jnp.dot(h1.astype(jnp.bfloat16), f2w[...],
                     preferred_element_type=jnp.float32) + f2b[...])

    o_ref[...] = x * 10.0


_BLOCK_PARAM_ORDER = (
    "pre_self_norm_g", "pre_self_norm_b",
    "sq_w", "sq_b", "sk_w", "sk_b", "sv_w", "sv_b", "so_w", "so_b",
    "pre_cross_norm_g", "pre_cross_norm_b",
    "cq_w", "cq_b", "ck_w", "ck_b", "cv_w", "cv_b", "co_w", "co_b",
    "pre_ff_norm_g", "pre_ff_norm_b",
    "f1_w", "f1_b", "f2_w", "f2_b",
)


def _const_spec(w):
    """Constant-index weight: fetched once, single-buffered (halves weight VMEM)."""
    nd = w.ndim
    return pl.BlockSpec(w.shape, lambda g: (0,) * nd, pipeline_mode=pl.Buffered(1))


def decoder_block(x, image_features, block_params, num_heads, *,
                  vmem_limit, target_rows):
    B, T, H = x.shape
    S = image_features.shape[1]
    head_dim = H // num_heads
    bpg = _pick_batch_per_step(B, T, S, target_rows)
    grid = (B // bpg,)

    # Flatten batch*seq into the matmul M dimension -> lane/sublane-dense slabs.
    # (For non-toy configs H should be a multiple of 128.)
    x2 = x.reshape(B * T, H)
    img2 = image_features.reshape(B * S, H)

    weights = [block_params[name] for name in _BLOCK_PARAM_ORDER]

    in_specs = [pl.BlockSpec((bpg * T, H), lambda g: (g, 0)),
                pl.BlockSpec((bpg * S, H), lambda g: (g, 0))]
    in_specs += [_const_spec(w) for w in weights]
    out_specs = pl.BlockSpec((bpg * T, H), lambda g: (g, 0))

    kernel = functools.partial(decoder_block_kernel, bpg, T, S, num_heads, head_dim)
    y2 = pl.pallas_call(
        kernel,
        out_shape=jax.ShapeDtypeStruct((B * T, H), jnp.float32),
        grid=grid,
        in_specs=in_specs,
        out_specs=out_specs,
        compiler_params=pltpu.CompilerParams(
            dimension_semantics=("parallel",),   # shard batch groups across v7x TCs
            vmem_limit_bytes=vmem_limit),
    )(x2, img2, *weights)
    return y2.reshape(B, T, H)


# --------------------------- output-layer kernel ---------------------------

def output_layer_kernel(x_ref, w_ref, b_ref, o_ref):
    o_ref[...] = (jnp.dot(x_ref[...], w_ref[...],
                          preferred_element_type=jnp.float32) + b_ref[...])


def output_layer(x2d_bf16, w_bf16, b, *, row_tile=512, col_tile=1024, vmem_limit):
    N, H = x2d_bf16.shape
    V = w_bf16.shape[1]
    tn = _pick_tile(N, row_tile, 8)
    tv = _pick_tile(V, col_tile, 128)
    # Vocab tiles on the SLOW grid axis: the (H,tv) weight tile is constant
    # across the inner row axis, so the full vocab matrix streams from HBM
    # exactly once; only the small activation slab is re-read.
    grid = (V // tv, N // tn)
    return pl.pallas_call(
        output_layer_kernel,
        out_shape=jax.ShapeDtypeStruct((N, V), jnp.float32),
        grid=grid,
        in_specs=[pl.BlockSpec((tn, H), lambda jv, ir: (ir, 0)),
                  pl.BlockSpec((H, tv), lambda jv, ir: (0, jv)),
                  pl.BlockSpec((1, tv), lambda jv, ir: (0, jv))],
        out_specs=pl.BlockSpec((tn, tv), lambda jv, ir: (ir, jv)),
        compiler_params=pltpu.CompilerParams(
            dimension_semantics=("parallel", "parallel"),
            vmem_limit_bytes=vmem_limit),
    )(x2d_bf16, w_bf16, b)


# ------------------------------- parameters --------------------------------

def init_params(key, vocab_size, hidden_size, num_layers, num_heads, max_pos):
    """Parameters stored in kernel-ready layout: matmul weights in bf16, attention
    weights pre-split per head ((nh,H,hd) for Q/K/V, (nh,hd,H) for the out-proj)."""
    H = hidden_size
    hd = H // num_heads
    std = (2.0 / (5 * H)) ** 0.5
    out_std = (2.0 / (H + vocab_size)) ** 0.5
    keys = iter(jax.random.split(key, 4 + num_layers * 16))

    def nrm(shape, s):
        return jax.random.normal(next(keys), shape, dtype=jnp.float32) * s

    def split_cols(w):   # (H,H) -> (nh,H,hd): per-head column blocks of the (in,out) weight
        return jnp.transpose(w.reshape(H, num_heads, hd), (1, 0, 2)).astype(jnp.bfloat16)

    def split_rows(w):   # (H,H) -> (nh,hd,H): per-head row blocks of the (in,out) weight
        return w.reshape(num_heads, hd, H).astype(jnp.bfloat16)

    params = {
        "token_embedding": nrm((vocab_size, H), 0.02),
        "position_embedding": nrm((max_pos, H), 0.02),
        "out_w": nrm((H, vocab_size), out_std).astype(jnp.bfloat16),   # (in, out)
        "out_b": jnp.zeros((1, vocab_size), jnp.float32),
        "blocks": [],
    }
    for _ in range(num_layers):
        blk = {}
        for g in ("pre_self_norm", "pre_cross_norm", "pre_ff_norm"):
            blk[g + "_g"] = jnp.ones((1, H), jnp.float32)
            blk[g + "_b"] = jnp.zeros((1, H), jnp.float32)
        for nm in ("sq", "sk", "sv", "cq", "ck", "cv"):
            blk[nm + "_w"] = split_cols(nrm((H, H), std))
            blk[nm + "_b"] = jnp.zeros((num_heads, 1, hd), jnp.float32)
        for nm in ("so", "co"):
            blk[nm + "_w"] = split_rows(nrm((H, H), std))
            blk[nm + "_b"] = jnp.zeros((1, H), jnp.float32)
        blk["f1_w"] = nrm((H, 4 * H), std).astype(jnp.bfloat16)
        blk["f1_b"] = jnp.zeros((1, 4 * H), jnp.float32)
        blk["f2_w"] = nrm((4 * H, H), std).astype(jnp.bfloat16)
        blk["f2_b"] = jnp.zeros((1, H), jnp.float32)
        params["blocks"].append(blk)
    return params


# ------------------------------ Decoder forward -----------------------------

def decoder_forward(params, image_features, text_tokens, num_heads):
    if image_features.ndim == 2:
        image_features = image_features[:, None, :]
    B, T = text_tokens.shape
    assert T <= params["position_embedding"].shape[0], "T exceeds max_position_embeddings"

    vmem_limit = _vmem_limit_bytes()
    target_rows = 512 if vmem_limit >= 96 * 2 ** 20 else 256   # v5e/v6e vs v7x

    tok = params["token_embedding"][text_tokens]               # gather (glue)
    pos = params["position_embedding"][jnp.arange(T)]
    hidden = (tok + pos).astype(jnp.float32)
    for blk in params["blocks"]:
        hidden = decoder_block(hidden, image_features, blk, num_heads,
                               vmem_limit=vmem_limit, target_rows=target_rows)
    H = hidden.shape[-1]
    logits2d = output_layer(hidden.reshape(B * T, H).astype(jnp.bfloat16),
                            params["out_w"], params["out_b"],
                            vmem_limit=vmem_limit)
    return logits2d.reshape(B, T, -1)


# ----------------------------------- main -----------------------------------

if __name__ == "__main__":
    VOCAB = 64
    HIDDEN = 32
    NUM_LAYERS = 2
    NUM_HEADS = 4
    MAX_POS = 16
    B, T, S_IMG = 2, 8, 4

    root = jax.random.PRNGKey(0)
    k_param, k_img, k_tok = jax.random.split(root, 3)

    params = init_params(k_param, VOCAB, HIDDEN, NUM_LAYERS, NUM_HEADS, MAX_POS)
    image_features = jax.random.normal(k_img, (B, S_IMG, HIDDEN), dtype=jnp.float32)
    text_tokens = jax.random.randint(k_tok, (B, T), 0, VOCAB, dtype=jnp.int32)

    logits = decoder_forward(params, image_features, text_tokens, NUM_HEADS)
    logits = jax.block_until_ready(logits)
    assert logits.shape == (B, T, VOCAB)
    assert bool(jnp.all(jnp.isfinite(logits)))
    print("KERNEL_OK")
</pallas_src>

<mosaic_0001>
module attributes {stable_mosaic.version = 11 : i64} {
  func.func @decoder_block_kernel(%arg0: i32, %arg1: memref<16x32xf32, #tpu.memory_space<vmem>>, %arg2: memref<8x32xf32, #tpu.memory_space<vmem>>, %arg3: memref<1x32xf32, #tpu.memory_space<vmem>>, %arg4: memref<1x32xf32, #tpu.memory_space<vmem>>, %arg5: memref<4x32x8xbf16, #tpu.memory_space<vmem>>, %arg6: memref<4x1x8xf32, #tpu.memory_space<vmem>>, %arg7: memref<4x32x8xbf16, #tpu.memory_space<vmem>>, %arg8: memref<4x1x8xf32, #tpu.memory_space<vmem>>, %arg9: memref<4x32x8xbf16, #tpu.memory_space<vmem>>, %arg10: memref<4x1x8xf32, #tpu.memory_space<vmem>>, %arg11: memref<4x8x32xbf16, #tpu.memory_space<vmem>>, %arg12: memref<1x32xf32, #tpu.memory_space<vmem>>, %arg13: memref<1x32xf32, #tpu.memory_space<vmem>>, %arg14: memref<1x32xf32, #tpu.memory_space<vmem>>, %arg15: memref<4x32x8xbf16, #tpu.memory_space<vmem>>, %arg16: memref<4x1x8xf32, #tpu.memory_space<vmem>>, %arg17: memref<4x32x8xbf16, #tpu.memory_space<vmem>>, %arg18: memref<4x1x8xf32, #tpu.memory_space<vmem>>, %arg19: memref<4x32x8xbf16, #tpu.memory_space<vmem>>, %arg20: memref<4x1x8xf32, #tpu.memory_space<vmem>>, %arg21: memref<4x8x32xbf16, #tpu.memory_space<vmem>>, %arg22: memref<1x32xf32, #tpu.memory_space<vmem>>, %arg23: memref<1x32xf32, #tpu.memory_space<vmem>>, %arg24: memref<1x32xf32, #tpu.memory_space<vmem>>, %arg25: memref<32x128xbf16, #tpu.memory_space<vmem>>, %arg26: memref<1x128xf32, #tpu.memory_space<vmem>>, %arg27: memref<128x32xbf16, #tpu.memory_space<vmem>>, %arg28: memref<1x32xf32, #tpu.memory_space<vmem>>, %arg29: memref<16x32xf32, #tpu.memory_space<vmem>>) attributes {dimension_semantics = [#tpu.dimension_semantics<parallel>], iteration_bounds = array<i64: 1>, scalar_prefetch = 0 : i64, scratch_operands = 0 : i64, tpu.core_type = #tpu.core_type<tc>, window_params = [{transform_indices = @transform_0, window_bounds = array<i64: 16, 32>}, {transform_indices = @transform_1, window_bounds = array<i64: 8, 32>}, {pipeline_mode = #tpu.pipeline_mode<synchronous>, transform_indices = @transform_2, window_bounds = array<i64: 1, 32>}, {pipeline_mode = #tpu.pipeline_mode<synchronous>, transform_indices = @transform_3, window_bounds = array<i64: 1, 32>}, {pipeline_mode = #tpu.pipeline_mode<synchronous>, transform_indices = @transform_4, window_bounds = array<i64: 4, 32, 8>}, {pipeline_mode = #tpu.pipeline_mode<synchronous>, transform_indices = @transform_5, window_bounds = array<i64: 4, 1, 8>}, {pipeline_mode = #tpu.pipeline_mode<synchronous>, transform_indices = @transform_6, window_bounds = array<i64: 4, 32, 8>}, {pipeline_mode = #tpu.pipeline_mode<synchronous>, transform_indices = @transform_7, window_bounds = array<i64: 4, 1, 8>}, {pipeline_mode = #tpu.pipeline_mode<synchronous>, transform_indices = @transform_8, window_bounds = array<i64: 4, 32, 8>}, {pipeline_mode = #tpu.pipeline_mode<synchronous>, transform_indices = @transform_9, window_bounds = array<i64: 4, 1, 8>}, {pipeline_mode = #tpu.pipeline_mode<synchronous>, transform_indices = @transform_10, window_bounds = array<i64: 4, 8, 32>}, {pipeline_mode = #tpu.pipeline_mode<synchronous>, transform_indices = @transform_11, window_bounds = array<i64: 1, 32>}, {pipeline_mode = #tpu.pipeline_mode<synchronous>, transform_indices = @transform_12, window_bounds = array<i64: 1, 32>}, {pipeline_mode = #tpu.pipeline_mode<synchronous>, transform_indices = @transform_13, window_bounds = array<i64: 1, 32>}, {pipeline_mode = #tpu.pipeline_mode<synchronous>, transform_indices = @transform_14, window_bounds = array<i64: 4, 32, 8>}, {pipeline_mode = #tpu.pipeline_mode<synchronous>, transform_indices = @transform_15, window_bounds = array<i64: 4, 1, 8>}, {pipeline_mode = #tpu.pipeline_mode<synchronous>, transform_indices = @transform_16, window_bounds = array<i64: 4, 32, 8>}, {pipeline_mode = #tpu.pipeline_mode<synchronous>, transform_indices = @transform_17, window_bounds = array<i64: 4, 1, 8>}, {pipeline_mode = #tpu.pipeline_mode<synchronous>, transform_indices = @transform_18, window_bounds = array<i64: 4, 32, 8>}, {pipeline_mode = #tpu.pipeline_mode<synchronous>, transform_indices = @transform_19, window_bounds = array<i64: 4, 1, 8>}, {pipeline_mode = #tpu.pipeline_mode<synchronous>, transform_indices = @transform_20, window_bounds = array<i64: 4, 8, 32>}, {pipeline_mode = #tpu.pipeline_mode<synchronous>, transform_indices = @transform_21, window_bounds = array<i64: 1, 32>}, {pipeline_mode = #tpu.pipeline_mode<synchronous>, transform_indices = @transform_22, window_bounds = array<i64: 1, 32>}, {pipeline_mode = #tpu.pipeline_mode<synchronous>, transform_indices = @transform_23, window_bounds = array<i64: 1, 32>}, {pipeline_mode = #tpu.pipeline_mode<synchronous>, transform_indices = @transform_24, window_bounds = array<i64: 32, 128>}, {pipeline_mode = #tpu.pipeline_mode<synchronous>, transform_indices = @transform_25, window_bounds = array<i64: 1, 128>}, {pipeline_mode = #tpu.pipeline_mode<synchronous>, transform_indices = @transform_26, window_bounds = array<i64: 128, 32>}, {pipeline_mode = #tpu.pipeline_mode<synchronous>, transform_indices = @transform_27, window_bounds = array<i64: 1, 32>}, {transform_indices = @transform_28, window_bounds = array<i64: 16, 32>}]} {
    %c0 = arith.constant 0 : index
    %c0_0 = arith.constant 0 : index
    %0 = vector.load %arg1[%c0, %c0_0] : memref<16x32xf32, #tpu.memory_space<vmem>>, vector<16x32xf32>
    %cst = arith.constant 1.000000e-01 : f32
    %1 = vector.broadcast %cst : f32 to vector<16x32xf32>
    %2 = arith.mulf %0, %1 : vector<16x32xf32>
    %c0_1 = arith.constant 0 : index
    %c0_2 = arith.constant 0 : index
    %3 = vector.load %arg2[%c0_1, %c0_2] : memref<8x32xf32, #tpu.memory_space<vmem>>, vector<8x32xf32>
    %cst_3 = arith.constant 1.000000e-01 : f32
    %4 = vector.broadcast %cst_3 : f32 to vector<8x32xf32>
    %5 = arith.mulf %3, %4 : vector<8x32xf32>
    %6 = arith.truncf %5 : vector<8x32xf32> to vector<8x32xbf16>
    %c0_4 = arith.constant 0 : index
    %c0_5 = arith.constant 0 : index
    %7 = vector.load %arg3[%c0_4, %c0_5] : memref<1x32xf32, #tpu.memory_space<vmem>>, vector<1x32xf32>
    %c0_6 = arith.constant 0 : index
    %c0_7 = arith.constant 0 : index
    %8 = vector.load %arg4[%c0_6, %c0_7] : memref<1x32xf32, #tpu.memory_space<vmem>>, vector<1x32xf32>
    %cst_8 = arith.constant dense<0.000000e+00> : vector<16xf32>
    %9 = vector.multi_reduction <add>, %2, %cst_8 [1] : vector<16x32xf32> to vector<16xf32>
    %10 = vector.shape_cast %9 : vector<16xf32> to vector<16x1xf32>
    %cst_9 = arith.constant 3.200000e+01 : f32
    %11 = vector.broadcast %cst_9 : f32 to vector<16x1xf32>
    %12 = arith.divf %10, %11 : vector<16x1xf32>
    %13 = vector.broadcast %12 : vector<16x1xf32> to vector<16x32xf32>
    %14 = arith.subf %2, %13 : vector<16x32xf32>
    %15 = arith.mulf %14, %14 : vector<16x32xf32>
    %cst_10 = arith.constant dense<0.000000e+00> : vector<16xf32>
    %16 = vector.multi_reduction <add>, %15, %cst_10 [1] : vector<16x32xf32> to vector<16xf32>
    %17 = vector.shape_cast %16 : vector<16xf32> to vector<16x1xf32>
    %cst_11 = arith.constant 3.200000e+01 : f32
    %18 = vector.broadcast %cst_11 : f32 to vector<16x1xf32>
    %19 = arith.divf %17, %18 : vector<16x1xf32>
    %20 = vector.broadcast %12 : vector<16x1xf32> to vector<16x32xf32>
    %21 = arith.subf %2, %20 : vector<16x32xf32>
    %cst_12 = arith.constant 9.99999974E-6 : f32
    %22 = vector.broadcast %cst_12 : f32 to vector<16x1xf32>
    %23 = arith.addf %19, %22 : vector<16x1xf32>
    %24 = math.rsqrt %23 : vector<16x1xf32>
    %25 = vector.broadcast %24 : vector<16x1xf32> to vector<16x32xf32>
    %26 = arith.mulf %21, %25 : vector<16x32xf32>
    %27 = vector.broadcast %7 : vector<1x32xf32> to vector<16x32xf32>
    %28 = arith.mulf %26, %27 : vector<16x32xf32>
    %29 = vector.broadcast %8 : vector<1x32xf32> to vector<16x32xf32>
    %30 = arith.addf %28, %29 : vector<16x32xf32>
    %31 = arith.truncf %30 : vector<16x32xf32> to vector<16x32xbf16>
    %c0_13 = arith.constant 0 : index
    %c0_14 = arith.constant 0 : index
    %c0_15 = arith.constant 0 : index
    %32 = vector.load %arg5[%c0_13, %c0_14, %c0_15] : memref<4x32x8xbf16, #tpu.memory_space<vmem>>, vector<1x32x8xbf16>
    %33 = vector.shape_cast %32 : vector<1x32x8xbf16> to vector<32x8xbf16>
    %cst_16 = arith.constant dense<0.000000e+00> : vector<16x8xf32>
    %34 = tpu.matmul %31, %33, %cst_16 {dimension_numbers = #tpu.dot_dimension_numbers<[1], [0], [0], [1], [0, 0, 1, 1], [], []>} : vector<16x32xbf16>, vector<32x8xbf16>, vector<16x8xf32> -> vector<16x8xf32>
    %c0_17 = arith.constant 0 : index
    %c0_18 = arith.constant 0 : index
    %c0_19 = arith.constant 0 : index
    %35 = vector.load %arg6[%c0_17, %c0_18, %c0_19] : memref<4x1x8xf32, #tpu.memory_space<vmem>>, vector<1x1x8xf32>
    %36 = vector.shape_cast %35 : vector<1x1x8xf32> to vector<1x8xf32>
    %37 = vector.broadcast %36 : vector<1x8xf32> to vector<16x8xf32>
    %38 = arith.addf %34, %37 : vector<16x8xf32>
    %cst_20 = arith.constant 0.353553385 : f32
    %39 = vector.broadcast %cst_20 : f32 to vector<16x8xf32>
    %40 = arith.mulf %38, %39 : vector<16x8xf32>
    %c0_21 = arith.constant 0 : index
    %c0_22 = arith.constant 0 : index
    %c0_23 = arith.constant 0 : index
    %41 = vector.load %arg7[%c0_21, %c0_22, %c0_23] : memref<4x32x8xbf16, #tpu.memory_space<vmem>>, vector<1x32x8xbf16>
    %42 = vector.shape_cast %41 : vector<1x32x8xbf16> to vector<32x8xbf16>
    %cst_24 = arith.constant dense<0.000000e+00> : vector<16x8xf32>
    %43 = tpu.matmul %31, %42, %cst_24 {dimension_numbers = #tpu.dot_dimension_numbers<[1], [0], [0], [1], [0, 0, 1, 1], [], []>} : vector<16x32xbf16>, vector<32x8xbf16>, vector<16x8xf32> -> vector<16x8xf32>
    %c0_25 = arith.constant 0 : index
    %c0_26 = arith.constant 0 : index
    %c0_27 = arith.constant 0 : index
    %44 = vector.load %arg8[%c0_25, %c0_26, %c0_27] : memref<4x1x8xf32, #tpu.memory_space<vmem>>, vector<1x1x8xf32>
    %45 = vector.shape_cast %44 : vector<1x1x8xf32> to vector<1x8xf32>
    %46 = vector.broadcast %45 : vector<1x8xf32> to vector<16x8xf32>
    %47 = arith.addf %43, %46 : vector<16x8xf32>
    %c0_28 = arith.constant 0 : index
    %c0_29 = arith.constant 0 : index
    %c0_30 = arith.constant 0 : index
    %48 = vector.load %arg9[%c0_28, %c0_29, %c0_30] : memref<4x32x8xbf16, #tpu.memory_space<vmem>>, vector<1x32x8xbf16>
    %49 = vector.shape_cast %48 : vector<1x32x8xbf16> to vector<32x8xbf16>
    %cst_31 = arith.constant dense<0.000000e+00> : vector<16x8xf32>
    %50 = tpu.matmul %31, %49, %cst_31 {dimension_numbers = #tpu.dot_dimension_numbers<[1], [0], [0], [1], [0, 0, 1, 1], [], []>} : vector<16x32xbf16>, vector<32x8xbf16>, vector<16x8xf32> -> vector<16x8xf32>
    %c0_32 = arith.constant 0 : index
    %c0_33 = arith.constant 0 : index
    %c0_34 = arith.constant 0 : index
    %51 = vector.load %arg10[%c0_32, %c0_33, %c0_34] : memref<4x1x8xf32, #tpu.memory_space<vmem>>, vector<1x1x8xf32>
    %52 = vector.shape_cast %51 : vector<1x1x8xf32> to vector<1x8xf32>
    %53 = vector.broadcast %52 : vector<1x8xf32> to vector<16x8xf32>
    %54 = arith.addf %50, %53 : vector<16x8xf32>
    %55 = vector.extract_strided_slice %40 {offsets = [0, 0], sizes = [8, 8], strides = [1, 1]} : vector<16x8xf32> to vector<8x8xf32>
    %56 = vector.extract_strided_slice %47 {offsets = [0, 0], sizes = [8, 8], strides = [1, 1]} : vector<16x8xf32> to vector<8x8xf32>
    %57 = vector.extract_strided_slice %54 {offsets = [0, 0], sizes = [8, 8], strides = [1, 1]} : vector<16x8xf32> to vector<8x8xf32>
    %58 = vector.extract_strided_slice %40 {offsets = [8, 0], sizes = [8, 8], strides = [1, 1]} : vector<16x8xf32> to vector<8x8xf32>
    %59 = vector.extract_strided_slice %47 {offsets = [8, 0], sizes = [8, 8], strides = [1, 1]} : vector<16x8xf32> to vector<8x8xf32>
    %60 = vector.extract_strided_slice %54 {offsets = [8, 0], sizes = [8, 8], strides = [1, 1]} : vector<16x8xf32> to vector<8x8xf32>
    %c1 = arith.constant 1 : index
    %c0_35 = arith.constant 0 : index
    %c0_36 = arith.constant 0 : index
    %61 = vector.load %arg5[%c1, %c0_35, %c0_36] : memref<4x32x8xbf16, #tpu.memory_space<vmem>>, vector<1x32x8xbf16>
    %62 = vector.shape_cast %61 : vector<1x32x8xbf16> to vector<32x8xbf16>
    %cst_37 = arith.constant dense<0.000000e+00> : vector<16x8xf32>
    %63 = tpu.matmul %31, %62, %cst_37 {dimension_numbers = #tpu.dot_dimension_numbers<[1], [0], [0], [1], [0, 0, 1, 1], [], []>} : vector<16x32xbf16>, vector<32x8xbf16>, vector<16x8xf32> -> vector<16x8xf32>
    %c1_38 = arith.constant 1 : index
    %c0_39 = arith.constant 0 : index
    %c0_40 = arith.constant 0 : index
    %64 = vector.load %arg6[%c1_38, %c0_39, %c0_40] : memref<4x1x8xf32, #tpu.memory_space<vmem>>, vector<1x1x8xf32>
    %65 = vector.shape_cast %64 : vector<1x1x8xf32> to vector<1x8xf32>
    %66 = vector.broadcast %65 : vector<1x8xf32> to vector<16x8xf32>
    %67 = arith.addf %63, %66 : vector<16x8xf32>
    %cst_41 = arith.constant 0.353553385 : f32
    %68 = vector.broadcast %cst_41 : f32 to vector<16x8xf32>
    %69 = arith.mulf %67, %68 : vector<16x8xf32>
    %c1_42 = arith.constant 1 : index
    %c0_43 = arith.constant 0 : index
    %c0_44 = arith.constant 0 : index
    %70 = vector.load %arg7[%c1_42, %c0_43, %c0_44] : memref<4x32x8xbf16, #tpu.memory_space<vmem>>, vector<1x32x8xbf16>
    %71 = vector.shape_cast %70 : vector<1x32x8xbf16> to vector<32x8xbf16>
    %cst_45 = arith.constant dense<0.000000e+00> : vector<16x8xf32>
    %72 = tpu.matmul %31, %71, %cst_45 {dimension_numbers = #tpu.dot_dimension_numbers<[1], [0], [0], [1], [0, 0, 1, 1], [], []>} : vector<16x32xbf16>, vector<32x8xbf16>, vector<16x8xf32> -> vector<16x8xf32>
    %c1_46 = arith.constant 1 : index
    %c0_47 = arith.constant 0 : index
    %c0_48 = arith.constant 0 : index
    %73 = vector.load %arg8[%c1_46, %c0_47, %c0_48] : memref<4x1x8xf32, #tpu.memory_space<vmem>>, vector<1x1x8xf32>
    %74 = vector.shape_cast %73 : vector<1x1x8xf32> to vector<1x8xf32>
    %75 = vector.broadcast %74 : vector<1x8xf32> to vector<16x8xf32>
    %76 = arith.addf %72, %75 : vector<16x8xf32>
    %c1_49 = arith.constant 1 : index
    %c0_50 = arith.constant 0 : index
    %c0_51 = arith.constant 0 : index
    %77 = vector.load %arg9[%c1_49, %c0_50, %c0_51] : memref<4x32x8xbf16, #tpu.memory_space<vmem>>, vector<1x32x8xbf16>
    %78 = vector.shape_cast %77 : vector<1x32x8xbf16> to vector<32x8xbf16>
    %cst_52 = arith.constant dense<0.000000e+00> : vector<16x8xf32>
    %79 = tpu.matmul %31, %78, %cst_52 {dimension_numbers = #tpu.dot_dimension_numbers<[1], [0], [0], [1], [0, 0, 1, 1], [], []>} : vector<16x32xbf16>, vector<32x8xbf16>, vector<16x8xf32> -> vector<16x8xf32>
    %c1_53 = arith.constant 1 : index
    %c0_54 = arith.constant 0 : index
    %c0_55 = arith.constant 0 : index
    %80 = vector.load %arg10[%c1_53, %c0_54, %c0_55] : memref<4x1x8xf32, #tpu.memory_space<vmem>>, vector<1x1x8xf32>
    %81 = vector.shape_cast %80 : vector<1x1x8xf32> to vector<1x8xf32>
    %82 = vector.broadcast %81 : vector<1x8xf32> to vector<16x8xf32>
    %83 = arith.addf %79, %82 : vector<16x8xf32>
    %84 = vector.extract_strided_slice %69 {offsets = [0, 0], sizes = [8, 8], strides = [1, 1]} : vector<16x8xf32> to vector<8x8xf32>
    %85 = vector.extract_strided_slice %76 {offsets = [0, 0], sizes = [8, 8], strides = [1, 1]} : vector<16x8xf32> to vector<8x8xf32>
    %86 = vector.extract_strided_slice %83 {offsets = [0, 0], sizes = [8, 8], strides = [1, 1]} : vector<16x8xf32> to vector<8x8xf32>
    %87 = vector.extract_strided_slice %69 {offsets = [8, 0], sizes = [8, 8], strides = [1, 1]} : vector<16x8xf32> to vector<8x8xf32>
    %88 = vector.extract_strided_slice %76 {offsets = [8, 0], sizes = [8, 8], strides = [1, 1]} : vector<16x8xf32> to vector<8x8xf32>
    %89 = vector.extract_strided_slice %83 {offsets = [8, 0], sizes = [8, 8], strides = [1, 1]} : vector<16x8xf32> to vector<8x8xf32>
    %c2 = arith.constant 2 : index
    %c0_56 = arith.constant 0 : index
    %c0_57 = arith.constant 0 : index
    %90 = vector.load %arg5[%c2, %c0_56, %c0_57] : memref<4x32x8xbf16, #tpu.memory_space<vmem>>, vector<1x32x8xbf16>
    %91 = vector.shape_cast %90 : vector<1x32x8xbf16> to vector<32x8xbf16>
    %cst_58 = arith.constant dense<0.000000e+00> : vector<16x8xf32>
    %92 = tpu.matmul %31, %91, %cst_58 {dimension_numbers = #tpu.dot_dimension_numbers<[1], [0], [0], [1], [0, 0, 1, 1], [], []>} : vector<16x32xbf16>, vector<32x8xbf16>, vector<16x8xf32> -> vector<16x8xf32>
    %c2_59 = arith.constant 2 : index
    %c0_60 = arith.constant 0 : index
    %c0_61 = arith.constant 0 : index
    %93 = vector.load %arg6[%c2_59, %c0_60, %c0_61] : memref<4x1x8xf32, #tpu.memory_space<vmem>>, vector<1x1x8xf32>
    %94 = vector.shape_cast %93 : vector<1x1x8xf32> to vector<1x8xf32>
    %95 = vector.broadcast %94 : vector<1x8xf32> to vector<16x8xf32>
    %96 = arith.addf %92, %95 : vector<16x8xf32>
    %cst_62 = arith.constant 0.353553385 : f32
    %97 = vector.broadcast %cst_62 : f32 to vector<16x8xf32>
    %98 = arith.mulf %96, %97 : vector<16x8xf32>
    %c2_63 = arith.constant 2 : index
    %c0_64 = arith.constant 0 : index
    %c0_65 = arith.constant 0 : index
    %99 = vector.load %arg7[%c2_63, %c0_64, %c0_65] : memref<4x32x8xbf16, #tpu.memory_space<vmem>>, vector<1x32x8xbf16>
    %100 = vector.shape_cast %99 : vector<1x32x8xbf16> to vector<32x8xbf16>
    %cst_66 = arith.constant dense<0.000000e+00> : vector<16x8xf32>
    %101 = tpu.matmul %31, %100, %cst_66 {dimension_numbers = #tpu.dot_dimension_numbers<[1], [0], [0], [1], [0, 0, 1, 1], [], []>} : vector<16x32xbf16>, vector<32x8xbf16>, vector<16x8xf32> -> vector<16x8xf32>
    %c2_67 = arith.constant 2 : index
    %c0_68 = arith.constant 0 : index
    %c0_69 = arith.constant 0 : index
    %102 = vector.load %arg8[%c2_67, %c0_68, %c0_69] : memref<4x1x8xf32, #tpu.memory_space<vmem>>, vector<1x1x8xf32>
    %103 = vector.shape_cast %102 : vector<1x1x8xf32> to vector<1x8xf32>
    %104 = vector.broadcast %103 : vector<1x8xf32> to vector<16x8xf32>
    %105 = arith.addf %101, %104 : vector<16x8xf32>
    %c2_70 = arith.constant 2 : index
    %c0_71 = arith.constant 0 : index
    %c0_72 = arith.constant 0 : index
    %106 = vector.load %arg9[%c2_70, %c0_71, %c0_72] : memref<4x32x8xbf16, #tpu.memory_space<vmem>>, vector<1x32x8xbf16>
    %107 = vector.shape_cast %106 : vector<1x32x8xbf16> to vector<32x8xbf16>
    %cst_73 = arith.constant dense<0.000000e+00> : vector<16x8xf32>
    %108 = tpu.matmul %31, %107, %cst_73 {dimension_numbers = #tpu.dot_dimension_numbers<[1], [0], [0], [1], [0, 0, 1, 1], [], []>} : vector<16x32xbf16>, vector<32x8xbf16>, vector<16x8xf32> -> vector<16x8xf32>
    %c2_74 = arith.constant 2 : index
    %c0_75 = arith.constant 0 : index
    %c0_76 = arith.constant 0 : index
    %109 = vector.load %arg10[%c2_74, %c0_75, %c0_76] : memref<4x1x8xf32, #tpu.memory_space<vmem>>, vector<1x1x8xf32>
    %110 = vector.shape_cast %109 : vector<1x1x8xf32> to vector<1x8xf32>
    %111 = vector.broadcast %110 : vector<1x8xf32> to vector<16x8xf32>
    %112 = arith.addf %108, %111 : vector<16x8xf32>
    %113 = vector.extract_strided_slice %98 {offsets = [0, 0], sizes = [8, 8], strides = [1, 1]} : vector<16x8xf32> to vector<8x8xf32>
    %114 = vector.extract_strided_slice %105 {offsets = [0, 0], sizes = [8, 8], strides = [1, 1]} : vector<16x8xf32> to vector<8x8xf32>
    %115 = vector.extract_strided_slice %112 {offsets = [0, 0], sizes = [8, 8], strides = [1, 1]} : vector<16x8xf32> to vector<8x8xf32>
    %116 = vector.extract_strided_slice %98 {offsets = [8, 0], sizes = [8, 8], strides = [1, 1]} : vector<16x8xf32> to vector<8x8xf32>
    %117 = vector.extract_strided_slice %105 {offsets = [8, 0], sizes = [8, 8], strides = [1, 1]} : vector<16x8xf32> to vector<8x8xf32>
    %118 = vector.extract_strided_slice %112 {offsets = [8, 0], sizes = [8, 8], strides = [1, 1]} : vector<16x8xf32> to vector<8x8xf32>
    %c3 = arith.constant 3 : index
    %c0_77 = arith.constant 0 : index
    %c0_78 = arith.constant 0 : index
    %119 = vector.load %arg5[%c3, %c0_77, %c0_78] : memref<4x32x8xbf16, #tpu.memory_space<vmem>>, vector<1x32x8xbf16>
    %120 = vector.shape_cast %119 : vector<1x32x8xbf16> to vector<32x8xbf16>
    %cst_79 = arith.constant dense<0.000000e+00> : vector<16x8xf32>
    %121 = tpu.matmul %31, %120, %cst_79 {dimension_numbers = #tpu.dot_dimension_numbers<[1], [0], [0], [1], [0, 0, 1, 1], [], []>} : vector<16x32xbf16>, vector<32x8xbf16>, vector<16x8xf32> -> vector<16x8xf32>
    %c3_80 = arith.constant 3 : index
    %c0_81 = arith.constant 0 : index
    %c0_82 = arith.constant 0 : index
    %122 = vector.load %arg6[%c3_80, %c0_81, %c0_82] : memref<4x1x8xf32, #tpu.memory_space<vmem>>, vector<1x1x8xf32>
    %123 = vector.shape_cast %122 : vector<1x1x8xf32> to vector<1x8xf32>
    %124 = vector.broadcast %123 : vector<1x8xf32> to vector<16x8xf32>
    %125 = arith.addf %121, %124 : vector<16x8xf32>
    %cst_83 = arith.constant 0.353553385 : f32
    %126 = vector.broadcast %cst_83 : f32 to vector<16x8xf32>
    %127 = arith.mulf %125, %126 : vector<16x8xf32>
    %c3_84 = arith.constant 3 : index
    %c0_85 = arith.constant 0 : index
    %c0_86 = arith.constant 0 : index
    %128 = vector.load %arg7[%c3_84, %c0_85, %c0_86] : memref<4x32x8xbf16, #tpu.memory_space<vmem>>, vector<1x32x8xbf16>
    %129 = vector.shape_cast %128 : vector<1x32x8xbf16> to vector<32x8xbf16>
    %cst_87 = arith.constant dense<0.000000e+00> : vector<16x8xf32>
    %130 = tpu.matmul %31, %129, %cst_87 {dimension_numbers = #tpu.dot_dimension_numbers<[1], [0], [0], [1], [0, 0, 1, 1], [], []>} : vector<16x32xbf16>, vector<32x8xbf16>, vector<16x8xf32> -> vector<16x8xf32>
    %c3_88 = arith.constant 3 : index
    %c0_89 = arith.constant 0 : index
    %c0_90 = arith.constant 0 : index
    %131 = vector.load %arg8[%c3_88, %c0_89, %c0_90] : memref<4x1x8xf32, #tpu.memory_space<vmem>>, vector<1x1x8xf32>
    %132 = vector.shape_cast %131 : vector<1x1x8xf32> to vector<1x8xf32>
    %133 = vector.broadcast %132 : vector<1x8xf32> to vector<16x8xf32>
    %134 = arith.addf %130, %133 : vector<16x8xf32>
    %c3_91 = arith.constant 3 : index
    %c0_92 = arith.constant 0 : index
    %c0_93 = arith.constant 0 : index
    %135 = vector.load %arg9[%c3_91, %c0_92, %c0_93] : memref<4x32x8xbf16, #tpu.memory_space<vmem>>, vector<1x32x8xbf16>
    %136 = vector.shape_cast %135 : vector<1x32x8xbf16> to vector<32x8xbf16>
    %cst_94 = arith.constant dense<0.000000e+00> : vector<16x8xf32>
    %137 = tpu.matmul %31, %136, %cst_94 {dimension_numbers = #tpu.dot_dimension_numbers<[1], [0], [0], [1], [0, 0, 1, 1], [], []>} : vector<16x32xbf16>, vector<32x8xbf16>, vector<16x8xf32> -> vector<16x8xf32>
    %c3_95 = arith.constant 3 : index
    %c0_96 = arith.constant 0 : index
    %c0_97 = arith.constant 0 : index
    %138 = vector.load %arg10[%c3_95, %c0_96, %c0_97] : memref<4x1x8xf32, #tpu.memory_space<vmem>>, vector<1x1x8xf32>
    %139 = vector.shape_cast %138 : vector<1x1x8xf32> to vector<1x8xf32>
    %140 = vector.broadcast %139 : vector<1x8xf32> to vector<16x8xf32>
    %141 = arith.addf %137, %140 : vector<16x8xf32>
    %142 = vector.extract_strided_slice %127 {offsets = [0, 0], sizes = [8, 8], strides = [1, 1]} : vector<16x8xf32> to vector<8x8xf32>
    %143 = vector.extract_strided_slice %134 {offsets = [0, 0], sizes = [8, 8], strides = [1, 1]} : vector<16x8xf32> to vector<8x8xf32>
    %144 = vector.extract_strided_slice %141 {offsets = [0, 0], sizes = [8, 8], strides = [1, 1]} : vector<16x8xf32> to vector<8x8xf32>
    %145 = vector.extract_strided_slice %127 {offsets = [8, 0], sizes = [8, 8], strides = [1, 1]} : vector<16x8xf32> to vector<8x8xf32>
    %146 = vector.extract_strided_slice %134 {offsets = [8, 0], sizes = [8, 8], strides = [1, 1]} : vector<16x8xf32> to vector<8x8xf32>
    %147 = vector.extract_strided_slice %141 {offsets = [8, 0], sizes = [8, 8], strides = [1, 1]} : vector<16x8xf32> to vector<8x8xf32>
    %148 = vector.shape_cast %55 : vector<8x8xf32> to vector<1x8x8xf32>
    %149 = vector.shape_cast %58 : vector<8x8xf32> to vector<1x8x8xf32>
    %150 = vector.shape_cast %84 : vector<8x8xf32> to vector<1x8x8xf32>
    %151 = vector.shape_cast %87 : vector<8x8xf32> to vector<1x8x8xf32>
    %152 = vector.shape_cast %113 : vector<8x8xf32> to vector<1x8x8xf32>
    %153 = vector.shape_cast %116 : vector<8x8xf32> to vector<1x8x8xf32>
    %154 = vector.shape_cast %142 : vector<8x8xf32> to vector<1x8x8xf32>
    %155 = vector.shape_cast %145 : vector<8x8xf32> to vector<1x8x8xf32>
    %156 = tpu.concatenate %148, %149, %150, %151, %152, %153, %154, %155 in 0 : vector<1x8x8xf32>, vector<1x8x8xf32>, vector<1x8x8xf32>, vector<1x8x8xf32>, vector<1x8x8xf32>, vector<1x8x8xf32>, vector<1x8x8xf32>, vector<1x8x8xf32> -> vector<8x8x8xf32>
    %157 = arith.truncf %156 : vector<8x8x8xf32> to vector<8x8x8xbf16>
    %158 = vector.shape_cast %56 : vector<8x8xf32> to vector<1x8x8xf32>
    %159 = vector.shape_cast %59 : vector<8x8xf32> to vector<1x8x8xf32>
    %160 = vector.shape_cast %85 : vector<8x8xf32> to vector<1x8x8xf32>
    %161 = vector.shape_cast %88 : vector<8x8xf32> to vector<1x8x8xf32>
    %162 = vector.shape_cast %114 : vector<8x8xf32> to vector<1x8x8xf32>
    %163 = vector.shape_cast %117 : vector<8x8xf32> to vector<1x8x8xf32>
    %164 = vector.shape_cast %143 : vector<8x8xf32> to vector<1x8x8xf32>
    %165 = vector.shape_cast %146 : vector<8x8xf32> to vector<1x8x8xf32>
    %166 = tpu.concatenate %158, %159, %160, %161, %162, %163, %164, %165 in 0 : vector<1x8x8xf32>, vector<1x8x8xf32>, vector<1x8x8xf32>, vector<1x8x8xf32>, vector<1x8x8xf32>, vector<1x8x8xf32>, vector<1x8x8xf32>, vector<1x8x8xf32> -> vector<8x8x8xf32>
    %167 = arith.truncf %166 : vector<8x8x8xf32> to vector<8x8x8xbf16>
    %168 = vector.shape_cast %57 : vector<8x8xf32> to vector<1x8x8xf32>
    %169 = vector.shape_cast %60 : vector<8x8xf32> to vector<1x8x8xf32>
    %170 = vector.shape_cast %86 : vector<8x8xf32> to vector<1x8x8xf32>
    %171 = vector.shape_cast %89 : vector<8x8xf32> to vector<1x8x8xf32>
    %172 = vector.shape_cast %115 : vector<8x8xf32> to vector<1x8x8xf32>
    %173 = vector.shape_cast %118 : vector<8x8xf32> to vector<1x8x8xf32>
    %174 = vector.shape_cast %144 : vector<8x8xf32> to vector<1x8x8xf32>
    %175 = vector.shape_cast %147 : vector<8x8xf32> to vector<1x8x8xf32>
    %176 = tpu.concatenate %168, %169, %170, %171, %172, %173, %174, %175 in 0 : vector<1x8x8xf32>, vector<1x8x8xf32>, vector<1x8x8xf32>, vector<1x8x8xf32>, vector<1x8x8xf32>, vector<1x8x8xf32>, vector<1x8x8xf32>, vector<1x8x8xf32> -> vector<8x8x8xf32>
    %177 = arith.truncf %176 : vector<8x8x8xf32> to vector<8x8x8xbf16>
    "tpu.trace_start"() <{level = 10 : i32, message = "bqd,bkd->bqk"}> : () -> ()
    %cst_98 = arith.constant dense<0.000000e+00> : vector<8x8x8xf32>
    %178 = tpu.matmul %157, %167, %cst_98 {dimension_numbers = #tpu.dot_dimension_numbers<[2], [2], [1], [1], [0, 0, 0, 1, 1, 1], [0], [0]>} : vector<8x8x8xbf16>, vector<8x8x8xbf16>, vector<8x8x8xf32> -> vector<8x8x8xf32>
    "tpu.trace_stop"() : () -> ()
    %cst_99 = arith.constant dense<0xFF800000> : vector<8x8xf32>
    %179 = vector.multi_reduction <maximumf>, %178, %cst_99 [2] : vector<8x8x8xf32> to vector<8x8xf32>
    %180 = vector.shape_cast %179 : vector<8x8xf32> to vector<8x8x1xf32>
    %181 = vector.broadcast %180 : vector<8x8x1xf32> to vector<8x8x8xf32>
    %182 = arith.subf %178, %181 : vector<8x8x8xf32>
    %183 = math.exp %182 : vector<8x8x8xf32>
    %cst_100 = arith.constant dense<0.000000e+00> : vector<8x8xf32>
    %184 = vector.multi_reduction <add>, %183, %cst_100 [2] : vector<8x8x8xf32> to vector<8x8xf32>
    %185 = vector.shape_cast %184 : vector<8x8xf32> to vector<8x8x1xf32>
    %186 = tpu.reciprocal %185 {approx = true} : vector<8x8x1xf32> -> vector<8x8x1xf32>
    %187 = vector.broadcast %186 : vector<8x8x1xf32> to vector<8x8x8xf32>
    %188 = arith.mulf %183, %187 : vector<8x8x8xf32>
    %189 = arith.truncf %188 : vector<8x8x8xf32> to vector<8x8x8xbf16>
    "tpu.trace_start"() <{level = 10 : i32, message = "bqk,bkd->bqd"}> : () -> ()
    %cst_101 = arith.constant dense<0.000000e+00> : vector<8x8x8xf32>
    %190 = tpu.matmul %189, %177, %cst_101 {dimension_numbers = #tpu.dot_dimension_numbers<[2], [1], [1], [2], [0, 0, 0, 1, 1, 2], [0], [0]>} : vector<8x8x8xbf16>, vector<8x8x8xbf16>, vector<8x8x8xf32> -> vector<8x8x8xf32>
    "tpu.trace_stop"() : () -> ()
    %191 = vector.extract_strided_slice %190 {offsets = [0, 0, 0], sizes = [1, 8, 8], strides = [1, 1, 1]} : vector<8x8x8xf32> to vector<1x8x8xf32>
    %192 = vector.shape_cast %191 : vector<1x8x8xf32> to vector<8x8xf32>
    %193 = vector.extract_strided_slice %190 {offsets = [1, 0, 0], sizes = [1, 8, 8], strides = [1, 1, 1]} : vector<8x8x8xf32> to vector<1x8x8xf32>
    %194 = vector.shape_cast %193 : vector<1x8x8xf32> to vector<8x8xf32>
    %195 = tpu.concatenate %192, %194 in 0 : vector<8x8xf32>, vector<8x8xf32> -> vector<16x8xf32>
    %196 = arith.truncf %195 : vector<16x8xf32> to vector<16x8xbf16>
    %c0_102 = arith.constant 0 : index
    %c0_103 = arith.constant 0 : index
    %c0_104 = arith.constant 0 : index
    %197 = vector.load %arg11[%c0_102, %c0_103, %c0_104] : memref<4x8x32xbf16, #tpu.memory_space<vmem>>, vector<1x8x32xbf16>
    %198 = vector.shape_cast %197 : vector<1x8x32xbf16> to vector<8x32xbf16>
    %cst_105 = arith.constant dense<0.000000e+00> : vector<16x32xf32>
    %199 = tpu.matmul %196, %198, %cst_105 {dimension_numbers = #tpu.dot_dimension_numbers<[1], [0], [0], [1], [0, 0, 1, 1], [], []>} : vector<16x8xbf16>, vector<8x32xbf16>, vector<16x32xf32> -> vector<16x32xf32>
    %200 = vector.extract_strided_slice %190 {offsets = [2, 0, 0], sizes = [1, 8, 8], strides = [1, 1, 1]} : vector<8x8x8xf32> to vector<1x8x8xf32>
    %201 = vector.shape_cast %200 : vector<1x8x8xf32> to vector<8x8xf32>
    %202 = vector.extract_strided_slice %190 {offsets = [3, 0, 0], sizes = [1, 8, 8], strides = [1, 1, 1]} : vector<8x8x8xf32> to vector<1x8x8xf32>
    %203 = vector.shape_cast %202 : vector<1x8x8xf32> to vector<8x8xf32>
    %204 = tpu.concatenate %201, %203 in 0 : vector<8x8xf32>, vector<8x8xf32> -> vector<16x8xf32>
    %205 = arith.truncf %204 : vector<16x8xf32> to vector<16x8xbf16>
    %c1_106 = arith.constant 1 : index
    %c0_107 = arith.constant 0 : index
    %c0_108 = arith.constant 0 : index
    %206 = vector.load %arg11[%c1_106, %c0_107, %c0_108] : memref<4x8x32xbf16, #tpu.memory_space<vmem>>, vector<1x8x32xbf16>
    %207 = vector.shape_cast %206 : vector<1x8x32xbf16> to vector<8x32xbf16>
    %cst_109 = arith.constant dense<0.000000e+00> : vector<16x32xf32>
    %208 = tpu.matmul %205, %207, %cst_109 {dimension_numbers = #tpu.dot_dimension_numbers<[1], [0], [0], [1], [0, 0, 1, 1], [], []>} : vector<16x8xbf16>, vector<8x32xbf16>, vector<16x32xf32> -> vector<16x32xf32>
    %209 = arith.addf %199, %208 : vector<16x32xf32>
    %210 = vector.extract_strided_slice %190 {offsets = [4, 0, 0], sizes = [1, 8, 8], strides = [1, 1, 1]} : vector<8x8x8xf32> to vector<1x8x8xf32>
    %211 = vector.shape_cast %210 : vector<1x8x8xf32> to vector<8x8xf32>
    %212 = vector.extract_strided_slice %190 {offsets = [5, 0, 0], sizes = [1, 8, 8], strides = [1, 1, 1]} : vector<8x8x8xf32> to vector<1x8x8xf32>
    %213 = vector.shape_cast %212 : vector<1x8x8xf32> to vector<8x8xf32>
    %214 = tpu.concatenate %211, %213 in 0 : vector<8x8xf32>, vector<8x8xf32> -> vector<16x8xf32>
    %215 = arith.truncf %214 : vector<16x8xf32> to vector<16x8xbf16>
    %c2_110 = arith.constant 2 : index
    %c0_111 = arith.constant 0 : index
    %c0_112 = arith.constant 0 : index
    %216 = vector.load %arg11[%c2_110, %c0_111, %c0_112] : memref<4x8x32xbf16, #tpu.memory_space<vmem>>, vector<1x8x32xbf16>
    %217 = vector.shape_cast %216 : vector<1x8x32xbf16> to vector<8x32xbf16>
    %cst_113 = arith.constant dense<0.000000e+00> : vector<16x32xf32>
    %218 = tpu.matmul %215, %217, %cst_113 {dimension_numbers = #tpu.dot_dimension_numbers<[1], [0], [0], [1], [0, 0, 1, 1], [], []>} : vector<16x8xbf16>, vector<8x32xbf16>, vector<16x32xf32> -> vector<16x32xf32>
    %219 = arith.addf %209, %218 : vector<16x32xf32>
    %220 = vector.extract_strided_slice %190 {offsets = [6, 0, 0], sizes = [1, 8, 8], strides = [1, 1, 1]} : vector<8x8x8xf32> to vector<1x8x8xf32>
    %221 = vector.shape_cast %220 : vector<1x8x8xf32> to vector<8x8xf32>
    %222 = vector.extract_strided_slice %190 {offsets = [7, 0, 0], sizes = [1, 8, 8], strides = [1, 1, 1]} : vector<8x8x8xf32> to vector<1x8x8xf32>
    %223 = vector.shape_cast %222 : vector<1x8x8xf32> to vector<8x8xf32>
    %224 = tpu.concatenate %221, %223 in 0 : vector<8x8xf32>, vector<8x8xf32> -> vector<16x8xf32>
    %225 = arith.truncf %224 : vector<16x8xf32> to vector<16x8xbf16>
    %c3_114 = arith.constant 3 : index
    %c0_115 = arith.constant 0 : index
    %c0_116 = arith.constant 0 : index
    %226 = vector.load %arg11[%c3_114, %c0_115, %c0_116] : memref<4x8x32xbf16, #tpu.memory_space<vmem>>, vector<1x8x32xbf16>
    %227 = vector.shape_cast %226 : vector<1x8x32xbf16> to vector<8x32xbf16>
    %cst_117 = arith.constant dense<0.000000e+00> : vector<16x32xf32>
    %228 = tpu.matmul %225, %227, %cst_117 {dimension_numbers = #tpu.dot_dimension_numbers<[1], [0], [0], [1], [0, 0, 1, 1], [], []>} : vector<16x8xbf16>, vector<8x32xbf16>, vector<16x32xf32> -> vector<16x32xf32>
    %229 = arith.addf %219, %228 : vector<16x32xf32>
    %c0_118 = arith.constant 0 : index
    %c0_119 = arith.constant 0 : index
    %230 = vector.load %arg12[%c0_118, %c0_119] : memref<1x32xf32, #tpu.memory_space<vmem>>, vector<1x32xf32>
    %231 = vector.broadcast %230 : vector<1x32xf32> to vector<16x32xf32>
    %232 = arith.addf %229, %231 : vector<16x32xf32>
    %233 = arith.addf %2, %232 : vector<16x32xf32>
    %c0_120 = arith.constant 0 : index
    %c0_121 = arith.constant 0 : index
    %234 = vector.load %arg13[%c0_120, %c0_121] : memref<1x32xf32, #tpu.memory_space<vmem>>, vector<1x32xf32>
    %c0_122 = arith.constant 0 : index
    %c0_123 = arith.constant 0 : index
    %235 = vector.load %arg14[%c0_122, %c0_123] : memref<1x32xf32, #tpu.memory_space<vmem>>, vector<1x32xf32>
    %cst_124 = arith.constant dense<0.000000e+00> : vector<16xf32>
    %236 = vector.multi_reduction <add>, %233, %cst_124 [1] : vector<16x32xf32> to vector<16xf32>
    %237 = vector.shape_cast %236 : vector<16xf32> to vector<16x1xf32>
    %cst_125 = arith.constant 3.200000e+01 : f32
    %238 = vector.broadcast %cst_125 : f32 to vector<16x1xf32>
    %239 = arith.divf %237, %238 : vector<16x1xf32>
    %240 = vector.broadcast %239 : vector<16x1xf32> to vector<16x32xf32>
    %241 = arith.subf %233, %240 : vector<16x32xf32>
    %242 = arith.mulf %241, %241 : vector<16x32xf32>
    %cst_126 = arith.constant dense<0.000000e+00> : vector<16xf32>
    %243 = vector.multi_reduction <add>, %242, %cst_126 [1] : vector<16x32xf32> to vector<16xf32>
    %244 = vector.shape_cast %243 : vector<16xf32> to vector<16x1xf32>
    %cst_127 = arith.constant 3.200000e+01 : f32
    %245 = vector.broadcast %cst_127 : f32 to vector<16x1xf32>
    %246 = arith.divf %244, %245 : vector<16x1xf32>
    %247 = vector.broadcast %239 : vector<16x1xf32> to vector<16x32xf32>
    %248 = arith.subf %233, %247 : vector<16x32xf32>
    %cst_128 = arith.constant 9.99999974E-6 : f32
    %249 = vector.broadcast %cst_128 : f32 to vector<16x1xf32>
    %250 = arith.addf %246, %249 : vector<16x1xf32>
    %251 = math.rsqrt %250 : vector<16x1xf32>
    %252 = vector.broadcast %251 : vector<16x1xf32> to vector<16x32xf32>
    %253 = arith.mulf %248, %252 : vector<16x32xf32>
    %254 = vector.broadcast %234 : vector<1x32xf32> to vector<16x32xf32>
    %255 = arith.mulf %253, %254 : vector<16x32xf32>
    %256 = vector.broadcast %235 : vector<1x32xf32> to vector<16x32xf32>
    %257 = arith.addf %255, %256 : vector<16x32xf32>
    %258 = arith.truncf %257 : vector<16x32xf32> to vector<16x32xbf16>
    %c0_129 = arith.constant 0 : index
    %c0_130 = arith.constant 0 : index
    %c0_131 = arith.constant 0 : index
    %259 = vector.load %arg15[%c0_129, %c0_130, %c0_131] : memref<4x32x8xbf16, #tpu.memory_space<vmem>>, vector<1x32x8xbf16>
    %260 = vector.shape_cast %259 : vector<1x32x8xbf16> to vector<32x8xbf16>
    %cst_132 = arith.constant dense<0.000000e+00> : vector<16x8xf32>
    %261 = tpu.matmul %258, %260, %cst_132 {dimension_numbers = #tpu.dot_dimension_numbers<[1], [0], [0], [1], [0, 0, 1, 1], [], []>} : vector<16x32xbf16>, vector<32x8xbf16>, vector<16x8xf32> -> vector<16x8xf32>
    %c0_133 = arith.constant 0 : index
    %c0_134 = arith.constant 0 : index
    %c0_135 = arith.constant 0 : index
    %262 = vector.load %arg16[%c0_133, %c0_134, %c0_135] : memref<4x1x8xf32, #tpu.memory_space<vmem>>, vector<1x1x8xf32>
    %263 = vector.shape_cast %262 : vector<1x1x8xf32> to vector<1x8xf32>
    %264 = vector.broadcast %263 : vector<1x8xf32> to vector<16x8xf32>
    %265 = arith.addf %261, %264 : vector<16x8xf32>
    %cst_136 = arith.constant 0.353553385 : f32
    %266 = vector.broadcast %cst_136 : f32 to vector<16x8xf32>
    %267 = arith.mulf %265, %266 : vector<16x8xf32>
    %c0_137 = arith.constant 0 : index
    %c0_138 = arith.constant 0 : index
    %c0_139 = arith.constant 0 : index
    %268 = vector.load %arg17[%c0_137, %c0_138, %c0_139] : memref<4x32x8xbf16, #tpu.memory_space<vmem>>, vector<1x32x8xbf16>
    %269 = vector.shape_cast %268 : vector<1x32x8xbf16> to vector<32x8xbf16>
    %cst_140 = arith.constant dense<0.000000e+00> : vector<8x8xf32>
    %270 = tpu.matmul %6, %269, %cst_140 {dimension_numbers = #tpu.dot_dimension_numbers<[1], [0], [0], [1], [0, 0, 1, 1], [], []>} : vector<8x32xbf16>, vector<32x8xbf16>, vector<8x8xf32> -> vector<8x8xf32>
    %c0_141 = arith.constant 0 : index
    %c0_142 = arith.constant 0 : index
    %c0_143 = arith.constant 0 : index
    %271 = vector.load %arg18[%c0_141, %c0_142, %c0_143] : memref<4x1x8xf32, #tpu.memory_space<vmem>>, vector<1x1x8xf32>
    %272 = vector.shape_cast %271 : vector<1x1x8xf32> to vector<1x8xf32>
    %273 = vector.broadcast %272 : vector<1x8xf32> to vector<8x8xf32>
    %274 = arith.addf %270, %273 : vector<8x8xf32>
    %c0_144 = arith.constant 0 : index
    %c0_145 = arith.constant 0 : index
    %c0_146 = arith.constant 0 : index
    %275 = vector.load %arg19[%c0_144, %c0_145, %c0_146] : memref<4x32x8xbf16, #tpu.memory_space<vmem>>, vector<1x32x8xbf16>
    %276 = vector.shape_cast %275 : vector<1x32x8xbf16> to vector<32x8xbf16>
    %cst_147 = arith.constant dense<0.000000e+00> : vector<8x8xf32>
    %277 = tpu.matmul %6, %276, %cst_147 {dimension_numbers = #tpu.dot_dimension_numbers<[1], [0], [0], [1], [0, 0, 1, 1], [], []>} : vector<8x32xbf16>, vector<32x8xbf16>, vector<8x8xf32> -> vector<8x8xf32>
    %c0_148 = arith.constant 0 : index
    %c0_149 = arith.constant 0 : index
    %c0_150 = arith.constant 0 : index
    %278 = vector.load %arg20[%c0_148, %c0_149, %c0_150] : memref<4x1x8xf32, #tpu.memory_space<vmem>>, vector<1x1x8xf32>
    %279 = vector.shape_cast %278 : vector<1x1x8xf32> to vector<1x8xf32>
    %280 = vector.broadcast %279 : vector<1x8xf32> to vector<8x8xf32>
    %281 = arith.addf %277, %280 : vector<8x8xf32>
    %282 = vector.extract_strided_slice %267 {offsets = [0, 0], sizes = [8, 8], strides = [1, 1]} : vector<16x8xf32> to vector<8x8xf32>
    %283 = vector.extract_strided_slice %274 {offsets = [0, 0], sizes = [4, 8], strides = [1, 1]} : vector<8x8xf32> to vector<4x8xf32>
    %284 = vector.extract_strided_slice %281 {offsets = [0, 0], sizes = [4, 8], strides = [1, 1]} : vector<8x8xf32> to vector<4x8xf32>
    %285 = vector.extract_strided_slice %267 {offsets = [8, 0], sizes = [8, 8], strides = [1, 1]} : vector<16x8xf32> to vector<8x8xf32>
    %286 = vector.extract_strided_slice %274 {offsets = [4, 0], sizes = [4, 8], strides = [1, 1]} : vector<8x8xf32> to vector<4x8xf32>
    %287 = vector.extract_strided_slice %281 {offsets = [4, 0], sizes = [4, 8], strides = [1, 1]} : vector<8x8xf32> to vector<4x8xf32>
    %c1_151 = arith.constant 1 : index
    %c0_152 = arith.constant 0 : index
    %c0_153 = arith.constant 0 : index
    %288 = vector.load %arg15[%c1_151, %c0_152, %c0_153] : memref<4x32x8xbf16, #tpu.memory_space<vmem>>, vector<1x32x8xbf16>
    %289 = vector.shape_cast %288 : vector<1x32x8xbf16> to vector<32x8xbf16>
    %cst_154 = arith.constant dense<0.000000e+00> : vector<16x8xf32>
    %290 = tpu.matmul %258, %289, %cst_154 {dimension_numbers = #tpu.dot_dimension_numbers<[1], [0], [0], [1], [0, 0, 1, 1], [], []>} : vector<16x32xbf16>, vector<32x8xbf16>, vector<16x8xf32> -> vector<16x8xf32>
    %c1_155 = arith.constant 1 : index
    %c0_156 = arith.constant 0 : index
    %c0_157 = arith.constant 0 : index
    %291 = vector.load %arg16[%c1_155, %c0_156, %c0_157] : memref<4x1x8xf32, #tpu.memory_space<vmem>>, vector<1x1x8xf32>
    %292 = vector.shape_cast %291 : vector<1x1x8xf32> to vector<1x8xf32>
    %293 = vector.broadcast %292 : vector<1x8xf32> to vector<16x8xf32>
    %294 = arith.addf %290, %293 : vector<16x8xf32>
    %cst_158 = arith.constant 0.353553385 : f32
    %295 = vector.broadcast %cst_158 : f32 to vector<16x8xf32>
    %296 = arith.mulf %294, %295 : vector<16x8xf32>
    %c1_159 = arith.constant 1 : index
    %c0_160 = arith.constant 0 : index
    %c0_161 = arith.constant 0 : index
    %297 = vector.load %arg17[%c1_159, %c0_160, %c0_161] : memref<4x32x8xbf16, #tpu.memory_space<vmem>>, vector<1x32x8xbf16>
    %298 = vector.shape_cast %297 : vector<1x32x8xbf16> to vector<32x8xbf16>
    %cst_162 = arith.constant dense<0.000000e+00> : vector<8x8xf32>
    %299 = tpu.matmul %6, %298, %cst_162 {dimension_numbers = #tpu.dot_dimension_numbers<[1], [0], [0], [1], [0, 0, 1, 1], [], []>} : vector<8x32xbf16>, vector<32x8xbf16>, vector<8x8xf32> -> vector<8x8xf32>
    %c1_163 = arith.constant 1 : index
    %c0_164 = arith.constant 0 : index
    %c0_165 = arith.constant 0 : index
    %300 = vector.load %arg18[%c1_163, %c0_164, %c0_165] : memref<4x1x8xf32, #tpu.memory_space<vmem>>, vector<1x1x8xf32>
    %301 = vector.shape_cast %300 : vector<1x1x8xf32> to vector<1x8xf32>
    %302 = vector.broadcast %301 : vector<1x8xf32> to vector<8x8xf32>
    %303 = arith.addf %299, %302 : vector<8x8xf32>
    %c1_166 = arith.constant 1 : index
    %c0_167 = arith.constant 0 : index
    %c0_168 = arith.constant 0 : index
    %304 = vector.load %arg19[%c1_166, %c0_167, %c0_168] : memref<4x32x8xbf16, #tpu.memory_space<vmem>>, vector<1x32x8xbf16>
    %305 = vector.shape_cast %304 : vector<1x32x8xbf16> to vector<32x8xbf16>
    %cst_169 = arith.constant dense<0.000000e+00> : vector<8x8xf32>
    %306 = tpu.matmul %6, %305, %cst_169 {dimension_numbers = #tpu.dot_dimension_numbers<[1], [0], [0], [1], [0, 0, 1, 1], [], []>} : vector<8x32xbf16>, vector<32x8xbf16>, vector<8x8xf32> -> vector<8x8xf32>
    %c1_170 = arith.constant 1 : index
    %c0_171 = arith.constant 0 : index
    %c0_172 = arith.constant 0 : index
    %307 = vector.load %arg20[%c1_170, %c0_171, %c0_172] : memref<4x1x8xf32, #tpu.memory_space<vmem>>, vector<1x1x8xf32>
    %308 = vector.shape_cast %307 : vector<1x1x8xf32> to vector<1x8xf32>
    %309 = vector.broadcast %308 : vector<1x8xf32> to vector<8x8xf32>
    %310 = arith.addf %306, %309 : vector<8x8xf32>
    %311 = vector.extract_strided_slice %296 {offsets = [0, 0], sizes = [8, 8], strides = [1, 1]} : vector<16x8xf32> to vector<8x8xf32>
    %312 = vector.extract_strided_slice %303 {offsets = [0, 0], sizes = [4, 8], strides = [1, 1]} : vector<8x8xf32> to vector<4x8xf32>
    %313 = vector.extract_strided_slice %310 {offsets = [0, 0], sizes = [4, 8], strides = [1, 1]} : vector<8x8xf32> to vector<4x8xf32>
    %314 = vector.extract_strided_slice %296 {offsets = [8, 0], sizes = [8, 8], strides = [1, 1]} : vector<16x8xf32> to vector<8x8xf32>
    %315 = vector.extract_strided_slice %303 {offsets = [4, 0], sizes = [4, 8], strides = [1, 1]} : vector<8x8xf32> to vector<4x8xf32>
    %316 = vector.extract_strided_slice %310 {offsets = [4, 0], sizes = [4, 8], strides = [1, 1]} : vector<8x8xf32> to vector<4x8xf32>
    %c2_173 = arith.constant 2 : index
    %c0_174 = arith.constant 0 : index
    %c0_175 = arith.constant 0 : index
    %317 = vector.load %arg15[%c2_173, %c0_174, %c0_175] : memref<4x32x8xbf16, #tpu.memory_space<vmem>>, vector<1x32x8xbf16>
    %318 = vector.shape_cast %317 : vector<1x32x8xbf16> to vector<32x8xbf16>
    %cst_176 = arith.constant dense<0.000000e+00> : vector<16x8xf32>
    %319 = tpu.matmul %258, %318, %cst_176 {dimension_numbers = #tpu.dot_dimension_numbers<[1], [0], [0], [1], [0, 0, 1, 1], [], []>} : vector<16x32xbf16>, vector<32x8xbf16>, vector<16x8xf32> -> vector<16x8xf32>
    %c2_177 = arith.constant 2 : index
    %c0_178 = arith.constant 0 : index
    %c0_179 = arith.constant 0 : index
    %320 = vector.load %arg16[%c2_177, %c0_178, %c0_179] : memref<4x1x8xf32, #tpu.memory_space<vmem>>, vector<1x1x8xf32>
    %321 = vector.shape_cast %320 : vector<1x1x8xf32> to vector<1x8xf32>
    %322 = vector.broadcast %321 : vector<1x8xf32> to vector<16x8xf32>
    %323 = arith.addf %319, %322 : vector<16x8xf32>
    %cst_180 = arith.constant 0.353553385 : f32
    %324 = vector.broadcast %cst_180 : f32 to vector<16x8xf32>
    %325 = arith.mulf %323, %324 : vector<16x8xf32>
    %c2_181 = arith.constant 2 : index
    %c0_182 = arith.constant 0 : index
    %c0_183 = arith.constant 0 : index
    %326 = vector.load %arg17[%c2_181, %c0_182, %c0_183] : memref<4x32x8xbf16, #tpu.memory_space<vmem>>, vector<1x32x8xbf16>
    %327 = vector.shape_cast %326 : vector<1x32x8xbf16> to vector<32x8xbf16>
    %cst_184 = arith.constant dense<0.000000e+00> : vector<8x8xf32>
    %328 = tpu.matmul %6, %327, %cst_184 {dimension_numbers = #tpu.dot_dimension_numbers<[1], [0], [0], [1], [0, 0, 1, 1], [], []>} : vector<8x32xbf16>, vector<32x8xbf16>, vector<8x8xf32> -> vector<8x8xf32>
    %c2_185 = arith.constant 2 : index
    %c0_186 = arith.constant 0 : index
    %c0_187 = arith.constant 0 : index
    %329 = vector.load %arg18[%c2_185, %c0_186, %c0_187] : memref<4x1x8xf32, #tpu.memory_space<vmem>>, vector<1x1x8xf32>
    %330 = vector.shape_cast %329 : vector<1x1x8xf32> to vector<1x8xf32>
    %331 = vector.broadcast %330 : vector<1x8xf32> to vector<8x8xf32>
    %332 = arith.addf %328, %331 : vector<8x8xf32>
    %c2_188 = arith.constant 2 : index
    %c0_189 = arith.constant 0 : index
    %c0_190 = arith.constant 0 : index
    %333 = vector.load %arg19[%c2_188, %c0_189, %c0_190] : memref<4x32x8xbf16, #tpu.memory_space<vmem>>, vector<1x32x8xbf16>
    %334 = vector.shape_cast %333 : vector<1x32x8xbf16> to vector<32x8xbf16>
    %cst_191 = arith.constant dense<0.000000e+00> : vector<8x8xf32>
    %335 = tpu.matmul %6, %334, %cst_191 {dimension_numbers = #tpu.dot_dimension_numbers<[1], [0], [0], [1], [0, 0, 1, 1], [], []>} : vector<8x32xbf16>, vector<32x8xbf16>, vector<8x8xf32> -> vector<8x8xf32>
    %c2_192 = arith.constant 2 : index
    %c0_193 = arith.constant 0 : index
    %c0_194 = arith.constant 0 : index
    %336 = vector.load %arg20[%c2_192, %c0_193, %c0_194] : memref<4x1x8xf32, #tpu.memory_space<vmem>>, vector<1x1x8xf32>
    %337 = vector.shape_cast %336 : vector<1x1x8xf32> to vector<1x8xf32>
    %338 = vector.broadcast %337 : vector<1x8xf32> to vector<8x8xf32>
    %339 = arith.addf %335, %338 : vector<8x8xf32>
    %340 = vector.extract_strided_slice %325 {offsets = [0, 0], sizes = [8, 8], strides = [1, 1]} : vector<16x8xf32> to vector<8x8xf32>
    %341 = vector.extract_strided_slice %332 {offsets = [0, 0], sizes = [4, 8], strides = [1, 1]} : vector<8x8xf32> to vector<4x8xf32>
    %342 = vector.extract_strided_slice %339 {offsets = [0, 0], sizes = [4, 8], strides = [1, 1]} : vector<8x8xf32> to vector<4x8xf32>
    %343 = vector.extract_strided_slice %325 {offsets = [8, 0], sizes = [8, 8], strides = [1, 1]} : vector<16x8xf32> to vector<8x8xf32>
    %344 = vector.extract_strided_slice %332 {offsets = [4, 0], sizes = [4, 8], strides = [1, 1]} : vector<8x8xf32> to vector<4x8xf32>
    %345 = vector.extract_strided_slice %339 {offsets = [4, 0], sizes = [4, 8], strides = [1, 1]} : vector<8x8xf32> to vector<4x8xf32>
    %c3_195 = arith.constant 3 : index
    %c0_196 = arith.constant 0 : index
    %c0_197 = arith.constant 0 : index
    %346 = vector.load %arg15[%c3_195, %c0_196, %c0_197] : memref<4x32x8xbf16, #tpu.memory_space<vmem>>, vector<1x32x8xbf16>
    %347 = vector.shape_cast %346 : vector<1x32x8xbf16> to vector<32x8xbf16>
    %cst_198 = arith.constant dense<0.000000e+00> : vector<16x8xf32>
    %348 = tpu.matmul %258, %347, %cst_198 {dimension_numbers = #tpu.dot_dimension_numbers<[1], [0], [0], [1], [0, 0, 1, 1], [], []>} : vector<16x32xbf16>, vector<32x8xbf16>, vector<16x8xf32> -> vector<16x8xf32>
    %c3_199 = arith.constant 3 : index
    %c0_200 = arith.constant 0 : index
    %c0_201 = arith.constant 0 : index
    %349 = vector.load %arg16[%c3_199, %c0_200, %c0_201] : memref<4x1x8xf32, #tpu.memory_space<vmem>>, vector<1x1x8xf32>
    %350 = vector.shape_cast %349 : vector<1x1x8xf32> to vector<1x8xf32>
    %351 = vector.broadcast %350 : vector<1x8xf32> to vector<16x8xf32>
    %352 = arith.addf %348, %351 : vector<16x8xf32>
    %cst_202 = arith.constant 0.353553385 : f32
    %353 = vector.broadcast %cst_202 : f32 to vector<16x8xf32>
    %354 = arith.mulf %352, %353 : vector<16x8xf32>
    %c3_203 = arith.constant 3 : index
    %c0_204 = arith.constant 0 : index
    %c0_205 = arith.constant 0 : index
    %355 = vector.load %arg17[%c3_203, %c0_204, %c0_205] : memref<4x32x8xbf16, #tpu.memory_space<vmem>>, vector<1x32x8xbf16>
    %356 = vector.shape_cast %355 : vector<1x32x8xbf16> to vector<32x8xbf16>
    %cst_206 = arith.constant dense<0.000000e+00> : vector<8x8xf32>
    %357 = tpu.matmul %6, %356, %cst_206 {dimension_numbers = #tpu.dot_dimension_numbers<[1], [0], [0], [1], [0, 0, 1, 1], [], []>} : vector<8x32xbf16>, vector<32x8xbf16>, vector<8x8xf32> -> vector<8x8xf32>
    %c3_207 = arith.constant 3 : index
    %c0_208 = arith.constant 0 : index
    %c0_209 = arith.constant 0 : index
    %358 = vector.load %arg18[%c3_207, %c0_208, %c0_209] : memref<4x1x8xf32, #tpu.memory_space<vmem>>, vector<1x1x8xf32>
    %359 = vector.shape_cast %358 : vector<1x1x8xf32> to vector<1x8xf32>
    %360 = vector.broadcast %359 : vector<1x8xf32> to vector<8x8xf32>
    %361 = arith.addf %357, %360 : vector<8x8xf32>
    %c3_210 = arith.constant 3 : index
    %c0_211 = arith.constant 0 : index
    %c0_212 = arith.constant 0 : index
    %362 = vector.load %arg19[%c3_210, %c0_211, %c0_212] : memref<4x32x8xbf16, #tpu.memory_space<vmem>>, vector<1x32x8xbf16>
    %363 = vector.shape_cast %362 : vector<1x32x8xbf16> to vector<32x8xbf16>
    %cst_213 = arith.constant dense<0.000000e+00> : vector<8x8xf32>
    %364 = tpu.matmul %6, %363, %cst_213 {dimension_numbers = #tpu.dot_dimension_numbers<[1], [0], [0], [1], [0, 0, 1, 1], [], []>} : vector<8x32xbf16>, vector<32x8xbf16>, vector<8x8xf32> -> vector<8x8xf32>
    %c3_214 = arith.constant 3 : index
    %c0_215 = arith.constant 0 : index
    %c0_216 = arith.constant 0 : index
    %365 = vector.load %arg20[%c3_214, %c0_215, %c0_216] : memref<4x1x8xf32, #tpu.memory_space<vmem>>, vector<1x1x8xf32>
    %366 = vector.shape_cast %365 : vector<1x1x8xf32> to vector<1x8xf32>
    %367 = vector.broadcast %366 : vector<1x8xf32> to vector<8x8xf32>
    %368 = arith.addf %364, %367 : vector<8x8xf32>
    %369 = vector.extract_strided_slice %354 {offsets = [0, 0], sizes = [8, 8], strides = [1, 1]} : vector<16x8xf32> to vector<8x8xf32>
    %370 = vector.extract_strided_slice %361 {offsets = [0, 0], sizes = [4, 8], strides = [1, 1]} : vector<8x8xf32> to vector<4x8xf32>
    %371 = vector.extract_strided_slice %368 {offsets = [0, 0], sizes = [4, 8], strides = [1, 1]} : vector<8x8xf32> to vector<4x8xf32>
    %372 = vector.extract_strided_slice %354 {offsets = [8, 0], sizes = [8, 8], strides = [1, 1]} : vector<16x8xf32> to vector<8x8xf32>
    %373 = vector.extract_strided_slice %361 {offsets = [4, 0], sizes = [4, 8], strides = [1, 1]} : vector<8x8xf32> to vector<4x8xf32>
    %374 = vector.extract_strided_slice %368 {offsets = [4, 0], sizes = [4, 8], strides = [1, 1]} : vector<8x8xf32> to vector<4x8xf32>
    %375 = vector.shape_cast %282 : vector<8x8xf32> to vector<1x8x8xf32>
    %376 = vector.shape_cast %285 : vector<8x8xf32> to vector<1x8x8xf32>
    %377 = vector.shape_cast %311 : vector<8x8xf32> to vector<1x8x8xf32>
    %378 = vector.shape_cast %314 : vector<8x8xf32> to vector<1x8x8xf32>
    %379 = vector.shape_cast %340 : vector<8x8xf32> to vector<1x8x8xf32>
    %380 = vector.shape_cast %343 : vector<8x8xf32> to vector<1x8x8xf32>
    %381 = vector.shape_cast %369 : vector<8x8xf32> to vector<1x8x8xf32>
    %382 = vector.shape_cast %372 : vector<8x8xf32> to vector<1x8x8xf32>
    %383 = tpu.concatenate %375, %376, %377, %378, %379, %380, %381, %382 in 0 : vector<1x8x8xf32>, vector<1x8x8xf32>, vector<1x8x8xf32>, vector<1x8x8xf32>, vector<1x8x8xf32>, vector<1x8x8xf32>, vector<1x8x8xf32>, vector<1x8x8xf32> -> vector<8x8x8xf32>
    %384 = arith.truncf %383 : vector<8x8x8xf32> to vector<8x8x8xbf16>
    %385 = vector.shape_cast %283 : vector<4x8xf32> to vector<1x4x8xf32>
    %386 = vector.shape_cast %286 : vector<4x8xf32> to vector<1x4x8xf32>
    %387 = vector.shape_cast %312 : vector<4x8xf32> to vector<1x4x8xf32>
    %388 = vector.shape_cast %315 : vector<4x8xf32> to vector<1x4x8xf32>
    %389 = vector.shape_cast %341 : vector<4x8xf32> to vector<1x4x8xf32>
    %390 = vector.shape_cast %344 : vector<4x8xf32> to vector<1x4x8xf32>
    %391 = vector.shape_cast %370 : vector<4x8xf32> to vector<1x4x8xf32>
    %392 = vector.shape_cast %373 : vector<4x8xf32> to vector<1x4x8xf32>
    %393 = tpu.concatenate %385, %386, %387, %388, %389, %390, %391, %392 in 0 : vector<1x4x8xf32>, vector<1x4x8xf32>, vector<1x4x8xf32>, vector<1x4x8xf32>, vector<1x4x8xf32>, vector<1x4x8xf32>, vector<1x4x8xf32>, vector<1x4x8xf32> -> vector<8x4x8xf32>
    %394 = arith.truncf %393 : vector<8x4x8xf32> to vector<8x4x8xbf16>
    %395 = vector.shape_cast %284 : vector<4x8xf32> to vector<1x4x8xf32>
    %396 = vector.shape_cast %287 : vector<4x8xf32> to vector<1x4x8xf32>
    %397 = vector.shape_cast %313 : vector<4x8xf32> to vector<1x4x8xf32>
    %398 = vector.shape_cast %316 : vector<4x8xf32> to vector<1x4x8xf32>
    %399 = vector.shape_cast %342 : vector<4x8xf32> to vector<1x4x8xf32>
    %400 = vector.shape_cast %345 : vector<4x8xf32> to vector<1x4x8xf32>
    %401 = vector.shape_cast %371 : vector<4x8xf32> to vector<1x4x8xf32>
    %402 = vector.shape_cast %374 : vector<4x8xf32> to vector<1x4x8xf32>
    %403 = tpu.concatenate %395, %396, %397, %398, %399, %400, %401, %402 in 0 : vector<1x4x8xf32>, vector<1x4x8xf32>, vector<1x4x8xf32>, vector<1x4x8xf32>, vector<1x4x8xf32>, vector<1x4x8xf32>, vector<1x4x8xf32>, vector<1x4x8xf32> -> vector<8x4x8xf32>
    %404 = arith.truncf %403 : vector<8x4x8xf32> to vector<8x4x8xbf16>
    "tpu.trace_start"() <{level = 10 : i32, message = "bqd,bkd->bqk"}> : () -> ()
    %cst_217 = arith.constant dense<0.000000e+00> : vector<8x8x4xf32>
    %405 = tpu.matmul %384, %394, %cst_217 {dimension_numbers = #tpu.dot_dimension_numbers<[2], [2], [1], [1], [0, 0, 0, 1, 1, 1], [0], [0]>} : vector<8x8x8xbf16>, vector<8x4x8xbf16>, vector<8x8x4xf32> -> vector<8x8x4xf32>
    "tpu.trace_stop"() : () -> ()
    %cst_218 = arith.constant dense<0xFF800000> : vector<8x8xf32>
    %406 = vector.multi_reduction <maximumf>, %405, %cst_218 [2] : vector<8x8x4xf32> to vector<8x8xf32>
    %407 = vector.shape_cast %406 : vector<8x8xf32> to vector<8x8x1xf32>
    %408 = vector.broadcast %407 : vector<8x8x1xf32> to vector<8x8x4xf32>
    %409 = arith.subf %405, %408 : vector<8x8x4xf32>
    %410 = math.exp %409 : vector<8x8x4xf32>
    %cst_219 = arith.constant dense<0.000000e+00> : vector<8x8xf32>
    %411 = vector.multi_reduction <add>, %410, %cst_219 [2] : vector<8x8x4xf32> to vector<8x8xf32>
    %412 = vector.shape_cast %411 : vector<8x8xf32> to vector<8x8x1xf32>
    %413 = tpu.reciprocal %412 {approx = true} : vector<8x8x1xf32> -> vector<8x8x1xf32>
    %414 = vector.broadcast %413 : vector<8x8x1xf32> to vector<8x8x4xf32>
    %415 = arith.mulf %410, %414 : vector<8x8x4xf32>
    %416 = arith.truncf %415 : vector<8x8x4xf32> to vector<8x8x4xbf16>
    "tpu.trace_start"() <{level = 10 : i32, message = "bqk,bkd->bqd"}> : () -> ()
    %cst_220 = arith.constant dense<0.000000e+00> : vector<8x8x8xf32>
    %417 = tpu.matmul %416, %404, %cst_220 {dimension_numbers = #tpu.dot_dimension_numbers<[2], [1], [1], [2], [0, 0, 0, 1, 1, 2], [0], [0]>} : vector<8x8x4xbf16>, vector<8x4x8xbf16>, vector<8x8x8xf32> -> vector<8x8x8xf32>
    "tpu.trace_stop"() : () -> ()
    %418 = vector.extract_strided_slice %417 {offsets = [0, 0, 0], sizes = [1, 8, 8], strides = [1, 1, 1]} : vector<8x8x8xf32> to vector<1x8x8xf32>
    %419 = vector.shape_cast %418 : vector<1x8x8xf32> to vector<8x8xf32>
    %420 = vector.extract_strided_slice %417 {offsets = [1, 0, 0], sizes = [1, 8, 8], strides = [1, 1, 1]} : vector<8x8x8xf32> to vector<1x8x8xf32>
    %421 = vector.shape_cast %420 : vector<1x8x8xf32> to vector<8x8xf32>
    %422 = tpu.concatenate %419, %421 in 0 : vector<8x8xf32>, vector<8x8xf32> -> vector<16x8xf32>
    %423 = arith.truncf %422 : vector<16x8xf32> to vector<16x8xbf16>
    %c0_221 = arith.constant 0 : index
    %c0_222 = arith.constant 0 : index
    %c0_223 = arith.constant 0 : index
    %424 = vector.load %arg21[%c0_221, %c0_222, %c0_223] : memref<4x8x32xbf16, #tpu.memory_space<vmem>>, vector<1x8x32xbf16>
    %425 = vector.shape_cast %424 : vector<1x8x32xbf16> to vector<8x32xbf16>
    %cst_224 = arith.constant dense<0.000000e+00> : vector<16x32xf32>
    %426 = tpu.matmul %423, %425, %cst_224 {dimension_numbers = #tpu.dot_dimension_numbers<[1], [0], [0], [1], [0, 0, 1, 1], [], []>} : vector<16x8xbf16>, vector<8x32xbf16>, vector<16x32xf32> -> vector<16x32xf32>
    %427 = vector.extract_strided_slice %417 {offsets = [2, 0, 0], sizes = [1, 8, 8], strides = [1, 1, 1]} : vector<8x8x8xf32> to vector<1x8x8xf32>
    %428 = vector.shape_cast %427 : vector<1x8x8xf32> to vector<8x8xf32>
    %429 = vector.extract_strided_slice %417 {offsets = [3, 0, 0], sizes = [1, 8, 8], strides = [1, 1, 1]} : vector<8x8x8xf32> to vector<1x8x8xf32>
    %430 = vector.shape_cast %429 : vector<1x8x8xf32> to vector<8x8xf32>
    %431 = tpu.concatenate %428, %430 in 0 : vector<8x8xf32>, vector<8x8xf32> -> vector<16x8xf32>
    %432 = arith.truncf %431 : vector<16x8xf32> to vector<16x8xbf16>
    %c1_225 = arith.constant 1 : index
    %c0_226 = arith.constant 0 : index
    %c0_227 = arith.constant 0 : index
    %433 = vector.load %arg21[%c1_225, %c0_226, %c0_227] : memref<4x8x32xbf16, #tpu.memory_space<vmem>>, vector<1x8x32xbf16>
    %434 = vector.shape_cast %433 : vector<1x8x32xbf16> to vector<8x32xbf16>
    %cst_228 = arith.constant dense<0.000000e+00> : vector<16x32xf32>
    %435 = tpu.matmul %432, %434, %cst_228 {dimension_numbers = #tpu.dot_dimension_numbers<[1], [0], [0], [1], [0, 0, 1, 1], [], []>} : vector<16x8xbf16>, vector<8x32xbf16>, vector<16x32xf32> -> vector<16x32xf32>
    %436 = arith.addf %426, %435 : vector<16x32xf32>
    %437 = vector.extract_strided_slice %417 {offsets = [4, 0, 0], sizes = [1, 8, 8], strides = [1, 1, 1]} : vector<8x8x8xf32> to vector<1x8x8xf32>
    %438 = vector.shape_cast %437 : vector<1x8x8xf32> to vector<8x8xf32>
    %439 = vector.extract_strided_slice %417 {offsets = [5, 0, 0], sizes = [1, 8, 8], strides = [1, 1, 1]} : vector<8x8x8xf32> to vector<1x8x8xf32>
    %440 = vector.shape_cast %439 : vector<1x8x8xf32> to vector<8x8xf32>
    %441 = tpu.concatenate %438, %440 in 0 : vector<8x8xf32>, vector<8x8xf32> -> vector<16x8xf32>
    %442 = arith.truncf %441 : vector<16x8xf32> to vector<16x8xbf16>
    %c2_229 = arith.constant 2 : index
    %c0_230 = arith.constant 0 : index
    %c0_231 = arith.constant 0 : index
    %443 = vector.load %arg21[%c2_229, %c0_230, %c0_231] : memref<4x8x32xbf16, #tpu.memory_space<vmem>>, vector<1x8x32xbf16>
    %444 = vector.shape_cast %443 : vector<1x8x32xbf16> to vector<8x32xbf16>
    %cst_232 = arith.constant dense<0.000000e+00> : vector<16x32xf32>
    %445 = tpu.matmul %442, %444, %cst_232 {dimension_numbers = #tpu.dot_dimension_numbers<[1], [0], [0], [1], [0, 0, 1, 1], [], []>} : vector<16x8xbf16>, vector<8x32xbf16>, vector<16x32xf32> -> vector<16x32xf32>
    %446 = arith.addf %436, %445 : vector<16x32xf32>
    %447 = vector.extract_strided_slice %417 {offsets = [6, 0, 0], sizes = [1, 8, 8], strides = [1, 1, 1]} : vector<8x8x8xf32> to vector<1x8x8xf32>
    %448 = vector.shape_cast %447 : vector<1x8x8xf32> to vector<8x8xf32>
    %449 = vector.extract_strided_slice %417 {offsets = [7, 0, 0], sizes = [1, 8, 8], strides = [1, 1, 1]} : vector<8x8x8xf32> to vector<1x8x8xf32>
    %450 = vector.shape_cast %449 : vector<1x8x8xf32> to vector<8x8xf32>
    %451 = tpu.concatenate %448, %450 in 0 : vector<8x8xf32>, vector<8x8xf32> -> vector<16x8xf32>
    %452 = arith.truncf %451 : vector<16x8xf32> to vector<16x8xbf16>
    %c3_233 = arith.constant 3 : index
    %c0_234 = arith.constant 0 : index
    %c0_235 = arith.constant 0 : index
    %453 = vector.load %arg21[%c3_233, %c0_234, %c0_235] : memref<4x8x32xbf16, #tpu.memory_space<vmem>>, vector<1x8x32xbf16>
    %454 = vector.shape_cast %453 : vector<1x8x32xbf16> to vector<8x32xbf16>
    %cst_236 = arith.constant dense<0.000000e+00> : vector<16x32xf32>
    %455 = tpu.matmul %452, %454, %cst_236 {dimension_numbers = #tpu.dot_dimension_numbers<[1], [0], [0], [1], [0, 0, 1, 1], [], []>} : vector<16x8xbf16>, vector<8x32xbf16>, vector<16x32xf32> -> vector<16x32xf32>
    %456 = arith.addf %446, %455 : vector<16x32xf32>
    %c0_237 = arith.constant 0 : index
    %c0_238 = arith.constant 0 : index
    %457 = vector.load %arg22[%c0_237, %c0_238] : memref<1x32xf32, #tpu.memory_space<vmem>>, vector<1x32xf32>
    %458 = vector.broadcast %457 : vector<1x32xf32> to vector<16x32xf32>
    %459 = arith.addf %456, %458 : vector<16x32xf32>
    %460 = arith.addf %233, %459 : vector<16x32xf32>
    %c0_239 = arith.constant 0 : index
    %c0_240 = arith.constant 0 : index
    %461 = vector.load %arg23[%c0_239, %c0_240] : memref<1x32xf32, #tpu.memory_space<vmem>>, vector<1x32xf32>
    %c0_241 = arith.constant 0 : index
    %c0_242 = arith.constant 0 : index
    %462 = vector.load %arg24[%c0_241, %c0_242] : memref<1x32xf32, #tpu.memory_space<vmem>>, vector<1x32xf32>
    %cst_243 = arith.constant dense<0.000000e+00> : vector<16xf32>
    %463 = vector.multi_reduction <add>, %460, %cst_243 [1] : vector<16x32xf32> to vector<16xf32>
    %464 = vector.shape_cast %463 : vector<16xf32> to vector<16x1xf32>
    %cst_244 = arith.constant 3.200000e+01 : f32
    %465 = vector.broadcast %cst_244 : f32 to vector<16x1xf32>
    %466 = arith.divf %464, %465 : vector<16x1xf32>
    %467 = vector.broadcast %466 : vector<16x1xf32> to vector<16x32xf32>
    %468 = arith.subf %460, %467 : vector<16x32xf32>
    %469 = arith.mulf %468, %468 : vector<16x32xf32>
    %cst_245 = arith.constant dense<0.000000e+00> : vector<16xf32>
    %470 = vector.multi_reduction <add>, %469, %cst_245 [1] : vector<16x32xf32> to vector<16xf32>
    %471 = vector.shape_cast %470 : vector<16xf32> to vector<16x1xf32>
    %cst_246 = arith.constant 3.200000e+01 : f32
    %472 = vector.broadcast %cst_246 : f32 to vector<16x1xf32>
    %473 = arith.divf %471, %472 : vector<16x1xf32>
    %474 = vector.broadcast %466 : vector<16x1xf32> to vector<16x32xf32>
    %475 = arith.subf %460, %474 : vector<16x32xf32>
    %cst_247 = arith.constant 9.99999974E-6 : f32
    %476 = vector.broadcast %cst_247 : f32 to vector<16x1xf32>
    %477 = arith.addf %473, %476 : vector<16x1xf32>
    %478 = math.rsqrt %477 : vector<16x1xf32>
    %479 = vector.broadcast %478 : vector<16x1xf32> to vector<16x32xf32>
    %480 = arith.mulf %475, %479 : vector<16x32xf32>
    %481 = vector.broadcast %461 : vector<1x32xf32> to vector<16x32xf32>
    %482 = arith.mulf %480, %481 : vector<16x32xf32>
    %483 = vector.broadcast %462 : vector<1x32xf32> to vector<16x32xf32>
    %484 = arith.addf %482, %483 : vector<16x32xf32>
    %485 = arith.truncf %484 : vector<16x32xf32> to vector<16x32xbf16>
    %c0_248 = arith.constant 0 : index
    %c0_249 = arith.constant 0 : index
    %486 = vector.load %arg25[%c0_248, %c0_249] : memref<32x128xbf16, #tpu.memory_space<vmem>>, vector<32x128xbf16>
    %cst_250 = arith.constant dense<0.000000e+00> : vector<16x128xf32>
    %487 = tpu.matmul %485, %486, %cst_250 {dimension_numbers = #tpu.dot_dimension_numbers<[1], [0], [0], [1], [0, 0, 1, 1], [], []>} : vector<16x32xbf16>, vector<32x128xbf16>, vector<16x128xf32> -> vector<16x128xf32>
    %c0_251 = arith.constant 0 : index
    %c0_252 = arith.constant 0 : index
    %488 = vector.load %arg26[%c0_251, %c0_252] : memref<1x128xf32, #tpu.memory_space<vmem>>, vector<1x128xf32>
    %489 = vector.broadcast %488 : vector<1x128xf32> to vector<16x128xf32>
    %490 = arith.addf %487, %489 : vector<16x128xf32>
    %cst_253 = arith.constant 5.000000e-01 : f32
    %491 = vector.broadcast %cst_253 : f32 to vector<16x128xf32>
    %492 = arith.mulf %491, %490 : vector<16x128xf32>
    %cst_254 = arith.constant 0.707106769 : f32
    %493 = vector.broadcast %cst_254 : f32 to vector<16x128xf32>
    %494 = arith.mulf %490, %493 : vector<16x128xf32>
    %495 = math.erf %494 : vector<16x128xf32>
    %cst_255 = arith.constant 1.000000e+00 : f32
    %496 = vector.broadcast %cst_255 : f32 to vector<16x128xf32>
    %497 = arith.addf %496, %495 : vector<16x128xf32>
    %498 = arith.mulf %492, %497 : vector<16x128xf32>
    %499 = arith.truncf %498 : vector<16x128xf32> to vector<16x128xbf16>
    %c0_256 = arith.constant 0 : index
    %c0_257 = arith.constant 0 : index
    %500 = vector.load %arg27[%c0_256, %c0_257] : memref<128x32xbf16, #tpu.memory_space<vmem>>, vector<128x32xbf16>
    %cst_258 = arith.constant dense<0.000000e+00> : vector<16x32xf32>
    %501 = tpu.matmul %499, %500, %cst_258 {dimension_numbers = #tpu.dot_dimension_numbers<[1], [0], [0], [1], [0, 0, 1, 1], [], []>} : vector<16x128xbf16>, vector<128x32xbf16>, vector<16x32xf32> -> vector<16x32xf32>
    %c0_259 = arith.constant 0 : index
    %c0_260 = arith.constant 0 : index
    %502 = vector.load %arg28[%c0_259, %c0_260] : memref<1x32xf32, #tpu.memory_space<vmem>>, vector<1x32xf32>
    %503 = vector.broadcast %502 : vector<1x32xf32> to vector<16x32xf32>
    %504 = arith.addf %501, %503 : vector<16x32xf32>
    %505 = arith.addf %460, %504 : vector<16x32xf32>
    %cst_261 = arith.constant 1.000000e+01 : f32
    %506 = vector.broadcast %cst_261 : f32 to vector<16x32xf32>
    %507 = arith.mulf %505, %506 : vector<16x32xf32>
    %c0_262 = arith.constant 0 : index
    %c0_263 = arith.constant 0 : index
    %508 = vector.load %arg29[%c0_262, %c0_263] : memref<16x32xf32, #tpu.memory_space<vmem>>, vector<16x32xf32>
    tpu.vector_store %arg29[%c0_262, %c0_263], %507 {strides = array<i32>} : memref<16x32xf32, #tpu.memory_space<vmem>>, vector<16x32xf32>,
    return
  }
  func.func @transform_0(%arg0: i32) -> (i32, i32) {
    %c0_i32 = arith.constant 0 : i32
    %c0_i32_0 = arith.constant 0 : i32
    return %arg0, %c0_i32 : i32, i32
  }
  func.func @transform_1(%arg0: i32) -> (i32, i32) {
    %c0_i32 = arith.constant 0 : i32
    %c0_i32_0 = arith.constant 0 : i32
    return %arg0, %c0_i32 : i32, i32
  }
  func.func @transform_2(%arg0: i32) -> (i32, i32) {
    %c0_i32 = arith.constant 0 : i32
    %c0_i32_0 = arith.constant 0 : i32
    %c0_i32_1 = arith.constant 0 : i32
    return %c0_i32, %c0_i32_0 : i32, i32
  }
  func.func @transform_3(%arg0: i32) -> (i32, i32) {
    %c0_i32 = arith.constant 0 : i32
    %c0_i32_0 = arith.constant 0 : i32
    %c0_i32_1 = arith.constant 0 : i32
    return %c0_i32, %c0_i32_0 : i32, i32
  }
  func.func @transform_4(%arg0: i32) -> (i32, i32, i32) {
    %c0_i32 = arith.constant 0 : i32
    %c0_i32_0 = arith.constant 0 : i32
    %c0_i32_1 = arith.constant 0 : i32
    %c0_i32_2 = arith.constant 0 : i32
    return %c0_i32, %c0_i32_0, %c0_i32_1 : i32, i32, i32
  }
  func.func @transform_5(%arg0: i32) -> (i32, i32, i32) {
    %c0_i32 = arith.constant 0 : i32
    %c0_i32_0 = arith.constant 0 : i32
    %c0_i32_1 = arith.constant 0 : i32
    %c0_i32_2 = arith.constant 0 : i32
    return %c0_i32, %c0_i32_0, %c0_i32_1 : i32, i32, i32
  }
  func.func @transform_6(%arg0: i32) -> (i32, i32, i32) {
    %c0_i32 = arith.constant 0 : i32
    %c0_i32_0 = arith.constant 0 : i32
    %c0_i32_1 = arith.constant 0 : i32
    %c0_i32_2 = arith.constant 0 : i32
    return %c0_i32, %c0_i32_0, %c0_i32_1 : i32, i32, i32
  }
  func.func @transform_7(%arg0: i32) -> (i32, i32, i32) {
    %c0_i32 = arith.constant 0 : i32
    %c0_i32_0 = arith.constant 0 : i32
    %c0_i32_1 = arith.constant 0 : i32
    %c0_i32_2 = arith.constant 0 : i32
    return %c0_i32, %c0_i32_0, %c0_i32_1 : i32, i32, i32
  }
  func.func @transform_8(%arg0: i32) -> (i32, i32, i32) {
    %c0_i32 = arith.constant 0 : i32
    %c0_i32_0 = arith.constant 0 : i32
    %c0_i32_1 = arith.constant 0 : i32
    %c0_i32_2 = arith.constant 0 : i32
    return %c0_i32, %c0_i32_0, %c0_i32_1 : i32, i32, i32
  }
  func.func @transform_9(%arg0: i32) -> (i32, i32, i32) {
    %c0_i32 = arith.constant 0 : i32
    %c0_i32_0 = arith.constant 0 : i32
    %c0_i32_1 = arith.constant 0 : i32
    %c0_i32_2 = arith.constant 0 : i32
    return %c0_i32, %c0_i32_0, %c0_i32_1 : i32, i32, i32
  }
  func.func @transform_10(%arg0: i32) -> (i32, i32, i32) {
    %c0_i32 = arith.constant 0 : i32
    %c0_i32_0 = arith.constant 0 : i32
    %c0_i32_1 = arith.constant 0 : i32
    %c0_i32_2 = arith.constant 0 : i32
    return %c0_i32, %c0_i32_0, %c0_i32_1 : i32, i32, i32
  }
  func.func @transform_11(%arg0: i32) -> (i32, i32) {
    %c0_i32 = arith.constant 0 : i32
    %c0_i32_0 = arith.constant 0 : i32
    %c0_i32_1 = arith.constant 0 : i32
    return %c0_i32, %c0_i32_0 : i32, i32
  }
  func.func @transform_12(%arg0: i32) -> (i32, i32) {
    %c0_i32 = arith.constant 0 : i32
    %c0_i32_0 = arith.constant 0 : i32
    %c0_i32_1 = arith.constant 0 : i32
    return %c0_i32, %c0_i32_0 : i32, i32
  }
  func.func @transform_13(%arg0: i32) -> (i32, i32) {
    %c0_i32 = arith.constant 0 : i32
    %c0_i32_0 = arith.constant 0 : i32
    %c0_i32_1 = arith.constant 0 : i32
    return %c0_i32, %c0_i32_0 : i32, i32
  }
  func.func @transform_14(%arg0: i32) -> (i32, i32, i32) {
    %c0_i32 = arith.constant 0 : i32
    %c0_i32_0 = arith.constant 0 : i32
    %c0_i32_1 = arith.constant 0 : i32
    %c0_i32_2 = arith.constant 0 : i32
    return %c0_i32, %c0_i32_0, %c0_i32_1 : i32, i32, i32
  }
  func.func @transform_15(%arg0: i32) -> (i32, i32, i32) {
    %c0_i32 = arith.constant 0 : i32
    %c0_i32_0 = arith.constant 0 : i32
    %c0_i32_1 = arith.constant 0 : i32
    %c0_i32_2 = arith.constant 0 : i32
    return %c0_i32, %c0_i32_0, %c0_i32_1 : i32, i32, i32
  }
  func.func @transform_16(%arg0: i32) -> (i32, i32, i32) {
    %c0_i32 = arith.constant 0 : i32
    %c0_i32_0 = arith.constant 0 : i32
    %c0_i32_1 = arith.constant 0 : i32
    %c0_i32_2 = arith.constant 0 : i32
    return %c0_i32, %c0_i32_0, %c0_i32_1 : i32, i32, i32
  }
  func.func @transform_17(%arg0: i32) -> (i32, i32, i32) {
    %c0_i32 = arith.constant 0 : i32
    %c0_i32_0 = arith.constant 0 : i32
    %c0_i32_1 = arith.constant 0 : i32
    %c0_i32_2 = arith.constant 0 : i32
    return %c0_i32, %c0_i32_0, %c0_i32_1 : i32, i32, i32
  }
  func.func @transform_18(%arg0: i32) -> (i32, i32, i32) {
    %c0_i32 = arith.constant 0 : i32
    %c0_i32_0 = arith.constant 0 : i32
    %c0_i32_1 = arith.constant 0 : i32
    %c0_i32_2 = arith.constant 0 : i32
    return %c0_i32, %c0_i32_0, %c0_i32_1 : i32, i32, i32
  }
  func.func @transform_19(%arg0: i32) -> (i32, i32, i32) {
    %c0_i32 = arith.constant 0 : i32
    %c0_i32_0 = arith.constant 0 : i32
    %c0_i32_1 = arith.constant 0 : i32
    %c0_i32_2 = arith.constant 0 : i32
    return %c0_i32, %c0_i32_0, %c0_i32_1 : i32, i32, i32
  }
  func.func @transform_20(%arg0: i32) -> (i32, i32, i32) {
    %c0_i32 = arith.constant 0 : i32
    %c0_i32_0 = arith.constant 0 : i32
    %c0_i32_1 = arith.constant 0 : i32
    %c0_i32_2 = arith.constant 0 : i32
    return %c0_i32, %c0_i32_0, %c0_i32_1 : i32, i32, i32
  }
  func.func @transform_21(%arg0: i32) -> (i32, i32) {
    %c0_i32 = arith.constant 0 : i32
    %c0_i32_0 = arith.constant 0 : i32
    %c0_i32_1 = arith.constant 0 : i32
    return %c0_i32, %c0_i32_0 : i32, i32
  }
  func.func @transform_22(%arg0: i32) -> (i32, i32) {
    %c0_i32 = arith.constant 0 : i32
    %c0_i32_0 = arith.constant 0 : i32
    %c0_i32_1 = arith.constant 0 : i32
    return %c0_i32, %c0_i32_0 : i32, i32
  }
  func.func @transform_23(%arg0: i32) -> (i32, i32) {
    %c0_i32 = arith.constant 0 : i32
    %c0_i32_0 = arith.constant 0 : i32
    %c0_i32_1 = arith.constant 0 : i32
    return %c0_i32, %c0_i32_0 : i32, i32
  }
  func.func @transform_24(%arg0: i32) -> (i32, i32) {
    %c0_i32 = arith.constant 0 : i32
    %c0_i32_0 = arith.constant 0 : i32
    %c0_i32_1 = arith.constant 0 : i32
    return %c0_i32, %c0_i32_0 : i32, i32
  }
  func.func @transform_25(%arg0: i32) -> (i32, i32) {
    %c0_i32 = arith.constant 0 : i32
    %c0_i32_0 = arith.constant 0 : i32
    %c0_i32_1 = arith.constant 0 : i32
    return %c0_i32, %c0_i32_0 : i32, i32
  }
  func.func @transform_26(%arg0: i32) -> (i32, i32) {
    %c0_i32 = arith.constant 0 : i32
    %c0_i32_0 = arith.constant 0 : i32
    %c0_i32_1 = arith.constant 0 : i32
    return %c0_i32, %c0_i32_0 : i32, i32
  }
  func.func @transform_27(%arg0: i32) -> (i32, i32) {
    %c0_i32 = arith.constant 0 : i32
    %c0_i32_0 = arith.constant 0 : i32
    %c0_i32_1 = arith.constant 0 : i32
    return %c0_i32, %c0_i32_0 : i32, i32
  }
  func.func @transform_28(%arg0: i32) -> (i32, i32) {
    %c0_i32 = arith.constant 0 : i32
    %c0_i32_0 = arith.constant 0 : i32
    return %arg0, %c0_i32 : i32, i32
  }
}

</mosaic_0001>

<bundles_post_ra>
// kernel: tpu_custom_call.1
= control target key start
LH: loop header
LB: loop body
LE: loop exit
PB: predicated region body
PF: predicated region fallthrough
CT: control target
= control target key end

     0   :  { %s6233_s0 = inlined_call_operand.vmem [shape: f32[16,32], index: 0, kind: input, shape index: {}]   ;;  %s6234_s1 = inlined_call_operand.vmem [shape: f32[8,32], index: 1, kind: input, shape index: {}]   ;;  %s6235_s2 = inlined_call_operand.vmem [shape: f32[1,32], index: 2, kind: input, shape index: {}]   ;;  %s6236_s3 = inlined_call_operand.vmem [shape: f32[1,32], index: 3, kind: input, shape index: {}]   ;;  %s6237_s4 = inlined_call_operand.vmem [shape: bf16[4,32,8], index: 4, kind: input, shape index: {}]   ;;  %s6238_s5 = inlined_call_operand.vmem [shape: f32[4,1,8], index: 5, kind: input, shape index: {}]   ;;  %s6239_s6 = inlined_call_operand.vmem [shape: bf16[4,32,8], index: 6, kind: input, shape index: {}]   ;;  %s6240_s7 = inlined_call_operand.vmem [shape: f32[4,1,8], index: 7, kind: input, shape index: {}]   ;;  %s6241_s8 = inlined_call_operand.vmem [shape: bf16[4,32,8], index: 8, kind: input, shape index: {}]   ;;  %s6242_s9 = inlined_call_operand.vmem [shape: f32[4,1,8], index: 9, kind: input, shape index: {}]   ;;  %s6243_s10 = inlined_call_operand.vmem [shape: bf16[4,8,32], index: 10, kind: input, shape index: {}]   ;;  %s6244_s11 = inlined_call_operand.vmem [shape: f32[1,32], index: 11, kind: input, shape index: {}]   ;;  %s6245_s12 = inlined_call_operand.vmem [shape: f32[1,32], index: 12, kind: input, shape index: {}]   ;;  %s6246_s13 = inlined_call_operand.vmem [shape: f32[1,32], index: 13, kind: input, shape index: {}]   ;;  %s6247_s14 = inlined_call_operand.vmem [shape: bf16[4,32,8], index: 14, kind: input, shape index: {}]   ;;  %s6248_s15 = inlined_call_operand.vmem [shape: f32[4,1,8], index: 15, kind: input, shape index: {}]   ;;  %s6249_s16 = inlined_call_operand.vmem [shape: bf16[4,32,8], index: 16, kind: input, shape index: {}]   ;;  %s6250_s17 = inlined_call_operand.vmem [shape: f32[4,1,8], index: 17, kind: input, shape index: {}]   ;;  %s6251_s18 = inlined_call_operand.vmem [shape: bf16[4,32,8], index: 18, kind: input, shape index: {}]   ;;  %s6252_s19 = inlined_call_operand.vmem [shape: f32[4,1,8], index: 19, kind: input, shape index: {}]   ;;  %s6253_s20 = inlined_call_operand.vmem [shape: bf16[4,8,32], index: 20, kind: input, shape index: {}]   ;;  %s6254_s21 = inlined_call_operand.vmem [shape: f32[1,32], index: 21, kind: input, shape index: {}]   ;;  %s6255_s22 = inlined_call_operand.vmem [shape: f32[1,32], index: 22, kind: input, shape index: {}]   ;;  %s6256_s23 = inlined_call_operand.vmem [shape: f32[1,32], index: 23, kind: input, shape index: {}]   ;;  %s6257_s24 = inlined_call_operand.vmem [shape: bf16[32,128], index: 24, kind: input, shape index: {}]   ;;  %s6258_s25 = inlined_call_operand.vmem [shape: f32[1,128], index: 25, kind: input, shape index: {}]   ;;  %s6259_s26 = inlined_call_operand.vmem [shape: bf16[128,32], index: 26, kind: input, shape index: {}]   ;;  %s6260_s27 = inlined_call_operand.vmem [shape: f32[1,32], index: 27, kind: input, shape index: {}]   ;;  %s6261_s28 = inlined_call_operand.hbm [shape: f32[16,32], index: 28, kind: output, shape index: {}]  }
   0x1   :  { %6270 = sst [smem:[#allocation5_spill]] %s6233_s0 }
   0x2   :  { %6271 = sst [smem:[#allocation6_spill]] %s6234_s1 }
   0x3   :  { %6272 = sst [smem:[#allocation7_spill]] %s6235_s2 }
   0x4   :  { %6273 = sst [smem:[#allocation8_spill]] %s6236_s3 }
   0x5   :  { %6274 = sst [smem:[#allocation9_spill]] %s6237_s4 }
   0x6   :  { %6275 = sst [smem:[#allocation10_spill]] %s6238_s5 }
   0x7   :  { %6276 = sst [smem:[#allocation11_spill]] %s6239_s6 }
   0x8   :  { %6277 = sst [smem:[#allocation12_spill]] %s6240_s7 }
   0x9   :  { %6278 = sst [smem:[#allocation13_spill]] %s6241_s8 }
   0xa   :  { %6279 = sst [smem:[#allocation14_spill]] %s6242_s9 }
   0xb   :  { %6280 = sst [smem:[#allocation15_spill]] %s6243_s10 }
   0xc   :  { %6281 = sst [smem:[#allocation16_spill]] %s6244_s11 }
   0xd   :  { %6282 = sst [smem:[#allocation17_spill]] %s6245_s12 }
   0xe   :  { %s6283_s9 = sld [smem:[#allocation5_spill]]  ;;  %vm100_vm0 = vcmask 261120  }
  0x14   :  { %v91_v0 = vld [vmem:[%s6283_s9] sm:$0xff]  ;;  %v92_v1 = vld [vmem:[%s6283_s9 + $0x8] sm:$0xff] }
  0x15   :  { %v5402_v2 = vmul.f32 0.1, %v91_v0  ;;  %v5404_v3 = vmul.f32 0.1, %v92_v1 }
  0x17   :  { %v101_v4 = vsel %vm100_vm0, %v5402_v2, 0.0  ;;  %v104_v5 = vsel %vm100_vm0, %v5404_v3, 0.0 }
  0x18   :  { %102 = vadd.xlane.f32.xlu0 %v101_v4 }
  0x1c   :  { %105 = vadd.xlane.f32.xlu0 %v104_v5 }
  0x1d   :  { %33 = vsyncpa [#allocation3], 0  ;;  %s6284_s0 = sld [smem:[#allocation9_spill]]  ;;  %v5246_v18 = vmov 0.0   ;;  %vm5247_vm1 = vmmov 0   ;;  %vm966_vm2 = vcmask 64512  }
  0x1e   :  { %4621 = vmatprep.subr.bf16.mxu0 %v5246_v18  ;;  %4645 = vmatprep.subr.bf16.mxu1 %v5246_v18  ;;  %s6285_s5 = sld [smem:[#allocation7_spill]]  ;;  %vm1434_vm3 = vcmask 1043456   ;;  %vm3367_vm4 = vcmask 1041408   ;;  %vm3267_vm5 = vcmask 31744  }
  0x1f   :  { %4625 = vmatprep.mubr.msk.bf16.mxu0 %vm5247_vm1, %v5246_v18  ;;  %4649 = vmatprep.mubr.msk.bf16.mxu1 %vm5247_vm1, %v5246_v18  ;;  %s6286_s3 = sld [smem:[#allocation8_spill]] }
  0x20   :  { %s6287_s11 = sld [smem:[#allocation11_spill]] }
  0x21   :  { %s6288_s7 = sld [smem:[#allocation13_spill]] }
  0x22   :  { %s6289_s2 = sld [smem:[#allocation12_spill]] }
  0x23   :  { %v5086_v16 = vld [vmem:[%s6284_s0 + $0x8] sm:$0xff]   ;;  %v5087_v17 = vld [vmem:[%s6284_s0 + $0x18] sm:$0xff]   ;;  %v5088_v19 = vld [vmem:[%s6284_s0] sm:$0xff]   ;;  %s6290_s4 = sld [smem:[#allocation10_spill]] }
  0x24   :  { %4622 = vmatpush3.bf16.msra.mxu0 %v5086_v16  ;;  %4646 = vmatpush3.bf16.msra.mxu1 %v5087_v17  ;;  %v5089_v20 = vld [vmem:[%s6284_s0 + $0x10] sm:$0xff]   ;;  %v4204_v29 = vld [vmem:[%s6285_s5] ss:$0 sm:$0xff]  ;;  %v5099_v47 = vld [vmem:[%s6284_s0 + $0x38] sm:$0xff]   ;;  %s6291_s5 = sld [smem:[#allocation14_spill]] }
  0x25   :  { %4623 = vmatprep.subr.bf16.mxu0 %v5246_v18  ;;  %4647 = vmatprep.subr.bf16.mxu1 %v5246_v18  ;;  %v4205_v33 = vld [vmem:[%s6286_s3] ss:$0 sm:$0xff]  ;;  %v5101_v49 = vld [vmem:[%s6284_s0 + $0x30] sm:$0xff]   ;;  %v5102_v50 = vld [vmem:[%s6284_s0 + $0x28] sm:$0xff]   ;;  %s6292_s10 = sld [smem:[#allocation15_spill]] }
  0x26   :  { %v5090_v37 = vld [vmem:[%s6287_s11 + $0x8] sm:$0xff]   ;;  %v5092_v40 = vld [vmem:[%s6287_s11] sm:$0xff]   ;;  %v5098_v46 = vld [vmem:[%s6287_s11 + $0x18] sm:$0xff]   ;;  %s6293_s9 = sld [smem:[#allocation16_spill]] }
  0x27   :  { %v5091_v38 = vld [vmem:[%s6288_s7 + $0x18] sm:$0xff]   ;;  %v5093_v41 = vld [vmem:[%s6288_s7 + $0x10] sm:$0xff]   ;;  %v5094_v42 = vld [vmem:[%s6288_s7 + $0x8] sm:$0xff]   ;;  %s6295_s3 = sld [smem:[#allocation17_spill]] }
  0x28   :  { %4624 = vmatpush3.bf16.msra.mxu0 %v5088_v19  ;;  %4648 = vmatpush3.bf16.msra.mxu1 %v5089_v20  ;;  %v5095_v43 = vld [vmem:[%s6287_s11 + $0x28] sm:$0xff]   ;;  %v5096_v44 = vld [vmem:[%s6288_s7] sm:$0xff]   ;;  %v5100_v48 = vld [vmem:[%s6287_s11 + $0x10] sm:$0xff]  }
  0x29   :  { %4629 = vmatprep.subr.bf16.mxu0 %v5246_v18  ;;  %4661 = vmatprep.subr.bf16.mxu1 %v5246_v18  ;;  %v5097_v45 = vld [vmem:[%s6287_s11 + $0x20] sm:$0xff]   ;;  %v5103_v51 = vld [vmem:[%s6288_s7 + $0x38] sm:$0xff]   ;;  %v5105_v53 = vld [vmem:[%s6288_s7 + $0x30] sm:$0xff]  }
  0x2a   :  { %v5104_v52 = vld [vmem:[%s6284_s0 + $0x20] sm:$0xff]   ;;  %v5106_v54 = vld [vmem:[%s6288_s7 + $0x28] sm:$0xff]   ;;  %v5108_v56 = vld [vmem:[%s6287_s11 + $0x38] sm:$0xff]  }
  0x2b   :  { %v5107_v55 = vld [vmem:[%s6288_s7 + $0x20] sm:$0xff]   ;;  %v5109_v57 = vld [vmem:[%s6287_s11 + $0x30] sm:$0xff]   ;;  %s6294_s11 = sld [smem:[#allocation6_spill]] }
  0x2c   :  { %v4210_v4 = vld [vmem:[%s6289_s2] ss:$0 sm:$0xff] }
  0x2d   :  { %v4206_v5 = vld [vmem:[%s6290_s4] ss:$0 sm:$0xff] }
  0xa1   :  { %v103_v6 = vpop.xlane.xlu0 %102 }
  0xa2   :  { %v108_v7 = vmul.f32 0.03125, %v103_v6 }
  0xa4   :  { %v110_v8 = vsub.f32 %v5402_v2, %v108_v7 }
  0xa5   :  { %v106_v9 = vpop.xlane.xlu0 %105 }
  0xa6   :  { %v109_v10 = vmul.f32 0.03125, %v106_v9  ;;  %v112_v11 = vmul.f32 %v110_v8, %v110_v8 }
  0xa8   :  { %v111_v12 = vsub.f32 %v5404_v3, %v109_v10  ;;  %v114_v13 = vsel %vm100_vm0, %v112_v11, 0.0 }
  0xa9   :  { %115 = vadd.xlane.f32.xlu1 %v114_v13 }
  0xaa   :  { %v113_v14 = vmul.f32 %v111_v12, %v111_v12 }
  0xac   :  { %v117_v15 = vsel %vm100_vm0, %v113_v14, 0.0 }
  0xad   :  { %118 = vadd.xlane.f32.xlu1 %v117_v15 }
 0x132   :  { %v116_v21 = vpop.xlane.xlu1 %115 }
 0x133   :  { %v120_v22 = vmul.f32 0.03125, %v116_v21 }
 0x135   :  { %v122_v23 = vadd.f32 1e-05, %v120_v22 }
 0x136   :  { %v119_v24 = vpop.xlane.xlu1 %118 }
 0x137   :  { %5144 = vrsqrt.f32 %v122_v23  ;;  %v121_v25 = vmul.f32 0.03125, %v119_v24 }
 0x139   :  { %v123_v26 = vadd.f32 1e-05, %v121_v25 }
 0x13b   :  { %5146 = vrsqrt.f32 %v123_v26 }
 0x144   :  { %v5145_v27 = vpop.eup %5144 }
 0x145   :  { %v126_v28 = vmul.f32 %v5145_v27, %v110_v8 }
 0x147   :  { %v134_v31 = vmul.f32 %v4204_v29, %v126_v28 }
 0x148   :  { %v5147_v30 = vpop.eup %5146 }
 0x149   :  { %v127_v32 = vmul.f32 %v5147_v30, %v111_v12  ;;  %v142_v35 = vadd.f32 %v4205_v33, %v134_v31 }
 0x14b   :  { %v135_v34 = vmul.f32 %v4204_v29, %v127_v32 }
 0x14d   :  { %v143_v36 = vadd.f32 %v4205_v33, %v135_v34  ;;  %v4232_v34 = vld [vmem:[%s6289_s2 + $0x1] ss:$0 sm:$0xff] }
 0x14f   :  { %v5448_v39 = vpack.c.bf16 %v143_v36, %v142_v35  ;;  %v4223_v36 = vld [vmem:[%s6290_s4 + $0x1] ss:$0 sm:$0xff] }
 0x151   :  { %4626 = vmatmul.mubr.msk.bf16.vlgmr.msra.gmra.mxu0 %vm100_vm0, %v5448_v39  ;;  %4650 = vmatmul.mubr.msk.bf16.vlgmr.msra.gmra.mxu1 %vm100_vm0, %v5448_v39 }
 0x152   :  { %4630 = vmatpush3.bf16.msra.mxu0 %v5090_v37  ;;  %4662 = vmatpush3.bf16.msra.mxu1 %v5091_v38 }
 0x153   :  { %4631 = vmatprep.subr.bf16.mxu0 %v5246_v18  ;;  %4663 = vmatprep.subr.bf16.mxu1 %v5246_v18 }
 0x154   :  { %4633 = vmatprep.mubr.msk.bf16.mxu0 %vm5247_vm1, %v5246_v18  ;;  %4665 = vmatprep.mubr.msk.bf16.mxu1 %vm5247_vm1, %v5246_v18 }
 0x156   :  { %4632 = vmatpush3.bf16.msra.mxu0 %v5092_v40  ;;  %4664 = vmatpush3.bf16.msra.mxu1 %v5093_v41  ;;  %v4259_v40 = vld [vmem:[%s6289_s2 + $0x2] ss:$0 sm:$0xff] }
 0x157   :  { %4637 = vmatprep.subr.bf16.mxu0 %v5246_v18  ;;  %4677 = vmatprep.subr.bf16.mxu1 %v5246_v18 }
 0x159   :  { %4634 = vmatmul.mubr.msk.bf16.vlgmr.msra.gmra.mxu0 %vm100_vm0, %v5448_v39  ;;  %4666 = vmatmul.mubr.msk.bf16.vlgmr.msra.gmra.mxu1 %vm100_vm0, %v5448_v39 }
 0x15a   :  { %4638 = vmatpush3.bf16.msra.mxu0 %v5094_v42  ;;  %4678 = vmatpush3.bf16.msra.mxu1 %v5095_v43 }
 0x15b   :  { %4639 = vmatprep.subr.bf16.mxu0 %v5246_v18  ;;  %4679 = vmatprep.subr.bf16.mxu1 %v5246_v18 }
 0x15c   :  { %4641 = vmatprep.mubr.msk.bf16.mxu0 %vm5247_vm1, %v5246_v18  ;;  %4681 = vmatprep.mubr.msk.bf16.mxu1 %vm5247_vm1, %v5246_v18 }
 0x15e   :  { %4640 = vmatpush3.bf16.msra.mxu0 %v5096_v44  ;;  %4680 = vmatpush3.bf16.msra.mxu1 %v5097_v45 }
 0x15f   :  { %4653 = vmatprep.subr.bf16.mxu0 %v5246_v18  ;;  %4693 = vmatprep.subr.bf16.mxu1 %v5246_v18 }
 0x161   :  { %4642 = vmatmul.mubr.msk.bf16.vlgmr.msra.gmra.mxu0 %vm100_vm0, %v5448_v39  ;;  %4682 = vmatmul.mubr.msk.bf16.vlgmr.msra.gmra.mxu1 %vm100_vm0, %v5448_v39 }
 0x162   :  { %4654 = vmatpush3.bf16.msra.mxu0 %v5098_v46  ;;  %4694 = vmatpush3.bf16.msra.mxu1 %v5099_v47 }
 0x163   :  { %4655 = vmatprep.subr.bf16.mxu0 %v5246_v18  ;;  %4695 = vmatprep.subr.bf16.mxu1 %v5246_v18 }
 0x164   :  { %4657 = vmatprep.mubr.msk.bf16.mxu0 %vm5247_vm1, %v5246_v18  ;;  %4697 = vmatprep.mubr.msk.bf16.mxu1 %vm5247_vm1, %v5246_v18 }
 0x166   :  { %4656 = vmatpush3.bf16.msra.mxu0 %v5100_v48  ;;  %4696 = vmatpush3.bf16.msra.mxu1 %v5101_v49 }
 0x167   :  { %4669 = vmatprep.subr.bf16.mxu0 %v5246_v18  ;;  %4709 = vmatprep.subr.bf16.mxu1 %v5246_v18 }
 0x169   :  { %4658 = vmatmul.mubr.msk.bf16.vlgmr.msra.gmra.mxu0 %vm100_vm0, %v5448_v39  ;;  %4698 = vmatmul.mubr.msk.bf16.vlgmr.msra.gmra.mxu1 %vm100_vm0, %v5448_v39 }
 0x16a   :  { %4670 = vmatpush3.bf16.msra.mxu0 %v5102_v50  ;;  %4710 = vmatpush3.bf16.msra.mxu1 %v5103_v51 }
 0x16b   :  { %4671 = vmatprep.subr.bf16.mxu0 %v5246_v18  ;;  %4711 = vmatprep.subr.bf16.mxu1 %v5246_v18 }
 0x16c   :  { %4673 = vmatprep.mubr.msk.bf16.mxu0 %vm5247_vm1, %v5246_v18  ;;  %4713 = vmatprep.mubr.msk.bf16.mxu1 %vm5247_vm1, %v5246_v18 }
 0x16e   :  { %4672 = vmatpush3.bf16.msra.mxu0 %v5104_v52  ;;  %4712 = vmatpush3.bf16.msra.mxu1 %v5105_v53 }
 0x16f   :  { %4685 = vmatprep.subr.bf16.mxu0 %v5246_v18  ;;  %4723 = vmatprep.subr.bf16.mxu1 %v5246_v18 }
 0x171   :  { %4674 = vmatmul.mubr.msk.bf16.vlgmr.msra.gmra.mxu0 %vm100_vm0, %v5448_v39  ;;  %4714 = vmatmul.mubr.msk.bf16.vlgmr.msra.gmra.mxu1 %vm100_vm0, %v5448_v39 }
 0x172   :  { %4686 = vmatpush3.bf16.msra.mxu0 %v5106_v54  ;;  %4689 = vmatprep.mubr.msk.bf16.mxu0 %vm5247_vm1, %v5246_v18 }
 0x173   :  { %4687 = vmatprep.subr.bf16.mxu0 %v5246_v18  ;;  %4725 = vmatprep.mubr.msk.bf16.mxu1 %vm5247_vm1, %v5246_v18 }
 0x176   :  { %4688 = vmatpush3.bf16.msra.mxu0 %v5107_v55  ;;  %v4250_v55 = vld [vmem:[%s6290_s4 + $0x2] ss:$0 sm:$0xff] }
 0x177   :  { %4701 = vmatprep.subr.bf16.mxu0 %v5246_v18 }
 0x179   :  { %4690 = vmatmul.mubr.msk.bf16.vlgmr.msra.gmra.mxu0 %vm100_vm0, %v5448_v39 }
 0x17a   :  { %4702 = vmatpush3.bf16.msra.mxu0 %v5108_v56  ;;  %4705 = vmatprep.mubr.msk.bf16.mxu0 %vm5247_vm1, %v5246_v18 }
 0x17b   :  { %4703 = vmatprep.subr.bf16.mxu0 %v5246_v18 }
 0x17e   :  { %4704 = vmatpush3.bf16.msra.mxu0 %v5109_v57 }
 0x17f   :  { %4717 = vmatprep.subr.bf16.mxu0 %v5246_v18 }
 0x181   :  { %4706 = vmatmul.mubr.msk.bf16.vlgmr.msra.gmra.mxu0 %vm100_vm0, %v5448_v39 }
 0x182   :  { %4719 = vmatprep.mubr.msk.bf16.mxu0 %vm5247_vm1, %v5246_v18 }
 0x211   :  { %v205_v58 = vpop.f32.mrf.mxu0  ;;  %v401_v59 = vpop.f32.mrf.mxu1 }
 0x212   :  { %v206_v11 = vadd.f32 %v4206_v5, %v205_v58  ;;  %v402_v43 = vadd.f32 %v4223_v36, %v401_v59 }
 0x213   :  { %v4627_v60 = vpop.f32.mrf.mxu0  ;;  %v4651_v61 = vpop.f32.mrf.mxu1 }
 0x214   :  { %v212_v20 = vmul.f32 0.35355338, %v206_v11  ;;  %v408_v52 = vmul.f32 0.35355338, %v402_v43 }
 0x215   :  { %v208_v62 = vpop.f32.mrf.mxu0  ;;  %v404_v63 = vpop.f32.mrf.mxu1 }
 0x216   :  { %v209_v21 = vadd.f32 %v4206_v5, %v208_v62  ;;  %v942_v28 = vpack.c.bf16 %v212_v20, %v212_v20  ;;  %v405_v53 = vadd.f32 %v4223_v36, %v404_v63 }
 0x217   :  { %v4628_v0 = vpop.f32.mrf.mxu0  ;;  %v4652_v1 = vpop.f32.mrf.mxu1 }
 0x218   :  { %v213_v29 = vmul.f32 0.35355338, %v209_v21  ;;  %v944_v0 = vpack.c.bf16 %v408_v52, %v408_v52  ;;  %v409_v1 = vmul.f32 0.35355338, %v405_v53 }
 0x219   :  { %v271_v6 = vpop.f32.mrf.mxu0  ;;  %v5578_v7 = vpop.f32.mrf.mxu1 }
 0x21a   :  { %v272_v8 = vadd.f32 %v4210_v4, %v271_v6  ;;  %v943_v35 = vpack.c.bf16 %v213_v29, %v213_v29  ;;  %v945_v11 = vpack.c.bf16 %v409_v1, %v409_v1  ;;  %v4214_v29 = vld [vmem:[%s6291_s5] ss:$0 sm:$0xff] }
 0x21b   :  { %v4635_v9 = vpop.f32.mrf.mxu0  ;;  %v4667_v10 = vpop.f32.mrf.mxu1 }
 0x21c   :  { %v950_v12 = vpack.c.bf16 %v272_v8, %v272_v8 }
 0x21d   :  { %v274_v13 = vpop.f32.mrf.mxu0  ;;  %v5580_v14 = vpop.f32.mrf.mxu1 }
 0x21e   :  { %v971_v15 = vsel %vm966_vm2, %v950_v12, 0  ;;  %v275_v16 = vadd.f32 %v4210_v4, %v274_v13 }
 0x21f   :  { %v4636_v17 = vpop.f32.mrf.mxu0  ;;  %v4668_v19 = vpop.f32.mrf.mxu1  ;;  %4718 = vmatpush3.bf16.xpose.msra.mxu0 %v971_v15 }
 0x220   :  { %v951_v22 = vpack.c.bf16 %v275_v16, %v275_v16  ;;  %4729 = vmatprep.subr.bf16.mxu0 %v5246_v18 }
 0x221   :  { %v5584_v23 = vpop.f32.mrf.mxu0  ;;  %v669_v24 = vpop.f32.mrf.mxu1 }
 0x222   :  { %v1017_v25 = vsel %vm966_vm2, %v951_v22, 0  ;;  %v670_v47 = vadd.f32 %v4259_v40, %v669_v24  ;;  %v4286_v24 = vld [vmem:[%s6289_s2 + $0x3] ss:$0 sm:$0xff] }
 0x223   :  { %v4643_v26 = vpop.f32.mrf.mxu0  ;;  %v4683_v27 = vpop.f32.mrf.mxu1  ;;  %4724 = vmatpush3.bf16.xpose.msra.mxu1 %v1017_v25 }
 0x224   :  { %4735 = vmatprep.subr.bf16.mxu1 %v5246_v18  ;;  %v954_v58 = vpack.c.bf16 %v670_v47, %v670_v47  ;;  %v4277_v26 = vld [vmem:[%s6290_s4 + $0x3] ss:$0 sm:$0xff] }
 0x225   :  { %v5588_v30 = vpop.f32.mrf.mxu0  ;;  %v672_v31 = vpop.f32.mrf.mxu1 }
 0x226   :  { %4720 = vmatmul.mubr.msk.bf16.vlgmr.msra.gmra.mxu0 %vm966_vm2, %v942_v28  ;;  %v673_v59 = vadd.f32 %v4259_v40, %v672_v31  ;;  %v1155_v6 = vsel %vm966_vm2, %v954_v58, 0 }
 0x227   :  { %v4644_v32 = vpop.f32.mrf.mxu0  ;;  %v4684_v33 = vpop.f32.mrf.mxu1  ;;  %4731 = vmatprep.mubr.msk.bf16.mxu0 %vm5247_vm1, %v5246_v18 }
 0x228   :  { %v955_v8 = vpack.c.bf16 %v673_v59, %v673_v59 }
 0x229   :  { %v469_v37 = vpop.f32.mrf.mxu0  ;;  %v5599_v38 = vpop.f32.mrf.mxu1 }
 0x22a   :  { %v470_v39 = vadd.f32 %v4232_v34, %v469_v37  ;;  %4726 = vmatmul.mubr.msk.bf16.vlgmr.msra.gmra.mxu1 %vm966_vm2, %v943_v35  ;;  %v1201_v16 = vsel %vm966_vm2, %v955_v8, 0  ;;  %v802_v32 = vadd.f32 %v4277_v26, %v5599_v38  ;;  %v336_v35 = vadd.f32 %v4214_v29, %v5584_v23 }
 0x22b   :  { %v4659_v41 = vpop.f32.mrf.mxu0  ;;  %v4699_v42 = vpop.f32.mrf.mxu1  ;;  %4737 = vmatprep.mubr.msk.bf16.mxu1 %vm5247_vm1, %v5246_v18 }
 0x22c   :  { %v952_v44 = vpack.c.bf16 %v470_v39, %v470_v39  ;;  %v808_v40 = vmul.f32 0.35355338, %v802_v32  ;;  %v958_v43 = vpack.c.bf16 %v336_v35, %v336_v35 }
 0x22d   :  { %v472_v45 = vpop.f32.mrf.mxu0  ;;  %v5607_v46 = vpop.f32.mrf.mxu1 }
 0x22e   :  { %v1063_v48 = vsel %vm966_vm2, %v952_v44, 0  ;;  %v473_v49 = vadd.f32 %v4232_v34, %v472_v45  ;;  %v805_v41 = vadd.f32 %v4277_v26, %v5607_v46  ;;  %v339_v44 = vadd.f32 %v4214_v29, %v5588_v30 }
 0x22f   :  { %v4660_v50 = vpop.f32.mrf.mxu0  ;;  %v4700_v51 = vpop.f32.mrf.mxu1  ;;  %4730 = vmatpush3.bf16.xpose.msra.mxu0 %v1063_v48  ;;  %v948_v45 = vpack.c.bf16 %v808_v40, %v808_v40  ;;  %v1436_v23 = vsel %vm1434_vm3, %v958_v43, 0 }
 0x230   :  { %v953_v54 = vpack.c.bf16 %v473_v49, %v473_v49  ;;  %4741 = vmatprep.subr.bf16.mxu0 %v5246_v18  ;;  %v809_v47 = vmul.f32 0.35355338, %v805_v41  ;;  %v959_v48 = vpack.c.bf16 %v339_v44, %v339_v44 }
 0x231   :  { %v601_v56 = vpop.f32.mrf.mxu0  ;;  %v5614_v57 = vpop.f32.mrf.mxu1 }
 0x232   :  { %v1109_v60 = vsel %vm966_vm2, %v953_v54, 0  ;;  %v602_v63 = vadd.f32 %v4250_v55, %v601_v56  ;;  %v949_v46 = vpack.c.bf16 %v809_v47, %v809_v47  ;;  %v1482_v30 = vsel %vm1434_vm3, %v959_v48, 0 }
 0x233   :  { %v4675_v61 = vpop.f32.mrf.mxu0  ;;  %v4715_v62 = vpop.f32.mrf.mxu1  ;;  %4736 = vmatpush3.bf16.xpose.msra.mxu1 %v1109_v60 }
 0x234   :  { %4747 = vmatprep.subr.bf16.mxu1 %v5246_v18  ;;  %v608_v12 = vmul.f32 0.35355338, %v602_v63 }
 0x235   :  { %v604_v4 = vpop.f32.mrf.mxu0  ;;  %v5618_v5 = vpop.f32.mrf.mxu1 }
 0x236   :  { %4732 = vmatmul.mubr.msk.bf16.vlgmr.msra.gmra.mxu0 %vm966_vm2, %v944_v0  ;;  %v605_v13 = vadd.f32 %v4250_v55, %v604_v4  ;;  %v946_v19 = vpack.c.bf16 %v608_v12, %v608_v12 }
 0x237   :  { %v4676_v9 = vpop.f32.mrf.mxu0  ;;  %v4716_v10 = vpop.f32.mrf.mxu1  ;;  %4742 = vmatpush3.bf16.xpose.msra.mxu0 %v1155_v6  ;;  %4743 = vmatprep.mubr.msk.bf16.mxu0 %vm5247_vm1, %v5246_v18 }
 0x238   :  { %4753 = vmatprep.subr.bf16.mxu0 %v5246_v18  ;;  %v609_v20 = vmul.f32 0.35355338, %v605_v13 }
 0x239   :  { %v5625_v15 = vpop.f32.mrf.mxu0 }
 0x23a   :  { %4738 = vmatmul.mubr.msk.bf16.vlgmr.msra.gmra.mxu1 %vm966_vm2, %v945_v11  ;;  %v947_v25 = vpack.c.bf16 %v609_v20, %v609_v20 }
 0x23b   :  { %v4691_v17 = vpop.f32.mrf.mxu0  ;;  %4748 = vmatpush3.bf16.xpose.msra.mxu1 %v1201_v16  ;;  %4749 = vmatprep.mubr.msk.bf16.mxu1 %vm5247_vm1, %v5246_v18 }
 0x23c   :  { %4759 = vmatprep.subr.bf16.mxu1 %v5246_v18 }
 0x23d   :  { %v5632_v21 = vpop.f32.mrf.mxu0 }
 0x23e   :  { %4744 = vmatmul.mubr.msk.bf16.vlgmr.msra.gmra.mxu0 %vm966_vm2, %v946_v19 }
 0x23f   :  { %v4692_v22 = vpop.f32.mrf.mxu0  ;;  %4755 = vmatprep.mubr.msk.bf16.mxu0 %vm5247_vm1, %v5246_v18 }
 0x241   :  { %v869_v27 = vpop.f32.mrf.mxu0 }
 0x242   :  { %v870_v28 = vadd.f32 %v4286_v24, %v869_v27  ;;  %4750 = vmatmul.mubr.msk.bf16.vlgmr.msra.gmra.mxu1 %vm966_vm2, %v947_v25 }
 0x243   :  { %v4707_v31 = vpop.f32.mrf.mxu0  ;;  %4761 = vmatprep.mubr.msk.bf16.mxu1 %vm5247_vm1, %v5246_v18 }
 0x244   :  { %v956_v33 = vpack.c.bf16 %v870_v28, %v870_v28 }
 0x245   :  { %v872_v34 = vpop.f32.mrf.mxu0 }
 0x246   :  { %v1247_v36 = vsel %vm966_vm2, %v956_v33, 0  ;;  %v873_v37 = vadd.f32 %v4286_v24, %v872_v34 }
 0x247   :  { %v4708_v39 = vpop.f32.mrf.mxu0  ;;  %4754 = vmatpush3.bf16.xpose.msra.mxu0 %v1247_v36 }
 0x248   :  { %v957_v42 = vpack.c.bf16 %v873_v37, %v873_v37  ;;  %4765 = vmatprep.subr.bf16.mxu0 %v5246_v18 }
 0x24a   :  { %v1293_v38 = vsel %vm966_vm2, %v957_v42, 0 }
 0x24b   :  { %4760 = vmatpush3.bf16.xpose.msra.mxu1 %v1293_v38 }
 0x24c   :  { %4771 = vmatprep.subr.bf16.mxu1 %v5246_v18 }
 0x24e   :  { %4756 = vmatmul.mubr.msk.bf16.vlgmr.msra.gmra.mxu0 %vm966_vm2, %v948_v45 }
 0x24f   :  { %4766 = vmatpush3.bf16.msra.mxu0 %v1436_v23  ;;  %4767 = vmatprep.mubr.msk.bf16.mxu0 %vm5247_vm1, %v5246_v18 }
 0x250   :  { %4777 = vmatprep.subr.bf16.mxu0 %v5246_v18 }
 0x252   :  { %4762 = vmatmul.mubr.msk.bf16.vlgmr.msra.gmra.mxu1 %vm966_vm2, %v949_v46 }
 0x253   :  { %4772 = vmatpush3.bf16.msra.mxu1 %v1482_v30  ;;  %4773 = vmatprep.mubr.msk.bf16.mxu1 %vm5247_vm1, %v5246_v18 }
 0x254   :  { %4783 = vmatprep.subr.bf16.mxu1 %v5246_v18 }
 0x2e6   :  { %v1007_v49 = vpop.f32.mrf.mxu0 }
 0x2e7   :  { %v1335_v50 = vsel %vm966_vm2, %v1007_v49, -inf }
 0x2e8   :  { %1336 = vmax.xlane.f32.xlu0 %v1335_v50  ;;  %v4721_v51 = vpop.f32.mrf.mxu0 }
 0x2ea   :  { %v1010_v52 = vpop.f32.mrf.mxu0  ;;  %v1053_v53 = vpop.f32.mrf.mxu1 }
 0x2eb   :  { %v1338_v54 = vsel %vm966_vm2, %v1053_v53, -inf }
 0x2ec   :  { %1339 = vmax.xlane.f32.xlu1 %v1338_v54  ;;  %v4722_v55 = vpop.f32.mrf.mxu0  ;;  %v4727_v56 = vpop.f32.mrf.mxu1 }
 0x2ee   :  { %v1056_v58 = vpop.f32.mrf.mxu1 }
 0x2f0   :  { %v4728_v59 = vpop.f32.mrf.mxu1 }
 0x2f6   :  { %v1099_v60 = vpop.f32.mrf.mxu0 }
 0x2f7   :  { %v1341_v61 = vsel %vm966_vm2, %v1099_v60, -inf }
 0x2f8   :  { %1342 = vmax.xlane.f32.xlu0 %v1341_v61  ;;  %v4733_v62 = vpop.f32.mrf.mxu0 }
 0x2fa   :  { %v1102_v0 = vpop.f32.mrf.mxu0  ;;  %v1145_v1 = vpop.f32.mrf.mxu1 }
 0x2fb   :  { %v1344_v63 = vsel %vm966_vm2, %v1145_v1, -inf }
 0x2fc   :  { %1345 = vmax.xlane.f32.xlu1 %v1344_v63  ;;  %v4734_v4 = vpop.f32.mrf.mxu0  ;;  %v4739_v6 = vpop.f32.mrf.mxu1 }
 0x2fe   :  { %v1148_v8 = vpop.f32.mrf.mxu1  ;;  %v1191_v9 = vpop.f32.mrf.mxu0 }
 0x2ff   :  { %v1347_v10 = vsel %vm966_vm2, %v1191_v9, -inf }
 0x300   :  { %v4740_v11 = vpop.f32.mrf.mxu1  ;;  %1348 = vmax.xlane.f32.xlu0 %v1347_v10  ;;  %v4745_v12 = vpop.f32.mrf.mxu0 }
 0x302   :  { %v1194_v13 = vpop.f32.mrf.mxu0  ;;  %v1237_v16 = vpop.f32.mrf.mxu1 }
 0x303   :  { %v1350_v17 = vsel %vm966_vm2, %v1237_v16, -inf }
 0x304   :  { %1351 = vmax.xlane.f32.xlu1 %v1350_v17  ;;  %v4746_v19 = vpop.f32.mrf.mxu0  ;;  %v4751_v20 = vpop.f32.mrf.mxu1 }
 0x305   :  { %v4241_v20 = vld [vmem:[%s6291_s5 + $0x1] ss:$0 sm:$0xff] }
 0x306   :  { %v1240_v22 = vpop.f32.mrf.mxu1 }
 0x307   :  { %v536_v22 = vadd.f32 %v4241_v20, %v5578_v7 }
 0x308   :  { %v4752_v24 = vpop.f32.mrf.mxu1 }
 0x30e   :  { %v1283_v25 = vpop.f32.mrf.mxu0 }
 0x30f   :  { %v1353_v26 = vsel %vm966_vm2, %v1283_v25, -inf }
 0x310   :  { %1354 = vmax.xlane.f32.xlu0 %v1353_v26  ;;  %v4757_v27 = vpop.f32.mrf.mxu0  ;;  %v539_v26 = vadd.f32 %v4241_v20, %v5580_v14 }
 0x312   :  { %v1286_v28 = vpop.f32.mrf.mxu0  ;;  %v1329_v29 = vpop.f32.mrf.mxu1 }
 0x313   :  { %v1356_v31 = vsel %vm966_vm2, %v1329_v29, -inf }
 0x314   :  { %1357 = vmax.xlane.f32.xlu1 %v1356_v31  ;;  %v4758_v32 = vpop.f32.mrf.mxu0  ;;  %v4763_v33 = vpop.f32.mrf.mxu1 }
 0x315   :  { %v961_v33 = vpack.c.bf16 %v539_v26, %v539_v26 }
 0x316   :  { %v1332_v34 = vpop.f32.mrf.mxu1 }
 0x317   :  { %v1574_v14 = vsel %vm1434_vm3, %v961_v33, 0 }
 0x318   :  { %v4764_v35 = vpop.f32.mrf.mxu1 }
 0x371   :  { %v1337_v36 = vpop.xlane.xlu0 %1336 }
 0x372   :  { %v1359_v37 = vsub.f32 %v1007_v49, %v1337_v36  ;;  %v4268_v36 = vld [vmem:[%s6291_s5 + $0x2] ss:$0 sm:$0xff] }
 0x374   :  { %v1367_v39 = vmul.f32 1.442695, %v1359_v37 }
 0x375   :  { %v1340_v40 = vpop.xlane.xlu1 %1339 }
 0x376   :  { %5148 = vpow2.f32 %v1367_v39  ;;  %v1360_v41 = vsub.f32 %v1053_v53, %v1340_v40  ;;  %v736_v39 = vadd.f32 %v4268_v36, %v5625_v15 }
 0x378   :  { %v1369_v42 = vmul.f32 1.442695, %v1360_v41 }
 0x37a   :  { %5150 = vpow2.f32 %v1369_v42  ;;  %v962_v42 = vpack.c.bf16 %v736_v39, %v736_v39 }
 0x381   :  { %v1343_v43 = vpop.xlane.xlu0 %1342 }
 0x382   :  { %v1361_v44 = vsub.f32 %v1099_v60, %v1343_v43  ;;  %v739_v43 = vadd.f32 %v4268_v36, %v5632_v21 }
 0x383   :  { %v5149_v38 = vpop.eup %5148 }
 0x384   :  { %v1371_v45 = vmul.f32 1.442695, %v1361_v44  ;;  %v1383_v47 = vsel %vm966_vm2, %v5149_v38, 0.0 }
 0x385   :  { %v1346_v23 = vpop.xlane.xlu1 %1345  ;;  %1384 = vadd.xlane.f32.xlu0 %v1383_v47 }
 0x386   :  { %5152 = vpow2.f32 %v1371_v45  ;;  %v1362_v48 = vsub.f32 %v1145_v1, %v1346_v23 }
 0x387   :  { %v5151_v46 = vpop.eup %5150 }
 0x388   :  { %v1373_v30 = vmul.f32 1.442695, %v1362_v48  ;;  %v1386_v49 = vsel %vm966_vm2, %v5151_v46, 0.0  ;;  %v1620_v48 = vsel %vm1434_vm3, %v962_v42, 0 }
 0x389   :  { %1387 = vadd.xlane.f32.xlu1 %v1386_v49  ;;  %v1349_v50 = vpop.xlane.xlu0 %1348 }
 0x38a   :  { %5154 = vpow2.f32 %v1373_v30  ;;  %v1363_v51 = vsub.f32 %v1191_v9, %v1349_v50 }
 0x38c   :  { %v1375_v52 = vmul.f32 1.442695, %v1363_v51 }
 0x38d   :  { %v1352_v53 = vpop.xlane.xlu1 %1351 }
 0x38e   :  { %5156 = vpow2.f32 %v1375_v52  ;;  %v1364_v54 = vsub.f32 %v1237_v16, %v1352_v53 }
 0x390   :  { %v1377_v55 = vmul.f32 1.442695, %v1364_v54 }
 0x392   :  { %5158 = vpow2.f32 %v1377_v55 }
 0x393   :  { %v5677_v56 = vpop.eup %5152 }
 0x394   :  { %v1389_v58 = vsel %vm966_vm2, %v5677_v56, 0.0 }
 0x395   :  { %1390 = vadd.xlane.f32.xlu0 %v1389_v58 }
 0x397   :  { %v5681_v59 = vpop.eup %5154 }
 0x398   :  { %v1392_v60 = vsel %vm966_vm2, %v5681_v59, 0.0 }
 0x399   :  { %1393 = vadd.xlane.f32.xlu1 %v1392_v60  ;;  %v1355_v61 = vpop.xlane.xlu0 %1354 }
 0x39a   :  { %v1365_v62 = vsub.f32 %v1283_v25, %v1355_v61  ;;  %v960_v25 = vpack.c.bf16 %v536_v22, %v536_v22 }
 0x39b   :  { %v5685_v0 = vpop.eup %5156 }
 0x39c   :  { %v1379_v1 = vmul.f32 1.442695, %v1365_v62  ;;  %v1395_v63 = vsel %vm966_vm2, %v5685_v0, 0.0  ;;  %v1528_v32 = vsel %vm1434_vm3, %v960_v25, 0 }
 0x39d   :  { %v1358_v4 = vpop.xlane.xlu1 %1357  ;;  %1396 = vadd.xlane.f32.xlu0 %v1395_v63 }
 0x39e   :  { %5160 = vpow2.f32 %v1379_v1  ;;  %v1366_v6 = vsub.f32 %v1329_v29, %v1358_v4 }
 0x39f   :  { %v5689_v8 = vpop.eup %5158 }
 0x3a0   :  { %v1381_v9 = vmul.f32 1.442695, %v1366_v6  ;;  %v1398_v10 = vsel %vm966_vm2, %v5689_v8, 0.0  ;;  %v1801_v6 = vld [vmem:[%s6292_s10] sm:$0xf] }
 0x3a1   :  { %1399 = vadd.xlane.f32.xlu1 %v1398_v10 }
 0x3a2   :  { %5162 = vpow2.f32 %v1381_v9  ;;  %v4315_v9 = vld [vmem:[%s6292_s10 + $0x4] sm:$0xf] }
 0x3a3   :  { %v1809_v10 = vsel %vm1434_vm3, %v4315_v9, 0 }
 0x3ab   :  { %v5693_v11 = vpop.eup %5160 }
 0x3ac   :  { %v1401_v12 = vsel %vm966_vm2, %v5693_v11, 0.0 }
 0x3ad   :  { %1402 = vadd.xlane.f32.xlu0 %v1401_v12 }
 0x3af   :  { %v5697_v13 = vpop.eup %5162 }
 0x3b0   :  { %v1404_v16 = vsel %vm966_vm2, %v5697_v13, 0.0 }
 0x3b1   :  { %1405 = vadd.xlane.f32.xlu1 %v1404_v16 }
 0x40e   :  { %v1385_v17 = vpop.xlane.xlu0 %1384 }
 0x40f   :  { %5164 = vrcp.f32 %v1385_v17 }
 0x412   :  { %v1388_v19 = vpop.xlane.xlu1 %1387 }
 0x413   :  { %5166 = vrcp.f32 %v1388_v19 }
 0x41c   :  { %v5165_v24 = vpop.eup %5164 }
 0x41d   :  { %v1415_v27 = vmul.f32 %v5165_v24, %v5149_v38  ;;  %v4295_v38 = vld [vmem:[%s6291_s5 + $0x3] ss:$0 sm:$0xff] }
 0x41e   :  { %v1391_v28 = vpop.xlane.xlu0 %1390  ;;  %v936_v23 = vadd.f32 %v4295_v38, %v5614_v57  ;;  %v939_v50 = vadd.f32 %v4295_v38, %v5618_v5 }
 0x41f   :  { %5168 = vrcp.f32 %v1391_v28  ;;  %v1423_v29 = vpack.c.bf16 %v1415_v27, %v1415_v27 }
 0x420   :  { %v5167_v31 = vpop.eup %5166  ;;  %v964_v49 = vpack.c.bf16 %v936_v23, %v936_v23 }
 0x421   :  { %4768 = vmatmul.mubr.msk.bf16.vlgmr.msra.gmra.mxu0 %vm966_vm2, %v1423_v29  ;;  %v1416_v34 = vmul.f32 %v5167_v31, %v5151_v46  ;;  %v963_v46 = vpack.c.bf16 %v739_v43, %v739_v43  ;;  %v4318_v29 = vld [vmem:[%s6292_s10 + $0x8] sm:$0xf] }
 0x422   :  { %4778 = vmatpush3.bf16.msra.mxu0 %v1528_v32  ;;  %v1394_v35 = vpop.xlane.xlu1 %1393  ;;  %4779 = vmatprep.mubr.msk.bf16.mxu0 %vm5247_vm1, %v5246_v18  ;;  %v1712_v55 = vsel %vm1434_vm3, %v964_v49, 0 }
 0x423   :  { %5170 = vrcp.f32 %v1394_v35  ;;  %v1424_v7 = vpack.c.bf16 %v1416_v34, %v1416_v34  ;;  %4789 = vmatprep.subr.bf16.mxu0 %v5246_v18  ;;  %v1666_v57 = vsel %vm1434_vm3, %v963_v46, 0  ;;  %v1906_v34 = vsel %vm1434_vm3, %v4318_v29, 0 }
 0x425   :  { %4774 = vmatmul.mubr.msk.bf16.vlgmr.msra.gmra.mxu1 %vm966_vm2, %v1424_v7 }
 0x426   :  { %4784 = vmatpush3.bf16.msra.mxu1 %v1574_v14  ;;  %v1397_v37 = vpop.xlane.xlu0 %1396  ;;  %4785 = vmatprep.mubr.msk.bf16.mxu1 %vm5247_vm1, %v5246_v18 }
 0x427   :  { %5172 = vrcp.f32 %v1397_v37  ;;  %4795 = vmatprep.subr.bf16.mxu1 %v5246_v18 }
 0x42a   :  { %v1400_v40 = vpop.xlane.xlu1 %1399 }
 0x42b   :  { %5174 = vrcp.f32 %v1400_v40 }
 0x42c   :  { %v5169_v41 = vpop.eup %5168 }
 0x42d   :  { %v1417_v44 = vmul.f32 %v5169_v41, %v5677_v56  ;;  %v965_v56 = vpack.c.bf16 %v939_v50, %v939_v50 }
 0x42f   :  { %v1425_v45 = vpack.c.bf16 %v1417_v44, %v1417_v44  ;;  %v1758_v60 = vsel %vm1434_vm3, %v965_v56, 0 }
 0x430   :  { %v5171_v47 = vpop.eup %5170 }
 0x431   :  { %4780 = vmatmul.mubr.msk.bf16.vlgmr.msra.gmra.mxu0 %vm966_vm2, %v1425_v45  ;;  %v1418_v15 = vmul.f32 %v5171_v47, %v5681_v59 }
 0x432   :  { %4790 = vmatpush3.bf16.msra.mxu0 %v1620_v48  ;;  %4791 = vmatprep.mubr.msk.bf16.mxu0 %vm5247_vm1, %v5246_v18 }
 0x433   :  { %v1426_v21 = vpack.c.bf16 %v1418_v15, %v1418_v15  ;;  %4801 = vmatprep.subr.bf16.mxu0 %v5246_v18 }
 0x434   :  { %v5173_v30 = vpop.eup %5172 }
 0x435   :  { %4786 = vmatmul.mubr.msk.bf16.vlgmr.msra.gmra.mxu1 %vm966_vm2, %v1426_v21  ;;  %v1419_v51 = vmul.f32 %v5173_v30, %v5685_v0 }
 0x436   :  { %4796 = vmatpush3.bf16.msra.mxu1 %v1666_v57  ;;  %v1403_v52 = vpop.xlane.xlu0 %1402  ;;  %4797 = vmatprep.mubr.msk.bf16.mxu1 %vm5247_vm1, %v5246_v18 }
 0x437   :  { %5176 = vrcp.f32 %v1403_v52  ;;  %v1427_v53 = vpack.c.bf16 %v1419_v51, %v1419_v51  ;;  %4807 = vmatprep.subr.bf16.mxu1 %v5246_v18 }
 0x438   :  { %v5175_v54 = vpop.eup %5174 }
 0x439   :  { %4792 = vmatmul.mubr.msk.bf16.vlgmr.msra.gmra.mxu0 %vm966_vm2, %v1427_v53  ;;  %v1420_v5 = vmul.f32 %v5175_v54, %v5689_v8  ;;  %v1856_v8 = vsel %vm1434_vm3, %v1801_v6, 0 }
 0x43a   :  { %4802 = vmatpush3.bf16.msra.mxu0 %v1712_v55  ;;  %v1406_v58 = vpop.xlane.xlu1 %1405  ;;  %4803 = vmatprep.mubr.msk.bf16.mxu0 %vm5247_vm1, %v5246_v18 }
 0x43b   :  { %5178 = vrcp.f32 %v1406_v58  ;;  %v1428_v59 = vpack.c.bf16 %v1420_v5, %v1420_v5  ;;  %4813 = vmatprep.subr.bf16.mxu0 %v5246_v18 }
 0x43d   :  { %4798 = vmatmul.mubr.msk.bf16.vlgmr.msra.gmra.mxu1 %vm966_vm2, %v1428_v59 }
 0x43e   :  { %4808 = vmatpush3.bf16.msra.mxu1 %v1758_v60  ;;  %4809 = vmatprep.mubr.msk.bf16.mxu1 %vm5247_vm1, %v5246_v18 }
 0x43f   :  { %4819 = vmatprep.subr.bf16.mxu1 %v5246_v18 }
 0x444   :  { %v5177_v61 = vpop.eup %5176 }
 0x445   :  { %v1421_v62 = vmul.f32 %v5177_v61, %v5693_v11 }
 0x447   :  { %v1429_v0 = vpack.c.bf16 %v1421_v62, %v1421_v62 }
 0x448   :  { %v5179_v1 = vpop.eup %5178 }
 0x449   :  { %4804 = vmatmul.mubr.msk.bf16.vlgmr.msra.gmra.mxu0 %vm966_vm2, %v1429_v0  ;;  %v1422_v63 = vmul.f32 %v5179_v1, %v5697_v13  ;;  %v4320_v13 = vld [vmem:[%s6292_s10 + $0xc] sm:$0xf] }
 0x44a   :  { %4815 = vmatprep.mubr.msk.bf16.mxu0 %vm5247_vm1, %v5246_v18  ;;  %4814 = vmatpush3.bf16.msra.mxu0 %v1809_v10  ;;  %v1958_v20 = vsel %vm1434_vm3, %v4320_v13, 0 }
 0x44b   :  { %v1430_v4 = vpack.c.bf16 %v1422_v63, %v1422_v63  ;;  %4825 = vmatprep.subr.bf16.mxu0 %v5246_v18  ;;  %v4322_v63 = vld [vmem:[%s6293_s9] ss:$0 sm:$0xff]  ;;  %s5248_s9 = smov [#allocation2]  }
 0x44d   :  { %4810 = vmatmul.mubr.msk.bf16.vlgmr.msra.gmra.mxu1 %vm966_vm2, %v1430_v4 }
 0x44e   :  { %4821 = vmatprep.mubr.msk.bf16.mxu1 %vm5247_vm1, %v5246_v18  ;;  %4820 = vmatpush3.bf16.msra.mxu1 %v1856_v8 }
 0x44f   :  { %4831 = vmatprep.subr.bf16.mxu1 %v5246_v18 }
 0x4e1   :  { %v1472_v11 = vpop.f32.mrf.mxu0 }
 0x4e3   :  { %v4769_v12 = vpop.f32.mrf.mxu0 }
 0x4e5   :  { %v1475_v16 = vpop.f32.mrf.mxu0  ;;  %v1518_v17 = vpop.f32.mrf.mxu1 }
 0x4e6   :  { %v1800_v19 = vpack.c.bf16 %v1518_v17, %v1472_v11 }
 0x4e7   :  { %v4770_v22 = vpop.f32.mrf.mxu0  ;;  %v4775_v24 = vpop.f32.mrf.mxu1 }
 0x4e8   :  { %4822 = vmatmul.mubr.msk.bf16.vlgmr.msra.gmra.mxu1 %vm966_vm2, %v1800_v19 }
 0x4e9   :  { %v1521_v25 = vpop.f32.mrf.mxu1  ;;  %4832 = vmatpush3.bf16.msra.mxu1 %v1958_v20  ;;  %4833 = vmatprep.mubr.msk.bf16.mxu1 %vm5247_vm1, %v5246_v18 }
 0x4ea   :  { %4845 = vmatprep.subr.bf16.mxu1 %v5246_v18 }
 0x4eb   :  { %v4776_v26 = vpop.f32.mrf.mxu1 }
 0x4f1   :  { %v1564_v27 = vpop.f32.mrf.mxu0 }
 0x4f3   :  { %v4781_v28 = vpop.f32.mrf.mxu0 }
 0x4f5   :  { %v1567_v31 = vpop.f32.mrf.mxu0  ;;  %v1610_v32 = vpop.f32.mrf.mxu1 }
 0x4f6   :  { %v1802_v33 = vpack.c.bf16 %v1610_v32, %v1564_v27 }
 0x4f7   :  { %v4782_v35 = vpop.f32.mrf.mxu0  ;;  %v4787_v7 = vpop.f32.mrf.mxu1 }
 0x4f8   :  { %4816 = vmatmul.mubr.msk.bf16.vlgmr.msra.gmra.mxu0 %vm966_vm2, %v1802_v33  ;;  %v5110_v33 = vld [vmem:[%s6249_s16 + $0x8] sm:$0xff]   ;;  %v95_v35 = vld [vmem:[%s6294_s11] sm:$0xff] }
 0x4f9   :  { %v1613_v14 = vpop.f32.mrf.mxu1  ;;  %v1656_v36 = vpop.f32.mrf.mxu0  ;;  %4826 = vmatpush3.bf16.msra.mxu0 %v1906_v34  ;;  %4827 = vmatprep.mubr.msk.bf16.mxu0 %vm5247_vm1, %v5246_v18  ;;  %v5111_v34 = vld [vmem:[%s6249_s16] sm:$0xff]   ;;  %v96_v7 = vmul.f32 0.1, %v95_v35 }
 0x4fa   :  { %4837 = vmatprep.subr.bf16.mxu0 %v5246_v18 }
 0x4fb   :  { %v4788_v37 = vpop.f32.mrf.mxu1  ;;  %v4793_v39 = vpop.f32.mrf.mxu0  ;;  %v5817_v14 = vpack.c.bf16 %v96_v7, %v96_v7 }
 0x4fc   :  { %v5113_v37 = vld [vmem:[%s6247_s14 + $0x18] sm:$0xff]   ;;  %v5114_v39 = vld [vmem:[%s6247_s14] sm:$0xff]  }
 0x4fd   :  { %v1659_v40 = vpop.f32.mrf.mxu0  ;;  %v1702_v41 = vpop.f32.mrf.mxu1 }
 0x4fe   :  { %v1899_v42 = vpack.c.bf16 %v1702_v41, %v1656_v36  ;;  %v5112_v36 = vld [vmem:[%s6247_s14 + $0x8] sm:$0xff]   ;;  %v5115_v40 = vld [vmem:[%s6247_s14 + $0x10] sm:$0xff]  }
 0x4ff   :  { %v4794_v43 = vpop.f32.mrf.mxu0  ;;  %v4799_v44 = vpop.f32.mrf.mxu1 }
 0x500   :  { %4828 = vmatmul.mubr.msk.bf16.vlgmr.msra.gmra.mxu0 %vm966_vm2, %v1899_v42 }
 0x501   :  { %v1705_v38 = vpop.f32.mrf.mxu1  ;;  %4841 = vmatprep.mubr.msk.bf16.mxu0 %vm5247_vm1, %v5246_v18  ;;  %4838 = vmatpush3.bf16.msra.mxu0 %v5112_v36 }
 0x502   :  { %4839 = vmatprep.subr.bf16.mxu0 %v5246_v18 }
 0x503   :  { %v4800_v45 = vpop.f32.mrf.mxu1 }
 0x505   :  { %4840 = vmatpush3.bf16.msra.mxu0 %v5114_v39 }
 0x506   :  { %4853 = vmatprep.subr.bf16.mxu0 %v5246_v18 }
 0x509   :  { %v1748_v47 = vpop.f32.mrf.mxu0 }
 0x50b   :  { %v4805_v23 = vpop.f32.mrf.mxu0 }
 0x50d   :  { %v1751_v48 = vpop.f32.mrf.mxu0  ;;  %v1794_v46 = vpop.f32.mrf.mxu1 }
 0x50e   :  { %v1951_v15 = vpack.c.bf16 %v1794_v46, %v1748_v47  ;;  %v4323_v48 = vld [vmem:[%s6295_s3] ss:$0 sm:$0xff] }
 0x50f   :  { %v4806_v21 = vpop.f32.mrf.mxu0  ;;  %v4811_v30 = vpop.f32.mrf.mxu1 }
 0x510   :  { %4834 = vmatmul.mubr.msk.bf16.vlgmr.msra.gmra.mxu1 %vm966_vm2, %v1951_v15  ;;  %v4324_v30 = vld [vmem:[%s6246_s13] ss:$0 sm:$0xff] }
 0x511   :  { %v1797_v49 = vpop.f32.mrf.mxu1  ;;  %4849 = vmatprep.mubr.msk.bf16.mxu1 %vm5247_vm1, %v5246_v18  ;;  %4846 = vmatpush3.bf16.msra.mxu1 %v5110_v33 }
 0x512   :  { %4847 = vmatprep.subr.bf16.mxu1 %v5246_v18 }
 0x513   :  { %v4812_v50 = vpop.f32.mrf.mxu1 }
 0x515   :  { %4848 = vmatpush3.bf16.msra.mxu1 %v5111_v34 }
 0x516   :  { %4861 = vmatprep.subr.bf16.mxu1 %v5246_v18 }
 0x518   :  { %4850 = vmatmul.mubr.msk.bf16.vlgmr.msra.gmra.mxu1 %vm100_vm0, %v5817_v14 }
 0x519   :  { %4862 = vmatpush3.bf16.msra.mxu1 %v5113_v37  ;;  %4865 = vmatprep.mubr.msk.bf16.mxu1 %vm5247_vm1, %v5246_v18 }
 0x51a   :  { %4863 = vmatprep.subr.bf16.mxu1 %v5246_v18 }
 0x51d   :  { %4864 = vmatpush3.bf16.msra.mxu1 %v5115_v40 }
 0x51e   :  { %4877 = vmatprep.subr.bf16.mxu1 %v5246_v18 }
 0x5a8   :  { %v1892_v57 = vpop.f32.mrf.mxu1 }
 0x5aa   :  { %v4823_v51 = vpop.f32.mrf.mxu1 }
 0x5ab   :  { %v5116_v51 = vld [vmem:[%s6251_s18 + $0x8] sm:$0xff]  }
 0x5ac   :  { %v1895_v52 = vpop.f32.mrf.mxu1 }
 0x5ae   :  { %v4824_v53 = vpop.f32.mrf.mxu1 }
 0x5b8   :  { %v1845_v54 = vpop.f32.mrf.mxu0 }
 0x5b9   :  { %v1893_v62 = vadd.f32 %v1892_v57, %v1845_v54  ;;  %v5118_v54 = vld [vmem:[%s6251_s18] sm:$0xff]  }
 0x5ba   :  { %v4817_v55 = vpop.f32.mrf.mxu0 }
 0x5bb   :  { %v5119_v55 = vld [vmem:[%s6251_s18 + $0x10] sm:$0xff]  }
 0x5bc   :  { %v1848_v56 = vpop.f32.mrf.mxu0 }
 0x5bd   :  { %v1896_v4 = vadd.f32 %v1895_v52, %v1848_v56  ;;  %v5117_v52 = vld [vmem:[%s6251_s18 + $0x18] sm:$0xff]  }
 0x5be   :  { %v4818_v5 = vpop.f32.mrf.mxu0  ;;  %v5120_v56 = vld [vmem:[%s6249_s16 + $0x18] sm:$0xff]  }
 0x5bf   :  { %v5121_v5 = vld [vmem:[%s6249_s16 + $0x28] sm:$0xff]  }
 0x5c0   :  { %v1942_v58 = vpop.f32.mrf.mxu0 }
 0x5c1   :  { %v1949_v0 = vadd.f32 %v1942_v58, %v1893_v62  ;;  %v5122_v58 = vld [vmem:[%s6249_s16 + $0x10] sm:$0xff]   ;;  %v5126_v62 = vld [vmem:[%s6247_s14 + $0x20] sm:$0xff]  }
 0x5c2   :  { %v4829_v59 = vpop.f32.mrf.mxu0 }
 0x5c3   :  { %v5123_v59 = vld [vmem:[%s6249_s16 + $0x20] sm:$0xff]  }
 0x5c4   :  { %v1945_v60 = vpop.f32.mrf.mxu0 }
 0x5c5   :  { %v1950_v9 = vadd.f32 %v1945_v60, %v1896_v4  ;;  %v5124_v60 = vld [vmem:[%s6247_s14 + $0x28] sm:$0xff]   ;;  %v5129_v4 = vld [vmem:[%s6251_s18 + $0x20] sm:$0xff]  }
 0x5c6   :  { %v4830_v61 = vpop.f32.mrf.mxu0 }
 0x5c7   :  { %v5125_v61 = vld [vmem:[%s6247_s14 + $0x38] sm:$0xff]  }
 0x5d0   :  { %v1994_v1 = vpop.f32.mrf.mxu1 }
 0x5d1   :  { %v2001_v6 = vadd.f32 %v1994_v1, %v1949_v0  ;;  %v5127_v0 = vld [vmem:[%s6247_s14 + $0x30] sm:$0xff]   ;;  %v5128_v1 = vld [vmem:[%s6251_s18 + $0x28] sm:$0xff]  }
 0x5d2   :  { %v4835_v8 = vpop.f32.mrf.mxu1 }
 0x5d3   :  { %v2010_v10 = vadd.f32 %v4322_v63, %v2001_v6  ;;  %v5130_v6 = vld [vmem:[%s6249_s16 + $0x38] sm:$0xff]   ;;  %v5131_v8 = vld [vmem:[%s6249_s16 + $0x30] sm:$0xff]  }
 0x5d4   :  { %v1997_v11 = vpop.f32.mrf.mxu1 }
 0x5d5   :  { %v5794_v12 = vadd.f32 %v2010_v10, %v5402_v2  ;;  %v2002_v13 = vadd.f32 %v1997_v11, %v1950_v9  ;;  %v4329_v9 = vld [vmem:[%s6250_s17] ss:$0 sm:$0xff] }
 0x5d6   :  { %v4836_v16 = vpop.f32.mrf.mxu1 }
 0x5d7   :  { %v2011_v17 = vadd.f32 %v4322_v63, %v2002_v13  ;;  %v2016_v19 = vsel %vm100_vm0, %v5794_v12, 0.0  ;;  %v5132_v63 = vld [vmem:[%s6251_s18 + $0x38] sm:$0xff]  }
 0x5d8   :  { %2017 = vadd.xlane.f32.xlu0 %v2016_v19  ;;  %v2188_v10 = vpop.f32.mrf.mxu1 }
 0x5d9   :  { %v5799_v20 = vadd.f32 %v2011_v17, %v5404_v3  ;;  %v2189_v11 = vadd.f32 %v4329_v9, %v2188_v10 }
 0x5da   :  { %v4851_v13 = vpop.f32.mrf.mxu1 }
 0x5db   :  { %v2019_v22 = vsel %vm100_vm0, %v5799_v20, 0.0  ;;  %v2860_v16 = vrot.slane %v2189_v11, 4  ;;  %v2871_v17 = vpack.c.bf16 %v2189_v11, %v2189_v11 }
 0x5dc   :  { %2020 = vadd.xlane.f32.xlu1 %v2019_v22  ;;  %v2191_v19 = vpop.f32.mrf.mxu1 }
 0x5de   :  { %v4852_v22 = vpop.f32.mrf.mxu1 }
 0x661   :  { %v2018_v24 = vpop.xlane.xlu0 %2017 }
 0x662   :  { %v2022_v25 = vmul.f32 0.03125, %v2018_v24  ;;  %v5133_v24 = vld [vmem:[%s6251_s18 + $0x30] sm:$0xff]  }
 0x664   :  { %v2024_v26 = vsub.f32 %v5794_v12, %v2022_v25  ;;  %v2872_v25 = vpack.c.bf16 %v2860_v16, %v2860_v16 }
 0x665   :  { %v2021_v2 = vpop.xlane.xlu1 %2020 }
 0x666   :  { %v2023_v27 = vmul.f32 0.03125, %v2021_v2  ;;  %v2026_v28 = vmul.f32 %v2024_v26, %v2024_v26  ;;  %v2949_v2 = vsel %vm966_vm2, %v2872_v25, 0 }
 0x668   :  { %v2025_v29 = vsub.f32 %v5799_v20, %v2023_v27  ;;  %v2028_v31 = vsel %vm100_vm0, %v2026_v28, 0.0  ;;  %v4325_v27 = vld [vmem:[%s6248_s15] ss:$0 sm:$0xff] }
 0x669   :  { %2029 = vadd.xlane.f32.xlu0 %v2028_v31 }
 0x66a   :  { %v2027_v32 = vmul.f32 %v2025_v29, %v2025_v29 }
 0x66c   :  { %v2031_v3 = vsel %vm100_vm0, %v2027_v32, 0.0 }
 0x66d   :  { %2032 = vadd.xlane.f32.xlu1 %v2031_v3 }
 0x6f2   :  { %v2030_v41 = vpop.xlane.xlu0 %2029 }
 0x6f3   :  { %v2034_v42 = vmul.f32 0.03125, %v2030_v41 }
 0x6f5   :  { %v2036_v43 = vadd.f32 1e-05, %v2034_v42 }
 0x6f6   :  { %v2033_v44 = vpop.xlane.xlu1 %2032 }
 0x6f7   :  { %5180 = vrsqrt.f32 %v2036_v43  ;;  %v2035_v38 = vmul.f32 0.03125, %v2033_v44 }
 0x6f9   :  { %v2037_v45 = vadd.f32 1e-05, %v2035_v38 }
 0x6fb   :  { %5182 = vrsqrt.f32 %v2037_v45 }
 0x704   :  { %v5181_v47 = vpop.eup %5180 }
 0x705   :  { %v2040_v23 = vmul.f32 %v5181_v47, %v2024_v26  ;;  %v2903_v26 = vsel %vm966_vm2, %v2871_v17, 0 }
 0x707   :  { %v2048_v21 = vmul.f32 %v4323_v48, %v2040_v23 }
 0x708   :  { %v5183_v46 = vpop.eup %5182 }
 0x709   :  { %v2041_v15 = vmul.f32 %v5183_v46, %v2025_v29  ;;  %v2056_v50 = vadd.f32 %v4324_v30, %v2048_v21  ;;  %v4378_v46 = vld [vmem:[%s6250_s17 + $0x2] ss:$0 sm:$0xff] }
 0x70b   :  { %v2049_v49 = vmul.f32 %v4323_v48, %v2041_v15  ;;  %v4351_v48 = vld [vmem:[%s6250_s17 + $0x1] ss:$0 sm:$0xff] }
 0x70c   :  { %v4342_v15 = vld [vmem:[%s6248_s15 + $0x1] ss:$0 sm:$0xff] }
 0x70d   :  { %v2057_v57 = vadd.f32 %v4324_v30, %v2049_v49 }
 0x70f   :  { %v2058_v53 = vpack.c.bf16 %v2057_v57, %v2056_v50 }
 0x711   :  { %4842 = vmatmul.mubr.msk.bf16.vlgmr.msra.gmra.mxu0 %vm100_vm0, %v2058_v53  ;;  %4866 = vmatmul.mubr.msk.bf16.vlgmr.msra.gmra.mxu1 %vm100_vm0, %v2058_v53 }
 0x712   :  { %4854 = vmatpush3.bf16.msra.mxu0 %v5116_v51  ;;  %4878 = vmatpush3.bf16.msra.mxu1 %v5117_v52 }
 0x713   :  { %4855 = vmatprep.subr.bf16.mxu0 %v5246_v18  ;;  %4879 = vmatprep.subr.bf16.mxu1 %v5246_v18 }
 0x714   :  { %4857 = vmatprep.mubr.msk.bf16.mxu0 %vm5247_vm1, %v5246_v18  ;;  %4881 = vmatprep.mubr.msk.bf16.mxu1 %vm5247_vm1, %v5246_v18 }
 0x716   :  { %4856 = vmatpush3.bf16.msra.mxu0 %v5118_v54  ;;  %4880 = vmatpush3.bf16.msra.mxu1 %v5119_v55 }
 0x717   :  { %4869 = vmatprep.subr.bf16.mxu0 %v5246_v18  ;;  %4893 = vmatprep.subr.bf16.mxu1 %v5246_v18 }
 0x719   :  { %4858 = vmatmul.mubr.msk.bf16.vlgmr.msra.gmra.mxu0 %vm100_vm0, %v5817_v14  ;;  %4882 = vmatmul.mubr.msk.bf16.vlgmr.msra.gmra.mxu1 %vm100_vm0, %v5817_v14 }
 0x71a   :  { %4870 = vmatpush3.bf16.msra.mxu0 %v5120_v56  ;;  %4894 = vmatpush3.bf16.msra.mxu1 %v5121_v5 }
 0x71b   :  { %4871 = vmatprep.subr.bf16.mxu0 %v5246_v18  ;;  %4895 = vmatprep.subr.bf16.mxu1 %v5246_v18 }
 0x71c   :  { %4873 = vmatprep.mubr.msk.bf16.mxu0 %vm5247_vm1, %v5246_v18  ;;  %4897 = vmatprep.mubr.msk.bf16.mxu1 %vm5247_vm1, %v5246_v18 }
 0x71e   :  { %4872 = vmatpush3.bf16.msra.mxu0 %v5122_v58  ;;  %4896 = vmatpush3.bf16.msra.mxu1 %v5123_v59 }
 0x71f   :  { %4885 = vmatprep.subr.bf16.mxu0 %v5246_v18  ;;  %4909 = vmatprep.subr.bf16.mxu1 %v5246_v18 }
 0x721   :  { %4874 = vmatmul.mubr.msk.bf16.vlgmr.msra.gmra.mxu0 %vm100_vm0, %v5817_v14  ;;  %4898 = vmatmul.mubr.msk.bf16.vlgmr.msra.gmra.mxu1 %vm100_vm0, %v5817_v14 }
 0x722   :  { %4886 = vmatpush3.bf16.msra.mxu0 %v5124_v60  ;;  %4910 = vmatpush3.bf16.msra.mxu1 %v5125_v61 }
 0x723   :  { %4887 = vmatprep.subr.bf16.mxu0 %v5246_v18  ;;  %4911 = vmatprep.subr.bf16.mxu1 %v5246_v18 }
 0x724   :  { %4889 = vmatprep.mubr.msk.bf16.mxu0 %vm5247_vm1, %v5246_v18  ;;  %4913 = vmatprep.mubr.msk.bf16.mxu1 %vm5247_vm1, %v5246_v18 }
 0x726   :  { %4888 = vmatpush3.bf16.msra.mxu0 %v5126_v62  ;;  %4912 = vmatpush3.bf16.msra.mxu1 %v5127_v0 }
 0x727   :  { %4901 = vmatprep.subr.bf16.mxu0 %v5246_v18  ;;  %4925 = vmatprep.subr.bf16.mxu1 %v5246_v18 }
 0x729   :  { %4890 = vmatmul.mubr.msk.bf16.vlgmr.msra.gmra.mxu0 %vm100_vm0, %v2058_v53  ;;  %4914 = vmatmul.mubr.msk.bf16.vlgmr.msra.gmra.mxu1 %vm100_vm0, %v2058_v53 }
 0x72a   :  { %4902 = vmatpush3.bf16.msra.mxu0 %v5128_v1  ;;  %4905 = vmatprep.mubr.msk.bf16.mxu0 %vm5247_vm1, %v5246_v18 }
 0x72b   :  { %4903 = vmatprep.subr.bf16.mxu0 %v5246_v18  ;;  %4926 = vmatpush3.bf16.msra.mxu1 %v5132_v63 }
 0x72c   :  { %4927 = vmatprep.subr.bf16.mxu1 %v5246_v18  ;;  %4929 = vmatprep.mubr.msk.bf16.mxu1 %vm5247_vm1, %v5246_v18 }
 0x72e   :  { %4904 = vmatpush3.bf16.msra.mxu0 %v5129_v4  ;;  %v4369_v4 = vld [vmem:[%s6248_s15 + $0x2] ss:$0 sm:$0xff] }
 0x72f   :  { %4917 = vmatprep.subr.bf16.mxu0 %v5246_v18  ;;  %4928 = vmatpush3.bf16.msra.mxu1 %v5133_v24 }
 0x730   :  { %4939 = vmatprep.subr.bf16.mxu1 %v5246_v18 }
 0x731   :  { %4906 = vmatmul.mubr.msk.bf16.vlgmr.msra.gmra.mxu0 %vm100_vm0, %v5817_v14 }
 0x732   :  { %4918 = vmatpush3.bf16.msra.mxu0 %v5130_v6  ;;  %4921 = vmatprep.mubr.msk.bf16.mxu0 %vm5247_vm1, %v5246_v18 }
 0x733   :  { %4919 = vmatprep.subr.bf16.mxu0 %v5246_v18  ;;  %4930 = vmatmul.mubr.msk.bf16.vlgmr.msra.gmra.mxu1 %vm100_vm0, %v5817_v14 }
 0x734   :  { %4940 = vmatpush3.bf16.xpose.msra.mxu1 %v2949_v2  ;;  %4941 = vmatprep.mubr.msk.bf16.mxu1 %vm5247_vm1, %v5246_v18 }
 0x735   :  { %4951 = vmatprep.subr.bf16.mxu1 %v5246_v18 }
 0x736   :  { %4920 = vmatpush3.bf16.msra.mxu0 %v5131_v8 }
 0x737   :  { %4933 = vmatprep.subr.bf16.mxu0 %v5246_v18 }
 0x739   :  { %4922 = vmatmul.mubr.msk.bf16.vlgmr.msra.gmra.mxu0 %vm100_vm0, %v5817_v14 }
 0x73a   :  { %4935 = vmatprep.mubr.msk.bf16.mxu0 %vm5247_vm1, %v5246_v18  ;;  %4934 = vmatpush3.bf16.xpose.msra.mxu0 %v2903_v26 }
 0x73b   :  { %4945 = vmatprep.subr.bf16.mxu0 %v5246_v18 }
 0x7d1   :  { %v2119_v28 = vpop.f32.mrf.mxu0  ;;  %v2316_v29 = vpop.f32.mrf.mxu1 }
 0x7d2   :  { %v2120_v31 = vadd.f32 %v4325_v27, %v2119_v28  ;;  %v2317_v52 = vadd.f32 %v4342_v15, %v2316_v29 }
 0x7d3   :  { %v4843_v32 = vpop.f32.mrf.mxu0  ;;  %v4867_v3 = vpop.f32.mrf.mxu1 }
 0x7d4   :  { %v2126_v33 = vmul.f32 0.35355338, %v2120_v31  ;;  %v2323_v0 = vmul.f32 0.35355338, %v2317_v52 }
 0x7d5   :  { %v2122_v34 = vpop.f32.mrf.mxu0  ;;  %v2319_v35 = vpop.f32.mrf.mxu1 }
 0x7d6   :  { %v2851_v7 = vpack.c.bf16 %v2126_v33, %v2126_v33  ;;  %v2123_v14 = vadd.f32 %v4325_v27, %v2122_v34  ;;  %v2320_v5 = vadd.f32 %v4342_v15, %v2319_v35  ;;  %v2853_v16 = vpack.c.bf16 %v2323_v0, %v2323_v0 }
 0x7d7   :  { %v4844_v36 = vpop.f32.mrf.mxu0  ;;  %v4868_v37 = vpop.f32.mrf.mxu1 }
 0x7d8   :  { %v2127_v39 = vmul.f32 0.35355338, %v2123_v14  ;;  %4936 = vmatmul.mubr.msk.bf16.vlgmr.msra.gmra.mxu0 %vm966_vm2, %v2851_v7  ;;  %v2324_v9 = vmul.f32 0.35355338, %v2320_v5  ;;  %v4405_v14 = vld [vmem:[%s6250_s17 + $0x3] ss:$0 sm:$0xff] }
 0x7d9   :  { %v5969_v40 = vpop.f32.mrf.mxu0  ;;  %v5971_v41 = vpop.f32.mrf.mxu1  ;;  %4947 = vmatprep.mubr.msk.bf16.mxu0 %vm5247_vm1, %v5246_v18  ;;  %v4333_v36 = vld [vmem:[%s6252_s19] ss:$0 sm:$0xff]  ;;  %v4396_v37 = vld [vmem:[%s6248_s15 + $0x3] ss:$0 sm:$0xff] }
 0x7da   :  { %v2852_v42 = vpack.c.bf16 %v2127_v39, %v2127_v39  ;;  %v2854_v25 = vpack.c.bf16 %v2324_v9, %v2324_v9 }
 0x7db   :  { %v4859_v43 = vpop.f32.mrf.mxu0  ;;  %v4883_v44 = vpop.f32.mrf.mxu1 }
 0x7dc   :  { %4942 = vmatmul.mubr.msk.bf16.vlgmr.msra.gmra.mxu1 %vm966_vm2, %v2852_v42  ;;  %v2252_v44 = vadd.f32 %v4333_v36, %v5969_v40 }
 0x7dd   :  { %v2254_v38 = vpop.f32.mrf.mxu0  ;;  %v2452_v45 = vpop.f32.mrf.mxu1  ;;  %4953 = vmatprep.mubr.msk.bf16.mxu1 %vm5247_vm1, %v5246_v18 }
 0x7df   :  { %v4860_v47 = vpop.f32.mrf.mxu0  ;;  %v4884_v23 = vpop.f32.mrf.mxu1 }
 0x7e1   :  { %v2384_v21 = vpop.f32.mrf.mxu0  ;;  %v2582_v30 = vpop.f32.mrf.mxu1 }
 0x7e2   :  { %v2385_v49 = vadd.f32 %v4351_v48, %v2384_v21  ;;  %v2583_v50 = vadd.f32 %v4378_v46, %v2582_v30  ;;  %v2880_v30 = vrot.slane %v2252_v44, 4 }
 0x7e3   :  { %v4875_v57 = vpop.f32.mrf.mxu0  ;;  %v4899_v51 = vpop.f32.mrf.mxu1 }
 0x7e4   :  { %v2863_v53 = vrot.slane %v2385_v49, 4  ;;  %v2873_v54 = vpack.c.bf16 %v2385_v49, %v2385_v49  ;;  %v2866_v59 = vrot.slane %v2583_v50, 4  ;;  %v2875_v1 = vpack.c.bf16 %v2583_v50, %v2583_v50 }
 0x7e5   :  { %v2387_v55 = vpop.f32.mrf.mxu0  ;;  %v2585_v56 = vpop.f32.mrf.mxu1  ;;  %v2891_v57 = vpack.c.bf16 %v2252_v44, %v2252_v44  ;;  %v2892_v40 = vpack.c.bf16 %v2880_v30, %v2880_v30 }
 0x7e6   :  { %v2874_v58 = vpack.c.bf16 %v2863_v53, %v2863_v53  ;;  %v2995_v60 = vsel %vm966_vm2, %v2873_v54, 0  ;;  %v2876_v10 = vpack.c.bf16 %v2866_v59, %v2866_v59  ;;  %v3087_v19 = vsel %vm966_vm2, %v2875_v1, 0 }
 0x7e7   :  { %v4876_v61 = vpop.f32.mrf.mxu0  ;;  %v4900_v62 = vpop.f32.mrf.mxu1  ;;  %4946 = vmatpush3.bf16.xpose.msra.mxu0 %v2995_v60  ;;  %v3369_v54 = vsel %vm3367_vm4, %v2891_v57, 0  ;;  %v3415_v55 = vsel %vm3367_vm4, %v2892_v40, 0 }
 0x7e8   :  { %v3041_v63 = vsel %vm966_vm2, %v2874_v58, 0  ;;  %4957 = vmatprep.subr.bf16.mxu0 %v5246_v18  ;;  %v3133_v2 = vsel %vm966_vm2, %v2876_v10, 0 }
 0x7e9   :  { %v2514_v6 = vpop.f32.mrf.mxu0  ;;  %v2712_v8 = vpop.f32.mrf.mxu1  ;;  %4952 = vmatpush3.bf16.xpose.msra.mxu1 %v3041_v63 }
 0x7ea   :  { %4963 = vmatprep.subr.bf16.mxu1 %v5246_v18  ;;  %v2515_v17 = vadd.f32 %v4369_v4, %v2514_v6  ;;  %v2713_v38 = vadd.f32 %v4396_v37, %v2712_v8 }
 0x7eb   :  { %v4891_v11 = vpop.f32.mrf.mxu0  ;;  %v4915_v13 = vpop.f32.mrf.mxu1 }
 0x7ec   :  { %v2521_v29 = vmul.f32 0.35355338, %v2515_v17  ;;  %v2719_v49 = vmul.f32 0.35355338, %v2713_v38 }
 0x7ed   :  { %v2517_v22 = vpop.f32.mrf.mxu0  ;;  %v2715_v24 = vpop.f32.mrf.mxu1 }
 0x7ee   :  { %v2518_v26 = vadd.f32 %v4369_v4, %v2517_v22  ;;  %4948 = vmatmul.mubr.msk.bf16.vlgmr.msra.gmra.mxu0 %vm966_vm2, %v2853_v16  ;;  %v2855_v33 = vpack.c.bf16 %v2521_v29, %v2521_v29  ;;  %v2716_v48 = vadd.f32 %v4396_v37, %v2715_v24  ;;  %v2857_v52 = vpack.c.bf16 %v2719_v49, %v2719_v49 }
 0x7ef   :  { %v4892_v27 = vpop.f32.mrf.mxu0  ;;  %v4916_v28 = vpop.f32.mrf.mxu1  ;;  %4958 = vmatpush3.bf16.xpose.msra.mxu0 %v3087_v19  ;;  %4959 = vmatprep.mubr.msk.bf16.mxu0 %vm5247_vm1, %v5246_v18 }
 0x7f0   :  { %4954 = vmatmul.mubr.msk.bf16.vlgmr.msra.gmra.mxu1 %vm966_vm2, %v2854_v25  ;;  %4969 = vmatprep.subr.bf16.mxu0 %v5246_v18  ;;  %v2522_v32 = vmul.f32 0.35355338, %v2518_v26  ;;  %v2720_v51 = vmul.f32 0.35355338, %v2716_v48 }
 0x7f1   :  { %v6001_v31 = vpop.f32.mrf.mxu0  ;;  %4964 = vmatpush3.bf16.xpose.msra.mxu1 %v3133_v2  ;;  %4965 = vmatprep.mubr.msk.bf16.mxu1 %vm5247_vm1, %v5246_v18 }
 0x7f2   :  { %4975 = vmatprep.subr.bf16.mxu1 %v5246_v18  ;;  %v2856_v35 = vpack.c.bf16 %v2522_v32, %v2522_v32  ;;  %v2858_v53 = vpack.c.bf16 %v2720_v51, %v2720_v51 }
 0x7f3   :  { %v4907_v3 = vpop.f32.mrf.mxu0  ;;  %v6036_v56 = vpop.f32.mrf.mxu1 }
 0x7f5   :  { %v2650_v34 = vpop.f32.mrf.mxu0  ;;  %v4931_v5 = vpop.f32.mrf.mxu1 }
 0x7f6   :  { %4960 = vmatmul.mubr.msk.bf16.vlgmr.msra.gmra.mxu0 %vm966_vm2, %v2855_v33 }
 0x7f7   :  { %v4908_v7 = vpop.f32.mrf.mxu0  ;;  %4971 = vmatprep.mubr.msk.bf16.mxu0 %vm5247_vm1, %v5246_v18  ;;  %v2848_v58 = vpop.f32.mrf.mxu1 }
 0x7f8   :  { %4966 = vmatmul.mubr.msk.bf16.vlgmr.msra.gmra.mxu1 %vm966_vm2, %v2856_v35 }
 0x7f9   :  { %v2780_v39 = vpop.f32.mrf.mxu0  ;;  %4977 = vmatprep.mubr.msk.bf16.mxu1 %vm5247_vm1, %v5246_v18  ;;  %v4932_v59 = vpop.f32.mrf.mxu1 }
 0x7fa   :  { %v2781_v42 = vadd.f32 %v4405_v14, %v2780_v39 }
 0x7fb   :  { %v4923_v43 = vpop.f32.mrf.mxu0 }
 0x7fc   :  { %v2869_v45 = vrot.slane %v2781_v42, 4  ;;  %v2877_v47 = vpack.c.bf16 %v2781_v42, %v2781_v42 }
 0x7fd   :  { %v2783_v23 = vpop.f32.mrf.mxu0 }
 0x7fe   :  { %v2878_v46 = vpack.c.bf16 %v2869_v45, %v2869_v45  ;;  %v3179_v15 = vsel %vm966_vm2, %v2877_v47, 0 }
 0x7ff   :  { %v4924_v21 = vpop.f32.mrf.mxu0  ;;  %4970 = vmatpush3.bf16.xpose.msra.mxu0 %v3179_v15 }
 0x800   :  { %v3225_v50 = vsel %vm966_vm2, %v2878_v46, 0  ;;  %4981 = vmatprep.subr.bf16.mxu0 %v5246_v18 }
 0x801   :  { %4976 = vmatpush3.bf16.xpose.msra.mxu1 %v3225_v50 }
 0x802   :  { %4987 = vmatprep.subr.bf16.mxu1 %v5246_v18 }
 0x806   :  { %4972 = vmatmul.mubr.msk.bf16.vlgmr.msra.gmra.mxu0 %vm966_vm2, %v2857_v52 }
 0x807   :  { %4982 = vmatpush3.bf16.msra.mxu0 %v3369_v54  ;;  %4983 = vmatprep.mubr.msk.bf16.mxu0 %vm5247_vm1, %v5246_v18 }
 0x808   :  { %4978 = vmatmul.mubr.msk.bf16.vlgmr.msra.gmra.mxu1 %vm966_vm2, %v2858_v53  ;;  %4993 = vmatprep.subr.bf16.mxu0 %v5246_v18 }
 0x809   :  { %4988 = vmatpush3.bf16.msra.mxu1 %v3415_v55  ;;  %4989 = vmatprep.mubr.msk.bf16.mxu1 %vm5247_vm1, %v5246_v18 }
 0x80a   :  { %4999 = vmatprep.subr.bf16.mxu1 %v5246_v18 }
 0x898   :  { %v2939_v60 = vpop.f32.mrf.mxu0 }
 0x899   :  { %v3268_v61 = vsel %vm3267_vm5, %v2939_v60, -inf }
 0x89a   :  { %3269 = vmax.xlane.f32.xlu0 %v3268_v61  ;;  %v4937_v62 = vpop.f32.mrf.mxu0 }
 0x89c   :  { %v2942_v0 = vpop.f32.mrf.mxu0  ;;  %v2985_v1 = vpop.f32.mrf.mxu1 }
 0x89d   :  { %v3271_v63 = vsel %vm3267_vm5, %v2985_v1, -inf }
 0x89e   :  { %3272 = vmax.xlane.f32.xlu1 %v3271_v63  ;;  %v4938_v4 = vpop.f32.mrf.mxu0  ;;  %v4943_v6 = vpop.f32.mrf.mxu1 }
 0x8a0   :  { %v2988_v8 = vpop.f32.mrf.mxu1 }
 0x8a2   :  { %v4944_v9 = vpop.f32.mrf.mxu1 }
 0x8ae   :  { %v3031_v10 = vpop.f32.mrf.mxu0 }
 0x8af   :  { %v3274_v11 = vsel %vm3267_vm5, %v3031_v10, -inf }
 0x8b0   :  { %v3077_v13 = vpop.f32.mrf.mxu1  ;;  %3275 = vmax.xlane.f32.xlu0 %v3274_v11  ;;  %v4949_v16 = vpop.f32.mrf.mxu0 }
 0x8b1   :  { %v3277_v17 = vsel %vm3267_vm5, %v3077_v13, -inf }
 0x8b2   :  { %3278 = vmax.xlane.f32.xlu1 %v3277_v17  ;;  %v3034_v19 = vpop.f32.mrf.mxu0  ;;  %v4955_v22 = vpop.f32.mrf.mxu1 }
 0x8b4   :  { %v4950_v24 = vpop.f32.mrf.mxu0  ;;  %v3080_v25 = vpop.f32.mrf.mxu1 }
 0x8b6   :  { %v4956_v26 = vpop.f32.mrf.mxu1  ;;  %v3123_v2 = vpop.f32.mrf.mxu0 }
 0x8b7   :  { %v3280_v27 = vsel %vm3267_vm5, %v3123_v2, -inf }
 0x8b8   :  { %v3169_v28 = vpop.f32.mrf.mxu1  ;;  %3281 = vmax.xlane.f32.xlu0 %v3280_v27  ;;  %v4961_v29 = vpop.f32.mrf.mxu0 }
 0x8b9   :  { %v3283_v32 = vsel %vm3267_vm5, %v3169_v28, -inf }
 0x8ba   :  { %3284 = vmax.xlane.f32.xlu1 %v3283_v32  ;;  %v3126_v3 = vpop.f32.mrf.mxu0  ;;  %v4967_v33 = vpop.f32.mrf.mxu1  ;;  %v4360_v32 = vld [vmem:[%s6252_s19 + $0x1] ss:$0 sm:$0xff] }
 0x8bb   :  { %v2450_v3 = vadd.f32 %v4360_v32, %v5971_v41 }
 0x8bc   :  { %v4962_v34 = vpop.f32.mrf.mxu0  ;;  %v3172_v35 = vpop.f32.mrf.mxu1 }
 0x8bd   :  { %v2883_v34 = vrot.slane %v2450_v3, 4  ;;  %v2893_v35 = vpack.c.bf16 %v2450_v3, %v2450_v3 }
 0x8be   :  { %v4968_v7 = vpop.f32.mrf.mxu1 }
 0x8c6   :  { %v3215_v14 = vpop.f32.mrf.mxu0 }
 0x8c7   :  { %v3286_v36 = vsel %vm3267_vm5, %v3215_v14, -inf }
 0x8c8   :  { %v3261_v37 = vpop.f32.mrf.mxu1  ;;  %3287 = vmax.xlane.f32.xlu0 %v3286_v36  ;;  %v4973_v39 = vpop.f32.mrf.mxu0 }
 0x8c9   :  { %v3289_v42 = vsel %vm3267_vm5, %v3261_v37, -inf  ;;  %v3461_v39 = vsel %vm3367_vm4, %v2893_v35, 0 }
 0x8ca   :  { %3290 = vmax.xlane.f32.xlu1 %v3289_v42  ;;  %v3218_v43 = vpop.f32.mrf.mxu0  ;;  %v4979_v44 = vpop.f32.mrf.mxu1 }
 0x8cc   :  { %v4974_v38 = vpop.f32.mrf.mxu0  ;;  %v3264_v45 = vpop.f32.mrf.mxu1 }
 0x8cd   :  { %v4387_v45 = vld [vmem:[%s6252_s19 + $0x2] ss:$0 sm:$0xff] }
 0x8ce   :  { %v4980_v47 = vpop.f32.mrf.mxu1 }
 0x923   :  { %v3270_v23 = vpop.xlane.xlu0 %3269 }
 0x924   :  { %v3292_v48 = vsub.f32 %v2939_v60, %v3270_v23  ;;  %v2648_v23 = vadd.f32 %v4387_v45, %v6001_v31 }
 0x926   :  { %v3300_v46 = vmul.f32 1.442695, %v3292_v48 }
 0x927   :  { %v3273_v15 = vpop.xlane.xlu1 %3272 }
 0x928   :  { %5184 = vpow2.f32 %v3300_v46  ;;  %v3293_v21 = vsub.f32 %v2985_v1, %v3273_v15  ;;  %v2886_v46 = vrot.slane %v2648_v23, 4 }
 0x92a   :  { %v3302_v30 = vmul.f32 1.442695, %v3293_v21  ;;  %v4414_v21 = vld [vmem:[%s6252_s19 + $0x3] ss:$0 sm:$0xff] }
 0x92c   :  { %5186 = vpow2.f32 %v3302_v30  ;;  %v2895_v30 = vpack.c.bf16 %v2648_v23, %v2648_v23 }
 0x92e   :  { %v3553_v31 = vsel %vm3367_vm4, %v2895_v30, 0 }
 0x935   :  { %v5185_v49 = vpop.eup %5184 }
 0x936   :  { %v3316_v50 = vsel %vm3267_vm5, %v5185_v49, 0.0 }
 0x937   :  { %3317 = vadd.xlane.f32.xlu0 %v3316_v50 }
 0x939   :  { %v5187_v57 = vpop.eup %5186  ;;  %v3276_v51 = vpop.xlane.xlu0 %3275 }
 0x93a   :  { %v3294_v40 = vsub.f32 %v3031_v10, %v3276_v51  ;;  %v3319_v52 = vsel %vm3267_vm5, %v5187_v57, 0.0  ;;  %v2846_v51 = vadd.f32 %v4414_v21, %v6036_v56 }
 0x93b   :  { %v3279_v53 = vpop.xlane.xlu1 %3278  ;;  %3320 = vadd.xlane.f32.xlu1 %v3319_v52 }
 0x93c   :  { %v3304_v54 = vmul.f32 1.442695, %v3294_v40  ;;  %v3295_v55 = vsub.f32 %v3077_v13, %v3279_v53 }
 0x93e   :  { %5188 = vpow2.f32 %v3304_v54  ;;  %v3306_v5 = vmul.f32 1.442695, %v3295_v55  ;;  %v2889_v54 = vrot.slane %v2846_v51, 4 }
 0x940   :  { %5190 = vpow2.f32 %v3306_v5  ;;  %v2897_v5 = vpack.c.bf16 %v2846_v51, %v2846_v51 }
 0x941   :  { %v3282_v58 = vpop.xlane.xlu0 %3281 }
 0x942   :  { %v3296_v59 = vsub.f32 %v3123_v2, %v3282_v58 }
 0x943   :  { %v3285_v60 = vpop.xlane.xlu1 %3284 }
 0x944   :  { %v3308_v61 = vmul.f32 1.442695, %v3296_v59  ;;  %v3297_v62 = vsub.f32 %v3169_v28, %v3285_v60 }
 0x946   :  { %5192 = vpow2.f32 %v3308_v61  ;;  %v3310_v0 = vmul.f32 1.442695, %v3297_v62  ;;  %v2898_v61 = vpack.c.bf16 %v2889_v54, %v2889_v54 }
 0x948   :  { %5194 = vpow2.f32 %v3310_v0 }
 0x94b   :  { %v6048_v1 = vpop.eup %5188 }
 0x94c   :  { %v3322_v63 = vsel %vm3267_vm5, %v6048_v1, 0.0 }
 0x94d   :  { %v6052_v4 = vpop.eup %5190  ;;  %3323 = vadd.xlane.f32.xlu0 %v3322_v63  ;;  %v3645_v63 = vsel %vm3367_vm4, %v2897_v5, 0 }
 0x94e   :  { %v3325_v6 = vsel %vm3267_vm5, %v6052_v4, 0.0 }
 0x94f   :  { %3326 = vadd.xlane.f32.xlu1 %v3325_v6  ;;  %v3691_v6 = vsel %vm3367_vm4, %v2898_v61, 0 }
 0x951   :  { %v3288_v8 = vpop.xlane.xlu0 %3287 }
 0x952   :  { %v3298_v9 = vsub.f32 %v3215_v14, %v3288_v8 }
 0x953   :  { %v6056_v10 = vpop.eup %5192  ;;  %v3291_v11 = vpop.xlane.xlu1 %3290 }
 0x954   :  { %v3312_v13 = vmul.f32 1.442695, %v3298_v9  ;;  %v3299_v16 = vsub.f32 %v3261_v37, %v3291_v11  ;;  %v3328_v17 = vsel %vm3267_vm5, %v6056_v10, 0.0  ;;  %v2894_v37 = vpack.c.bf16 %v2883_v34, %v2883_v34 }
 0x955   :  { %v6060_v19 = vpop.eup %5194  ;;  %3329 = vadd.xlane.f32.xlu0 %v3328_v17  ;;  %v3734_v17 = vld [vmem:[%s6253_s20] sm:$0xf] }
 0x956   :  { %5196 = vpow2.f32 %v3312_v13  ;;  %v3314_v22 = vmul.f32 1.442695, %v3299_v16  ;;  %v3331_v24 = vsel %vm3267_vm5, %v6060_v19, 0.0  ;;  %v3507_v44 = vsel %vm3367_vm4, %v2894_v37, 0 }
 0x957   :  { %3332 = vadd.xlane.f32.xlu1 %v3331_v24 }
 0x958   :  { %5198 = vpow2.f32 %v3314_v22  ;;  %v4434_v22 = vld [vmem:[%s6253_s20 + $0x4] sm:$0xf] }
 0x959   :  { %v3742_v24 = vsel %vm1434_vm3, %v4434_v22, 0 }
 0x963   :  { %v6064_v25 = vpop.eup %5196 }
 0x964   :  { %v3334_v26 = vsel %vm3267_vm5, %v6064_v25, 0.0 }
 0x965   :  { %v6068_v2 = vpop.eup %5198  ;;  %3335 = vadd.xlane.f32.xlu0 %v3334_v26 }
 0x966   :  { %v3337_v27 = vsel %vm3267_vm5, %v6068_v2, 0.0 }
 0x967   :  { %3338 = vadd.xlane.f32.xlu1 %v3337_v27 }
 0x9c0   :  { %v3318_v28 = vpop.xlane.xlu0 %3317 }
 0x9c1   :  { %5200 = vrcp.f32 %v3318_v28 }
 0x9c4   :  { %v3321_v29 = vpop.xlane.xlu1 %3320 }
 0x9c5   :  { %5202 = vrcp.f32 %v3321_v29 }
 0x9ce   :  { %v5201_v33 = vpop.eup %5200 }
 0x9cf   :  { %v3348_v7 = vmul.f32 %v5201_v33, %v5185_v49 }
 0x9d1   :  { %v3356_v14 = vpack.c.bf16 %v3348_v7, %v3348_v7 }
 0x9d2   :  { %v5203_v36 = vpop.eup %5202 }
 0x9d3   :  { %4984 = vmatmul.mubr.msk.bf16.vlgmr.msra.gmra.mxu0 %vm3267_vm5, %v3356_v14  ;;  %v3349_v42 = vmul.f32 %v5203_v36, %v5187_v57  ;;  %v2896_v57 = vpack.c.bf16 %v2886_v46, %v2886_v46  ;;  %v4437_v14 = vld [vmem:[%s6253_s20 + $0x8] sm:$0xf] }
 0x9d4   :  { %4994 = vmatpush3.bf16.msra.mxu0 %v3461_v39  ;;  %4995 = vmatprep.mubr.msk.bf16.mxu0 %vm5247_vm1, %v5246_v18 }
 0x9d5   :  { %v3357_v43 = vpack.c.bf16 %v3349_v42, %v3349_v42  ;;  %5005 = vmatprep.subr.bf16.mxu0 %v5246_v18  ;;  %v3599_v55 = vsel %vm3367_vm4, %v2896_v57, 0  ;;  %v3839_v42 = vsel %vm1434_vm3, %v4437_v14, 0 }
 0x9d6   :  { %v3324_v41 = vpop.xlane.xlu0 %3323 }
 0x9d7   :  { %5204 = vrcp.f32 %v3324_v41  ;;  %4990 = vmatmul.mubr.msk.bf16.vlgmr.msra.gmra.mxu1 %vm3267_vm5, %v3357_v43 }
 0x9d8   :  { %5000 = vmatpush3.bf16.msra.mxu1 %v3507_v44  ;;  %v3327_v38 = vpop.xlane.xlu1 %3326  ;;  %5001 = vmatprep.mubr.msk.bf16.mxu1 %vm5247_vm1, %v5246_v18 }
 0x9d9   :  { %5206 = vrcp.f32 %v3327_v38  ;;  %5011 = vmatprep.subr.bf16.mxu1 %v5246_v18 }
 0x9de   :  { %v3330_v47 = vpop.xlane.xlu0 %3329 }
 0x9df   :  { %5208 = vrcp.f32 %v3330_v47 }
 0x9e0   :  { %v3333_v48 = vpop.xlane.xlu1 %3332 }
 0x9e1   :  { %5210 = vrcp.f32 %v3333_v48 }
 0x9e4   :  { %v5205_v15 = vpop.eup %5204 }
 0x9e5   :  { %v3350_v49 = vmul.f32 %v5205_v15, %v6048_v1 }
 0x9e6   :  { %v5207_v50 = vpop.eup %5206 }
 0x9e7   :  { %v3358_v40 = vpack.c.bf16 %v3350_v49, %v3350_v49  ;;  %v3351_v52 = vmul.f32 %v5207_v50, %v6052_v4 }
 0x9e9   :  { %4996 = vmatmul.mubr.msk.bf16.vlgmr.msra.gmra.mxu0 %vm3267_vm5, %v3358_v40  ;;  %v3359_v53 = vpack.c.bf16 %v3351_v52, %v3351_v52 }
 0x9ea   :  { %5006 = vmatpush3.bf16.msra.mxu0 %v3553_v31  ;;  %5007 = vmatprep.mubr.msk.bf16.mxu0 %vm5247_vm1, %v5246_v18 }
 0x9eb   :  { %5002 = vmatmul.mubr.msk.bf16.vlgmr.msra.gmra.mxu1 %vm3267_vm5, %v3359_v53  ;;  %5017 = vmatprep.subr.bf16.mxu0 %v5246_v18 }
 0x9ec   :  { %v5209_v56 = vpop.eup %5208  ;;  %5012 = vmatpush3.bf16.msra.mxu1 %v3599_v55  ;;  %5013 = vmatprep.mubr.msk.bf16.mxu1 %vm5247_vm1, %v5246_v18 }
 0x9ed   :  { %v3352_v58 = vmul.f32 %v5209_v56, %v6056_v10  ;;  %5023 = vmatprep.subr.bf16.mxu1 %v5246_v18 }
 0x9ee   :  { %v5211_v59 = vpop.eup %5210  ;;  %v3336_v60 = vpop.xlane.xlu0 %3335 }
 0x9ef   :  { %v3360_v62 = vpack.c.bf16 %v3352_v58, %v3352_v58  ;;  %5212 = vrcp.f32 %v3336_v60  ;;  %v3353_v0 = vmul.f32 %v5211_v59, %v6060_v19  ;;  %v3789_v19 = vsel %vm1434_vm3, %v3734_v17, 0 }
 0x9f0   :  { %v3339_v1 = vpop.xlane.xlu1 %3338 }
 0x9f1   :  { %5214 = vrcp.f32 %v3339_v1  ;;  %5008 = vmatmul.mubr.msk.bf16.vlgmr.msra.gmra.mxu0 %vm3267_vm5, %v3360_v62  ;;  %v3361_v4 = vpack.c.bf16 %v3353_v0, %v3353_v0 }
 0x9f2   :  { %5018 = vmatpush3.bf16.msra.mxu0 %v3645_v63  ;;  %5019 = vmatprep.mubr.msk.bf16.mxu0 %vm5247_vm1, %v5246_v18 }
 0x9f3   :  { %5014 = vmatmul.mubr.msk.bf16.vlgmr.msra.gmra.mxu1 %vm3267_vm5, %v3361_v4  ;;  %5029 = vmatprep.subr.bf16.mxu0 %v5246_v18 }
 0x9f4   :  { %5024 = vmatpush3.bf16.msra.mxu1 %v3691_v6  ;;  %5025 = vmatprep.mubr.msk.bf16.mxu1 %vm5247_vm1, %v5246_v18 }
 0x9f5   :  { %5035 = vmatprep.subr.bf16.mxu1 %v5246_v18 }
 0x9fc   :  { %v5213_v8 = vpop.eup %5212 }
 0x9fd   :  { %v3354_v9 = vmul.f32 %v5213_v8, %v6064_v25 }
 0x9fe   :  { %v5215_v10 = vpop.eup %5214 }
 0x9ff   :  { %v3362_v11 = vpack.c.bf16 %v3354_v9, %v3354_v9  ;;  %v3355_v13 = vmul.f32 %v5215_v10, %v6068_v2  ;;  %v4439_v2 = vld [vmem:[%s6253_s20 + $0xc] sm:$0xf] }
 0xa00   :  { %v3891_v32 = vsel %vm1434_vm3, %v4439_v2, 0 }
 0xa01   :  { %v3363_v16 = vpack.c.bf16 %v3355_v13, %v3355_v13  ;;  %5020 = vmatmul.mubr.msk.bf16.vlgmr.msra.gmra.mxu0 %vm3267_vm5, %v3362_v11  ;;  %v4441_v13 = vld [vmem:[%s6254_s21] ss:$0 sm:$0xff]  ;;  %s4193_s21 = sshll.u32 %s5248_s9, 4  ;;  %s4194_s21 = int_to_ptr.vmem [resolvable:$true] %s4193_s21 }
 0xa02   :  { %5031 = vmatprep.mubr.msk.bf16.mxu0 %vm5247_vm1, %v5246_v18  ;;  %5030 = vmatpush3.bf16.msra.mxu0 %v3742_v24  ;;  %p5229_p1 = scmp.lt.s32.totalorder %s4194_s21, %s4194_s21 }
 0xa03   :  { %5026 = vmatmul.mubr.msk.bf16.vlgmr.msra.gmra.mxu1 %vm3267_vm5, %v3363_v16  ;;  %5041 = vmatprep.subr.bf16.mxu0 %v5246_v18 }
 0xa04   :  { %5037 = vmatprep.mubr.msk.bf16.mxu1 %vm5247_vm1, %v5246_v18  ;;  %5036 = vmatpush3.bf16.msra.mxu1 %v3789_v19 }
 0xa05   :  { %5047 = vmatprep.subr.bf16.mxu1 %v5246_v18 }
 0xa93   :  { %v3405_v25 = vpop.f32.mrf.mxu0 }
 0xa95   :  { %v4985_v26 = vpop.f32.mrf.mxu0 }
 0xa97   :  { %v3408_v27 = vpop.f32.mrf.mxu0  ;;  %v3451_v28 = vpop.f32.mrf.mxu1 }
 0xa98   :  { %v3733_v29 = vpack.c.bf16 %v3451_v28, %v3405_v25 }
 0xa99   :  { %v4986_v3 = vpop.f32.mrf.mxu0  ;;  %v4991_v33 = vpop.f32.mrf.mxu1 }
 0xa9a   :  { %5038 = vmatmul.mubr.msk.bf16.vlgmr.msra.gmra.mxu1 %vm966_vm2, %v3733_v29 }
 0xa9b   :  { %v3454_v34 = vpop.f32.mrf.mxu1  ;;  %5048 = vmatpush3.bf16.msra.mxu1 %v3891_v32  ;;  %5049 = vmatprep.mubr.msk.bf16.mxu1 %vm5247_vm1, %v5246_v18 }
 0xa9c   :  { %5061 = vmatprep.subr.bf16.mxu1 %v5246_v18 }
 0xa9d   :  { %v4992_v35 = vpop.f32.mrf.mxu1 }
 0xaa9   :  { %v3497_v7 = vpop.f32.mrf.mxu0 }
 0xaab   :  { %v4997_v36 = vpop.f32.mrf.mxu0  ;;  %v3543_v37 = vpop.f32.mrf.mxu1 }
 0xaac   :  { %v3735_v39 = vpack.c.bf16 %v3543_v37, %v3497_v7 }
 0xaad   :  { %v3500_v43 = vpop.f32.mrf.mxu0  ;;  %v5003_v41 = vpop.f32.mrf.mxu1 }
 0xaae   :  { %5032 = vmatmul.mubr.msk.bf16.vlgmr.msra.gmra.mxu0 %vm966_vm2, %v3735_v39  ;;  %v5135_v43 = vld [vmem:[%s6257_s24] sm:$0xff]   ;;  %v5136_v41 = vld [vmem:[%s6259_s26 + $0x38] sm:$0xff]  }
 0xaaf   :  { %v4998_v44 = vpop.f32.mrf.mxu0  ;;  %v3546_v38 = vpop.f32.mrf.mxu1  ;;  %5042 = vmatpush3.bf16.msra.mxu0 %v3839_v42  ;;  %5043 = vmatprep.mubr.msk.bf16.mxu0 %vm5247_vm1, %v5246_v18  ;;  %v5134_v42 = vld [vmem:[%s6257_s24 + $0x8] sm:$0xff]  }
 0xab0   :  { %5053 = vmatprep.subr.bf16.mxu0 %v5246_v18 }
 0xab1   :  { %v5004_v45 = vpop.f32.mrf.mxu1  ;;  %v3589_v47 = vpop.f32.mrf.mxu0 }
 0xab3   :  { %v5009_v23 = vpop.f32.mrf.mxu0  ;;  %v3635_v48 = vpop.f32.mrf.mxu1 }
 0xab4   :  { %v3832_v46 = vpack.c.bf16 %v3635_v48, %v3589_v47 }
 0xab5   :  { %v3592_v15 = vpop.f32.mrf.mxu0  ;;  %v5015_v21 = vpop.f32.mrf.mxu1 }
 0xab6   :  { %5044 = vmatmul.mubr.msk.bf16.vlgmr.msra.gmra.mxu0 %vm966_vm2, %v3832_v46  ;;  %v4442_v21 = vld [vmem:[%s6255_s22] ss:$0 sm:$0xff] }
 0xab7   :  { %v5010_v30 = vpop.f32.mrf.mxu0  ;;  %v3638_v49 = vpop.f32.mrf.mxu1  ;;  %5057 = vmatprep.mubr.msk.bf16.mxu0 %vm5247_vm1, %v5246_v18  ;;  %5054 = vmatpush3.bf16.msra.mxu0 %v5134_v42 }
 0xab8   :  { %5055 = vmatprep.subr.bf16.mxu0 %v5246_v18 }
 0xab9   :  { %v5016_v50 = vpop.f32.mrf.mxu1 }
 0xabb   :  { %5056 = vmatpush3.bf16.msra.mxu0 %v5135_v43 }
 0xac1   :  { %v3681_v57 = vpop.f32.mrf.mxu0 }
 0xac3   :  { %v5021_v51 = vpop.f32.mrf.mxu0  ;;  %v3727_v40 = vpop.f32.mrf.mxu1 }
 0xac4   :  { %v3884_v52 = vpack.c.bf16 %v3727_v40, %v3681_v57  ;;  %v4443_v57 = vld [vmem:[%s6256_s23] ss:$0 sm:$0xff] }
 0xac5   :  { %v3684_v31 = vpop.f32.mrf.mxu0  ;;  %v5027_v53 = vpop.f32.mrf.mxu1 }
 0xac6   :  { %5050 = vmatmul.mubr.msk.bf16.vlgmr.msra.gmra.mxu1 %vm966_vm2, %v3884_v52  ;;  %v5137_v53 = vld [vmem:[%s6259_s26 + $0x30] sm:$0xff]  }
 0xac7   :  { %v5022_v54 = vpop.f32.mrf.mxu0  ;;  %v3730_v55 = vpop.f32.mrf.mxu1  ;;  %5077 = vmatprep.mubr.msk.bf16.mxu1 %vm5247_vm1, %v5246_v18  ;;  %5062 = vmatpush3.bf16.msra.mxu1 %v5136_v41 }
 0xac8   :  { %5063 = vmatprep.subr.bf16.mxu1 %v5246_v18  ;;  %v5138_v54 = vld [vmem:[%s6259_s26 + $0x28] sm:$0xff]   ;;  %v5139_v55 = vld [vmem:[%s6259_s26 + $0x20] sm:$0xff]  }
 0xac9   :  { %v5028_v56 = vpop.f32.mrf.mxu1 }
 0xaca   :  { %v5140_v56 = vld [vmem:[%s6259_s26 + $0x18] sm:$0xff]  }
 0xacb   :  { %5064 = vmatpush3.bf16.msra.mxu1 %v5137_v53 }
 0xacc   :  { %5065 = vmatprep.subr.bf16.mxu1 %v5246_v18 }
 0xacf   :  { %5066 = vmatpush3.bf16.msra.mxu1 %v5138_v54 }
 0xad0   :  { %5067 = vmatprep.subr.bf16.mxu1 %v5246_v18 }
 0xad3   :  { %5068 = vmatpush3.bf16.msra.mxu1 %v5139_v55 }
 0xad4   :  { %5069 = vmatprep.subr.bf16.mxu1 %v5246_v18 }
 0xad7   :  { %5070 = vmatpush3.bf16.msra.mxu1 %v5140_v56 }
 0xad8   :  { %5071 = vmatprep.subr.bf16.mxu1 %v5246_v18 }
 0xb5a   :  { %v3825_v5 = vpop.f32.mrf.mxu1 }
 0xb5c   :  { %v5039_v58 = vpop.f32.mrf.mxu1 }
 0xb5d   :  { %v5142_v58 = vld [vmem:[%s6259_s26 + $0x8] sm:$0xff]  }
 0xb5e   :  { %v3828_v59 = vpop.f32.mrf.mxu1 }
 0xb60   :  { %v5040_v60 = vpop.f32.mrf.mxu1 }
 0xb61   :  { %v4444_v60 = vld [vmem:[%s6258_s25] ss:$0 sm:$0xff] }
 0xb6e   :  { %v3778_v61 = vpop.f32.mrf.mxu0 }
 0xb6f   :  { %v3826_v9 = vadd.f32 %v3825_v5, %v3778_v61  ;;  %v5141_v5 = vld [vmem:[%s6259_s26 + $0x10] sm:$0xff]  }
 0xb70   :  { %v5033_v62 = vpop.f32.mrf.mxu0  ;;  %5072 = vmatpush3.bf16.msra.mxu1 %v5141_v5 }
 0xb71   :  { %5073 = vmatprep.subr.bf16.mxu1 %v5246_v18 }
 0xb72   :  { %v3781_v0 = vpop.f32.mrf.mxu0 }
 0xb73   :  { %v3829_v16 = vadd.f32 %v3828_v59, %v3781_v0  ;;  %v5143_v59 = vld [vmem:[%s6259_s26] sm:$0xff]  }
 0xb74   :  { %v5034_v1 = vpop.f32.mrf.mxu0  ;;  %5074 = vmatpush3.bf16.msra.mxu1 %v5142_v58 }
 0xb75   :  { %5075 = vmatprep.subr.bf16.mxu1 %v5246_v18 }
 0xb76   :  { %v3875_v63 = vpop.f32.mrf.mxu0 }
 0xb77   :  { %v3882_v10 = vadd.f32 %v3875_v63, %v3826_v9 }
 0xb78   :  { %v5045_v4 = vpop.f32.mrf.mxu0  ;;  %5076 = vmatpush3.bf16.msra.mxu1 %v5143_v59 }
 0xb7a   :  { %v3878_v6 = vpop.f32.mrf.mxu0 }
 0xb7b   :  { %v3883_v22 = vadd.f32 %v3878_v6, %v3829_v16 }
 0xb7c   :  { %v5046_v8 = vpop.f32.mrf.mxu0 }
 0xb86   :  { %v3927_v11 = vpop.f32.mrf.mxu1 }
 0xb87   :  { %v3934_v17 = vadd.f32 %v3927_v11, %v3882_v10 }
 0xb88   :  { %v5051_v19 = vpop.f32.mrf.mxu1 }
 0xb89   :  { %v3943_v24 = vadd.f32 %v4441_v13, %v3934_v17 }
 0xb8a   :  { %v3930_v25 = vpop.f32.mrf.mxu1 }
 0xb8b   :  { %v6162_v26 = vadd.f32 %v3943_v24, %v5794_v12  ;;  %v3935_v2 = vadd.f32 %v3930_v25, %v3883_v22  ;;  %v4448_v24 = vld [vmem:[%s6260_s27] ss:$0 sm:$0xff]  ;;  %s5224_s27 = scalar_lea.vmem %s4194_s21, 256 }
 0xb8c   :  { %v5052_v27 = vpop.f32.mrf.mxu1  ;;  %p5225_p0 = scmp.ne.s32.totalorder %s4194_s21, %s5224_s27  ;;  %p5230_p2 = scmp.lt.s32.totalorder %s5224_s27, %s5224_s27 }
 0xb8d   :  { %v3944_v28 = vadd.f32 %v4441_v13, %v3935_v2  ;;  %v3949_v29 = vsel %vm100_vm0, %v6162_v26, 0.0 }
 0xb8e   :  { %3950 = vadd.xlane.f32.xlu0 %v3949_v29  ;;  %p5231_p3 = por %p5230_p2, %p5229_p1 }
 0xb8f   :  { %v6167_v32 = vadd.f32 %v3944_v28, %v5799_v20 }
 0xb90   :  { %p5232_p4 = pnand %p5231_p3, %p5225_p0 }
 0xb91   :  { %v3952_v3 = vsel %vm100_vm0, %v6167_v32, 0.0 }
 0xb92   :  { %3953 = vadd.xlane.f32.xlu1 %v3952_v3 }
 0xc17   :  { %v3951_v33 = vpop.xlane.xlu0 %3950 }
 0xc18   :  { %v3955_v34 = vmul.f32 0.03125, %v3951_v33 }
 0xc1a   :  { %v3957_v35 = vsub.f32 %v6162_v26, %v3955_v34 }
 0xc1b   :  { %v3954_v12 = vpop.xlane.xlu1 %3953 }
 0xc1c   :  { %v3956_v7 = vmul.f32 0.03125, %v3954_v12  ;;  %v3959_v14 = vmul.f32 %v3957_v35, %v3957_v35 }
 0xc1e   :  { %v3958_v36 = vsub.f32 %v6167_v32, %v3956_v7  ;;  %v3961_v37 = vsel %vm100_vm0, %v3959_v14, 0.0 }
 0xc1f   :  { %3962 = vadd.xlane.f32.xlu0 %v3961_v37 }
 0xc20   :  { %v3960_v39 = vmul.f32 %v3958_v36, %v3958_v36 }
 0xc22   :  { %v3964_v20 = vsel %vm100_vm0, %v3960_v39, 0.0 }
 0xc23   :  { %3965 = vadd.xlane.f32.xlu1 %v3964_v20 }
 0xca8   :  { %v3963_v44 = vpop.xlane.xlu0 %3962 }
 0xca9   :  { %v3967_v38 = vmul.f32 0.03125, %v3963_v44 }
 0xcab   :  { %v3969_v45 = vadd.f32 1e-05, %v3967_v38 }
 0xcac   :  { %v3966_v47 = vpop.xlane.xlu1 %3965 }
 0xcad   :  { %5216 = vrsqrt.f32 %v3969_v45  ;;  %v3968_v23 = vmul.f32 0.03125, %v3966_v47 }
 0xcaf   :  { %v3970_v48 = vadd.f32 1e-05, %v3968_v23 }
 0xcb1   :  { %5218 = vrsqrt.f32 %v3970_v48 }
 0xcba   :  { %v5217_v46 = vpop.eup %5216 }
 0xcbb   :  { %v3973_v15 = vmul.f32 %v5217_v46, %v3957_v35 }
 0xcbd   :  { %v3981_v49 = vmul.f32 %v4442_v21, %v3973_v15 }
 0xcbe   :  { %v5219_v30 = vpop.eup %5218 }
 0xcbf   :  { %v3974_v50 = vmul.f32 %v5219_v30, %v3958_v36  ;;  %v3989_v40 = vadd.f32 %v4443_v57, %v3981_v49 }
 0xcc1   :  { %v3982_v51 = vmul.f32 %v4442_v21, %v3974_v50 }
 0xcc3   :  { %v3990_v52 = vadd.f32 %v4443_v57, %v3982_v51 }
 0xcc5   :  { %v3991_v31 = vpack.c.bf16 %v3990_v52, %v3989_v40 }
 0xcc7   :  { %5058 = vmatmul.mubr.msk.bf16.vlgmr.msra.gmra.mxu0 %vm100_vm0, %v3991_v31 }
 0xd87   :  { %v4052_v61 = vpop.f32.mrf.mxu0 }
 0xd88   :  { %v4053_v62 = vadd.f32 %v4444_v60, %v4052_v61 }
 0xd89   :  { %v5059_v0 = vpop.f32.mrf.mxu0 }
 0xd8a   :  { %v4061_v1 = vmul.f32 0.70710677, %v4053_v62  ;;  %v4059_v11 = vmul.f32 0.5, %v4053_v62 }
 0xd8b   :  { %v4055_v63 = vpop.f32.mrf.mxu0 }
 0xd8c   :  { %5220 = verf.f32 %v4061_v1  ;;  %v4056_v4 = vadd.f32 %v4444_v60, %v4055_v63 }
 0xd8d   :  { %v5060_v6 = vpop.f32.mrf.mxu0 }
 0xd8e   :  { %v4062_v8 = vmul.f32 0.70710677, %v4056_v4  ;;  %v4060_v13 = vmul.f32 0.5, %v4056_v4 }
 0xd90   :  { %5222 = verf.f32 %v4062_v8 }
 0xd99   :  { %v5221_v18 = vpop.eup %5220 }
 0xd9a   :  { %v4065_v9 = vadd.f32 1.0, %v5221_v18 }
 0xd9c   :  { %v4067_v17 = vmul.f32 %v4065_v9, %v4059_v11 }
 0xd9d   :  { %v5223_v10 = vpop.eup %5222 }
 0xd9e   :  { %v4066_v16 = vadd.f32 1.0, %v5223_v10 }
 0xda0   :  { %v4068_v19 = vmul.f32 %v4066_v16, %v4060_v13 }
 0xda2   :  { %v4069_v22 = vpack.c.bf16 %v4068_v19, %v4067_v17 }
 0xda4   :  { %5078 = vmatmul.mubr.bf16.vlgmr.msra.gmra.mxu1 %v4069_v22 }
 0xe64   :  { %v4175_v25 = vpop.f32.mrf.mxu1 }
 0xe65   :  { %v4176_v2 = vadd.f32 %v4448_v24, %v4175_v25 }
 0xe66   :  { %v5079_v27 = vpop.f32.mrf.mxu1 }
 0xe67   :  { %v4182_v28 = vadd.f32 %v4176_v2, %v6162_v26 }
 0xe68   :  { %v4178_v29 = vpop.f32.mrf.mxu1 }
 0xe69   :  { %v4184_v3 = vmul.f32 10.0, %v4182_v28  ;;  %v4179_v33 = vadd.f32 %v4448_v24, %v4178_v29 }
 0xe6a   :  { %v5080_v34 = vpop.f32.mrf.mxu1 }
 0xe6b   :  { %4186 = vst.msk [vmem:[#allocation2] sm:$0xff] %vm100_vm0, %v4184_v3  ;;  %v4183_v35 = vadd.f32 %v4179_v33, %v6167_v32 }
 0xe6d   :  { %v4185_v12 = vmul.f32 10.0, %v4183_v35 }
 0xe6f   :  { %4187 = vst.msk [vmem:[#allocation2 + $0x8] sm:$0xff] %vm100_vm0, %v4185_v12 }
 0xe70   :  { %5235 = shalt.err (!%p5232_p4)
}
 0xe71   :  { %s5249_s0 = smov 128   ;;  %s5250_s30 = smov 8  }
 0xe72   :  { %4199 = dma.vmem_to_hbm [thread:$0]  %s4194_s21, 256, %s6261_s28, [#allocation3], %s5249_s0, %s5249_s0, %s5250_s30  }
 0xe73   :  { %5244 = dma.done.wait [#allocation3], 256  }
 0xe74   :  { %5245 = vsyncadd [#allocation3], 4294967040 }
 0xe75   :  { %4203 = vsyncpa [#allocation3], 1 }

</bundles_post_ra>
